<compile_context>
chip_gen: v7x
topology: tpu7x:2x2x1
jax: 0.10.0
libtpu: 0.0.40
codegen_flags: <defaults>
</compile_context>

<pallas_src>
import functools
import math

import jax
import jax.numpy as jnp
from jax import lax
from jax.experimental import pallas as pl
from jax.experimental.pallas import tpu as pltpu

VMEM = pltpu.MemorySpace.VMEM
SMEM = pltpu.MemorySpace.SMEM

_DN_NT = (((1,), (1,)), ((), ()))   # contract last dims:   A @ B.T
_DN_TN = (((0,), (0,)), ((), ()))   # contract first dims:  A.T @ B


# --------------------------- in-kernel helpers ------------------------------

def _mm(a, b):
    # single-pass bf16 MXU matmul, f32 accumulation
    return jnp.dot(a.astype(jnp.bfloat16), b.astype(jnp.bfloat16),
                   preferred_element_type=jnp.float32)


def _mm_nt(a, b):
    # A @ B.T (bf16 MXU, f32 acc)
    return lax.dot_general(a.astype(jnp.bfloat16), b.astype(jnp.bfloat16),
                           _DN_NT, preferred_element_type=jnp.float32)


def _mm_tn(a, b):
    # A.T @ B (bf16 MXU, f32 acc)
    return lax.dot_general(a.astype(jnp.bfloat16), b.astype(jnp.bfloat16),
                           _DN_TN, preferred_element_type=jnp.float32)


def _eye(n):
    ri = lax.broadcasted_iota(jnp.int32, (n, n), 0)
    ci = lax.broadcasted_iota(jnp.int32, (n, n), 1)
    return (ri == ci).astype(jnp.float32)


def _gcn_norm(a_raw):
    # D^-1/2 (A + I) D^-1/2.  A is symmetric by construction, so both degree
    # factors are plain axis reductions (no eye-transpose trick needed).
    n = a_raw.shape[0]
    a = a_raw + _eye(n)
    d_col = lax.rsqrt(jnp.maximum(jnp.sum(a, axis=1, keepdims=True), 1e-12))  # (n,1)
    d_row = lax.rsqrt(jnp.maximum(jnp.sum(a, axis=0, keepdims=True), 1e-12))  # (1,n)
    return a * d_col * d_row


def _encode(a_norm, x, w1, w2):
    # 2-layer GCN encoder: A @ relu(A @ (X W1)) W2   (bf16 MXU, f32 acc)
    h = jnp.maximum(_mm(a_norm, _mm(x, w1)), 0.0)
    return _mm(a_norm, _mm(h, w2))


def _score_tanh(a_norm, h, ws_row):
    # SAGPool GCN score head (Dout=1): A @ (H @ w) == lane-reduce((A @ H) * w);
    # tanh folded in (monotonic -> same top-k; values are the returned fitness).
    ah = _mm(a_norm, h)
    return jnp.tanh(jnp.sum(ah * ws_row, axis=-1, keepdims=True))       # (n, 1)


def _rank_row(s_col, eye):
    # Descending-order rank of each node (0 = max score), returned as a (1, n)
    # row, plus the score as a (1, n) row.  The column->row transpose of the
    # score is done with the exact eye-multiply-and-reduce trick (VPU+XLU only,
    # bitwise equal to the column), so the pairwise ordering is consistent.
    n = s_col.shape[0]
    s_row = jnp.sum(eye * s_col, axis=0, keepdims=True)                 # (1, n)
    ri = lax.broadcasted_iota(jnp.int32, (n, n), 0)
    ci = lax.broadcasted_iota(jnp.int32, (n, n), 1)
    # beats[i, j] == 1  iff node i outranks node j (ties broken by smaller index)
    beats = (s_col > s_row) | ((s_col == s_row) & (ri < ci))
    rank_row = jnp.sum(beats.astype(jnp.float32), axis=0, keepdims=True)
    return rank_row, s_row


def _sel_rows(rank_row, lo, k):
    # (k, n) one-hot selection matrix picking the nodes with rank lo..lo+k-1
    # (i.e. rows of the descending-score permutation).
    n = rank_row.shape[1]
    want = (lax.broadcasted_iota(jnp.int32, (k, n), 0) + lo).astype(jnp.float32)
    return (rank_row == want).astype(jnp.float32)


def _l2norm(v):
    nrm = jnp.sqrt(jnp.sum(v * v, axis=-1, keepdims=True))
    return v / jnp.maximum(nrm, 1e-12)


def _mean_all(v):
    return jnp.mean(v, axis=(0, 1), keepdims=True)                       # (1, 1)


def _project(x, w1, b1, gamma, beta, alpha, w2, b2):
    # Linear -> BatchNorm1d (training batch stats, biased var) -> PReLU -> Linear
    h = _mm(x, w1) + b1
    mean = jnp.mean(h, axis=0, keepdims=True)
    var = jnp.mean((h - mean) ** 2, axis=0, keepdims=True)
    hn = (h - mean) * lax.rsqrt(var + 1e-5) * gamma + beta
    hp = jnp.where(hn >= 0.0, hn, alpha * hn)                 # PReLU, scalar alpha
    return _mm(hp, w2) + b2


def _info_nce(pred, t_pos, t_neg_blocks, tau):
    p = _l2norm(pred)
    pos = jnp.exp(jnp.sum(p * _l2norm(t_pos), axis=-1, keepdims=True) / tau)
    neg_sum = jnp.zeros_like(pos)
    for t_neg in t_neg_blocks:
        sim = _mm_nt(p, _l2norm(t_neg))                       # (k, m) cosine sims
        neg_sum = neg_sum + jnp.sum(jnp.exp(sim / tau), axis=-1, keepdims=True)
    return _mean_all(-jnp.log(pos / (neg_sum + pos + 1e-8)))


def _loss_pool(x, x_pool, y, lam, gam):
    # diag(cov) computed directly as per-feature variances — no dxd Gram matmuls
    nf = float(x.shape[0])
    mf = float(y.shape[0])
    xc = x - jnp.mean(x, axis=0, keepdims=True)
    yc = y - jnp.mean(y, axis=0, keepdims=True)
    xpc = x_pool - jnp.mean(x_pool, axis=0, keepdims=True)
    diag_c0 = jnp.sum(xc * xc, axis=0, keepdims=True) / (nf - 1.0)       # (1, d)
    diag_c1 = jnp.sum(yc * yc, axis=0, keepdims=True) / (mf - 1.0)       # (1, d)
    var_norm_loss = _mean_all((diag_c1 - diag_c0) ** 2)
    # cross-covariance divided by (rows(x) - 1), exactly as the PyTorch ref does
    cxz = _mm_tn(xpc, yc) / (nf - 1.0)                                   # (d, d)
    red = _mean_all(cxz ** 2)
    return lam * var_norm_loss + gam * red


# ------------------------------ fused kernel --------------------------------

def _hpool_kernel(a_ref, x_ref, t_ref, we1_ref, we2_ref, ws_ref,
                  pw1_ref, pw2_ref, pvec_ref, pb2_ref, alpha_ref,
                  h0_ref, loss_ref, fit1_ref, fit2_ref,
                  *, k1, k2, tau, a1, a2, p_coef, lam, gam):
    n = a_ref.shape[0]
    a_raw = a_ref[...]
    x = x_ref[...]
    tgt = t_ref[...]
    w1 = we1_ref[...]
    w2 = we2_ref[...]

    eye_n = _eye(n)
    eye_k1 = _eye(k1)

    # ---- level 0: encode + SAGPool1 score + in-kernel top-k ------------------
    a0n = _gcn_norm(a_raw)
    h0 = _encode(a0n, x, w1, w2)
    s0 = _score_tanh(a0n, h0, ws_ref[0:1, :])                 # (n, 1)
    rank0, s0_row = _rank_row(s0, eye_n)
    sel_p1 = _sel_rows(rank0, 0, k1)                          # perm1          (k1, n)
    sel_n1 = _sel_rows(rank0, k1, n - k1)                     # complement     (n-k1, n)
    fit1 = jnp.sum(sel_p1 * s0_row, axis=-1, keepdims=True)   # tanh(score)[perm1]

    # ---- level 1: subgraph gather + encode + SAGPool2 ------------------------
    # NOTE: per the reference, x[perm1] (raw features, NOT fitness-scaled x_p1)
    # is what gets re-encoded.
    a1_raw = _mm_nt(_mm(sel_p1, a_raw), sel_p1)               # A[perm1][:,perm1] (exact)
    x1_in = _mm(sel_p1, x)                                    # x[perm1]
    a1n = _gcn_norm(a1_raw)
    h1 = _encode(a1n, x1_in, w1, w2)
    s1 = _score_tanh(a1n, h1, ws_ref[1:2, :])                 # (k1, 1)
    rank1, s1_row = _rank_row(s1, eye_k1)
    sel_p2 = _sel_rows(rank1, 0, k2)                          # perm2          (k2, k1)
    sel_n2 = _sel_rows(rank1, k2, k1 - k2)                    # level-1 compl. (k1-k2, k1)
    fit2 = jnp.sum(sel_p2 * s1_row, axis=-1, keepdims=True)

    # ---- level 2: subgraph gather + encode ------------------------------------
    a2_raw = _mm_nt(_mm(sel_p2, a1_raw), sel_p2)              # (k2, k2), exact 0/1
    x2_in = _mm(sel_p2, x1_in)                                # x[perm1][perm2]
    h2 = _encode(_gcn_norm(a2_raw), x2_in, w1, w2)

    # ---- projection heads (packed param slabs) --------------------------------
    preds = []
    for i, h in enumerate((h0, h1, h2)):
        b1 = pvec_ref[3 * i:3 * i + 1, :]
        gamma = pvec_ref[3 * i + 1:3 * i + 2, :]
        beta = pvec_ref[3 * i + 2:3 * i + 3, :]
        preds.append(_project(h, pw1_ref[i], b1, gamma, beta,
                              alpha_ref[i], pw2_ref[i], pb2_ref[i:i + 1, :]))
    pred0, pred1, pred2 = preds

    # ---- target / feature gathers via one-hot bf16 matmuls --------------------
    t_pos1 = _mm(sel_p1, tgt)                                 # target[perm1]
    t_neg1 = _mm(sel_n1, tgt)                                 # target[~perm1]
    t_pos2 = _mm(sel_p2, t_pos1)                              # target[perm1[perm2]]
    t_neg2b = _mm(sel_n2, t_pos1)                             # target[perm1[~perm2]]
    h0_pool = _mm(sel_p1, h0)                                 # x_list[0][perm1]
    h1_pool = _mm(sel_p2, h1)                                 # x_list[1][perm2]

    # ---- losses ----------------------------------------------------------------
    # loss_fn: positive-only contrastive term against the (detached) target
    sim = jnp.exp(jnp.sum(_l2norm(pred0) * _l2norm(tgt), axis=-1, keepdims=True)
                  / tau)
    loss1 = _mean_all(-jnp.log(sim / float(n) + 1e-8))

    loss2 = _info_nce(pred1, t_pos1, (t_neg1,), tau)
    # global negatives at level 2 = (~perm1) ∪ perm1[~perm2]; summed per block
    # (no concat needed — the negative term is a sum over negatives).
    loss3 = _info_nce(pred2, t_pos2, (t_neg1, t_neg2b), tau)

    pool1 = _loss_pool(h0, h0_pool, h1, lam, gam)
    pool2 = _loss_pool(h1, h1_pool, h2, lam, gam)

    h0_ref[...] = h0
    fit1_ref[...] = fit1
    fit2_ref[...] = fit2
    loss_ref[...] = (a1 * loss1 + a2 * (loss2 + loss3) * 0.5
                     + p_coef * (pool1 + pool2) * 0.5)


# ------------------------------ wrapper --------------------------------------

@functools.partial(
    jax.jit, static_argnames=("ratio", "tau", "coef_a1", "coef_a2", "p", "lam"))
def hpool_gcl_forward(params, x, a_raw, target, *, ratio, tau,
                      coef_a1, coef_a2, p, lam):
    n = x.shape[0]
    d = params["w_enc2"].shape[1]
    k1 = int(math.ceil(ratio * n))
    k2 = int(math.ceil(ratio * k1))

    kernel = functools.partial(
        _hpool_kernel, k1=k1, k2=k2, tau=float(tau), a1=float(coef_a1),
        a2=float(coef_a2), p_coef=float(p), lam=float(lam), gam=1.0)

    vmem = pl.BlockSpec(memory_space=VMEM)
    smem = pl.BlockSpec(memory_space=SMEM)

    h0, loss, fit1, fit2 = pl.pallas_call(
        kernel,
        out_shape=(jax.ShapeDtypeStruct((n, d), jnp.float32),
                   jax.ShapeDtypeStruct((1, 1), jnp.float32),
                   jax.ShapeDtypeStruct((k1, 1), jnp.float32),
                   jax.ShapeDtypeStruct((k2, 1), jnp.float32)),
        in_specs=[vmem] * 10 + [smem],
        out_specs=(vmem, vmem, vmem, vmem),
    )(a_raw, x, target,
      params["w_enc1"], params["w_enc2"], params["w_score"],
      params["proj_w1"], params["proj_w2"], params["proj_b1gb"],
      params["proj_b2"], params["proj_alpha"])

    return h0, loss[0, 0], (fit1[:, 0], fit2[:, 0])


# --------------------------- parameter / input init --------------------------

def init_params(key, in_dim, hidden, rep_dim, pred_hid):
    keys = jax.random.split(key, 8)
    ki = iter(keys)

    def rnd(shape, scale=0.1):
        return scale * jax.random.normal(next(ki), shape, dtype=jnp.float32)

    one_head_vecs = jnp.stack([jnp.zeros((pred_hid,), jnp.float32),   # b1
                               jnp.ones((pred_hid,), jnp.float32),    # gamma
                               jnp.zeros((pred_hid,), jnp.float32)])  # beta
    return {
        "w_enc1": rnd((in_dim, hidden)),
        "w_enc2": rnd((hidden, rep_dim)),
        # SAGPool1 / SAGPool2 score weights stacked as rows (lane-wide VPU reduce)
        "w_score": rnd((2, rep_dim)),
        # projection-head params packed into slabs (few big DMAs, not 21 tiny ones)
        "proj_w1": rnd((3, rep_dim, pred_hid)),
        "proj_w2": rnd((3, pred_hid, rep_dim)),
        "proj_b1gb": jnp.tile(one_head_vecs, (3, 1)),          # (9, pred_hid)
        "proj_b2": jnp.zeros((3, rep_dim), jnp.float32),
        "proj_alpha": jnp.full((3,), 0.25, jnp.float32),        # PReLU init (SMEM)
    }


if __name__ == "__main__":
    # lane-dense feature dims (multiples of 128 on the lane axis)
    N, IN_DIM, HIDDEN, REP_DIM, PRED_HID = 64, 32, 128, 128, 128
    RATIO, TAU, A1, A2, P, LAM = 0.5, 0.5, 1.0, 1.0, 1.0, 1.0

    key = jax.random.PRNGKey(0)
    k_param, k_x, k_adj, k_tgt = jax.random.split(key, 4)

    params = init_params(k_param, IN_DIM, HIDDEN, REP_DIM, PRED_HID)

    x = jax.random.normal(k_x, (N, IN_DIM), dtype=jnp.float32)
    r = jax.random.uniform(k_adj, (N, N), dtype=jnp.float32)
    a_raw = (r < 0.15).astype(jnp.float32)
    a_raw = jnp.maximum(a_raw, a_raw.T) * (1.0 - jnp.eye(N, dtype=jnp.float32))
    target = jax.random.normal(k_tgt, (N, REP_DIM), dtype=jnp.float32)

    x0, loss, (fit1, fit2) = hpool_gcl_forward(
        params, x, a_raw, target,
        ratio=RATIO, tau=TAU, coef_a1=A1, coef_a2=A2, p=P, lam=LAM)

    jax.block_until_ready((x0, loss, fit1, fit2))
    assert x0.shape == (N, REP_DIM)
    assert fit1.shape == (int(math.ceil(RATIO * N)),)
    assert fit2.shape == (int(math.ceil(RATIO * math.ceil(RATIO * N))),)
    assert bool(jnp.isfinite(loss))
    print("KERNEL_OK")
</pallas_src>

<mosaic_0001>
module attributes {stable_mosaic.version = 11 : i64} {
  func.func @_hpool_kernel(%arg0: memref<64x64xf32, #tpu.memory_space<vmem>>, %arg1: memref<64x32xf32, #tpu.memory_space<vmem>>, %arg2: memref<64x128xf32, #tpu.memory_space<vmem>>, %arg3: memref<32x128xf32, #tpu.memory_space<vmem>>, %arg4: memref<128x128xf32, #tpu.memory_space<vmem>>, %arg5: memref<2x128xf32, #tpu.memory_space<vmem>>, %arg6: memref<3x128x128xf32, #tpu.memory_space<vmem>>, %arg7: memref<3x128x128xf32, #tpu.memory_space<vmem>>, %arg8: memref<9x128xf32, #tpu.memory_space<vmem>>, %arg9: memref<3x128xf32, #tpu.memory_space<vmem>>, %arg10: memref<3xf32, #tpu.memory_space<smem>>, %arg11: memref<64x128xf32, #tpu.memory_space<vmem>>, %arg12: memref<1x1xf32, #tpu.memory_space<vmem>>, %arg13: memref<32x1xf32, #tpu.memory_space<vmem>>, %arg14: memref<16x1xf32, #tpu.memory_space<vmem>>) attributes {dimension_semantics = [], scalar_prefetch = 0 : i64, scratch_operands = 0 : i64, tpu.core_type = #tpu.core_type<tc>} {
    %c0 = arith.constant 0 : index
    %c0_0 = arith.constant 0 : index
    %0 = vector.load %arg0[%c0, %c0_0] : memref<64x64xf32, #tpu.memory_space<vmem>>, vector<64x64xf32>
    %c0_1 = arith.constant 0 : index
    %c0_2 = arith.constant 0 : index
    %1 = vector.load %arg1[%c0_1, %c0_2] : memref<64x32xf32, #tpu.memory_space<vmem>>, vector<64x32xf32>
    %c0_3 = arith.constant 0 : index
    %c0_4 = arith.constant 0 : index
    %2 = vector.load %arg2[%c0_3, %c0_4] : memref<64x128xf32, #tpu.memory_space<vmem>>, vector<64x128xf32>
    %c0_5 = arith.constant 0 : index
    %c0_6 = arith.constant 0 : index
    %3 = vector.load %arg3[%c0_5, %c0_6] : memref<32x128xf32, #tpu.memory_space<vmem>>, vector<32x128xf32>
    %c0_7 = arith.constant 0 : index
    %c0_8 = arith.constant 0 : index
    %4 = vector.load %arg4[%c0_7, %c0_8] : memref<128x128xf32, #tpu.memory_space<vmem>>, vector<128x128xf32>
    %5 = tpu.iota {dimensions = array<i32: 0>} : vector<64x64xi32>
    %6 = tpu.iota {dimensions = array<i32: 1>} : vector<64x64xi32>
    %7 = arith.cmpi eq, %5, %6 : vector<64x64xi32>
    %8 = arith.extui %7 : vector<64x64xi1> to vector<64x64xi32>
    %9 = arith.sitofp %8 : vector<64x64xi32> to vector<64x64xf32>
    %10 = tpu.iota {dimensions = array<i32: 0>} : vector<32x32xi32>
    %11 = tpu.iota {dimensions = array<i32: 1>} : vector<32x32xi32>
    %12 = arith.cmpi eq, %10, %11 : vector<32x32xi32>
    %13 = arith.extui %12 : vector<32x32xi1> to vector<32x32xi32>
    %14 = arith.sitofp %13 : vector<32x32xi32> to vector<32x32xf32>
    %15 = tpu.iota {dimensions = array<i32: 0>} : vector<64x64xi32>
    %16 = tpu.iota {dimensions = array<i32: 1>} : vector<64x64xi32>
    %17 = arith.cmpi eq, %15, %16 : vector<64x64xi32>
    %18 = arith.extui %17 : vector<64x64xi1> to vector<64x64xi32>
    %19 = arith.sitofp %18 : vector<64x64xi32> to vector<64x64xf32>
    %20 = arith.addf %0, %19 : vector<64x64xf32>
    %cst = arith.constant dense<0.000000e+00> : vector<64xf32>
    %21 = vector.multi_reduction <add>, %20, %cst [1] : vector<64x64xf32> to vector<64xf32>
    %22 = vector.shape_cast %21 : vector<64xf32> to vector<64x1xf32>
    %cst_9 = arith.constant 9.99999996E-13 : f32
    %23 = vector.broadcast %cst_9 : f32 to vector<64x1xf32>
    %24 = arith.maximumf %22, %23 : vector<64x1xf32>
    %25 = math.rsqrt %24 : vector<64x1xf32>
    %cst_10 = arith.constant dense<0.000000e+00> : vector<64xf32>
    %26 = vector.multi_reduction <add>, %20, %cst_10 [0] : vector<64x64xf32> to vector<64xf32>
    %27 = vector.shape_cast %26 : vector<64xf32> to vector<1x64xf32>
    %cst_11 = arith.constant 9.99999996E-13 : f32
    %28 = vector.broadcast %cst_11 : f32 to vector<1x64xf32>
    %29 = arith.maximumf %27, %28 : vector<1x64xf32>
    %30 = math.rsqrt %29 : vector<1x64xf32>
    %31 = vector.broadcast %25 : vector<64x1xf32> to vector<64x64xf32>
    %32 = arith.mulf %20, %31 : vector<64x64xf32>
    %33 = vector.broadcast %30 : vector<1x64xf32> to vector<64x64xf32>
    %34 = arith.mulf %32, %33 : vector<64x64xf32>
    %35 = arith.truncf %1 : vector<64x32xf32> to vector<64x32xbf16>
    %36 = arith.truncf %3 : vector<32x128xf32> to vector<32x128xbf16>
    %cst_12 = arith.constant dense<0.000000e+00> : vector<64x128xf32>
    %37 = tpu.matmul %35, %36, %cst_12 {dimension_numbers = #tpu.dot_dimension_numbers<[1], [0], [0], [1], [0, 0, 1, 1], [], []>} : vector<64x32xbf16>, vector<32x128xbf16>, vector<64x128xf32> -> vector<64x128xf32>
    %38 = arith.truncf %34 : vector<64x64xf32> to vector<64x64xbf16>
    %39 = arith.truncf %37 : vector<64x128xf32> to vector<64x128xbf16>
    %cst_13 = arith.constant dense<0.000000e+00> : vector<64x128xf32>
    %40 = tpu.matmul %38, %39, %cst_13 {dimension_numbers = #tpu.dot_dimension_numbers<[1], [0], [0], [1], [0, 0, 1, 1], [], []>} : vector<64x64xbf16>, vector<64x128xbf16>, vector<64x128xf32> -> vector<64x128xf32>
    %cst_14 = arith.constant 0.000000e+00 : f32
    %41 = vector.broadcast %cst_14 : f32 to vector<64x128xf32>
    %42 = arith.maximumf %40, %41 : vector<64x128xf32>
    %43 = arith.truncf %42 : vector<64x128xf32> to vector<64x128xbf16>
    %44 = arith.truncf %4 : vector<128x128xf32> to vector<128x128xbf16>
    %cst_15 = arith.constant dense<0.000000e+00> : vector<64x128xf32>
    %45 = tpu.matmul %43, %44, %cst_15 {dimension_numbers = #tpu.dot_dimension_numbers<[1], [0], [0], [1], [0, 0, 1, 1], [], []>} : vector<64x128xbf16>, vector<128x128xbf16>, vector<64x128xf32> -> vector<64x128xf32>
    %46 = arith.truncf %34 : vector<64x64xf32> to vector<64x64xbf16>
    %47 = arith.truncf %45 : vector<64x128xf32> to vector<64x128xbf16>
    %cst_16 = arith.constant dense<0.000000e+00> : vector<64x128xf32>
    %48 = tpu.matmul %46, %47, %cst_16 {dimension_numbers = #tpu.dot_dimension_numbers<[1], [0], [0], [1], [0, 0, 1, 1], [], []>} : vector<64x64xbf16>, vector<64x128xbf16>, vector<64x128xf32> -> vector<64x128xf32>
    %c0_17 = arith.constant 0 : index
    %c0_18 = arith.constant 0 : index
    %49 = vector.load %arg5[%c0_17, %c0_18] : memref<2x128xf32, #tpu.memory_space<vmem>>, vector<1x128xf32>
    %50 = arith.truncf %34 : vector<64x64xf32> to vector<64x64xbf16>
    %51 = arith.truncf %48 : vector<64x128xf32> to vector<64x128xbf16>
    %cst_19 = arith.constant dense<0.000000e+00> : vector<64x128xf32>
    %52 = tpu.matmul %50, %51, %cst_19 {dimension_numbers = #tpu.dot_dimension_numbers<[1], [0], [0], [1], [0, 0, 1, 1], [], []>} : vector<64x64xbf16>, vector<64x128xbf16>, vector<64x128xf32> -> vector<64x128xf32>
    %53 = vector.broadcast %49 : vector<1x128xf32> to vector<64x128xf32>
    %54 = arith.mulf %52, %53 : vector<64x128xf32>
    %cst_20 = arith.constant dense<0.000000e+00> : vector<64xf32>
    %55 = vector.multi_reduction <add>, %54, %cst_20 [1] : vector<64x128xf32> to vector<64xf32>
    %56 = vector.shape_cast %55 : vector<64xf32> to vector<64x1xf32>
    %57 = math.tanh %56 : vector<64x1xf32>
    %58 = vector.broadcast %57 : vector<64x1xf32> to vector<64x64xf32>
    %59 = arith.mulf %9, %58 : vector<64x64xf32>
    %cst_21 = arith.constant dense<0.000000e+00> : vector<64xf32>
    %60 = vector.multi_reduction <add>, %59, %cst_21 [0] : vector<64x64xf32> to vector<64xf32>
    %61 = vector.shape_cast %60 : vector<64xf32> to vector<1x64xf32>
    %62 = tpu.iota {dimensions = array<i32: 0>} : vector<64x64xi32>
    %63 = tpu.iota {dimensions = array<i32: 1>} : vector<64x64xi32>
    %64 = vector.broadcast %57 : vector<64x1xf32> to vector<64x64xf32>
    %65 = vector.broadcast %61 : vector<1x64xf32> to vector<64x64xf32>
    %66 = arith.cmpf ogt, %64, %65 : vector<64x64xf32>
    %67 = vector.broadcast %57 : vector<64x1xf32> to vector<64x64xf32>
    %68 = vector.broadcast %61 : vector<1x64xf32> to vector<64x64xf32>
    %69 = arith.cmpf oeq, %67, %68 : vector<64x64xf32>
    %70 = arith.cmpi slt, %62, %63 : vector<64x64xi32>
    %71 = arith.andi %69, %70 : vector<64x64xi1>
    %72 = arith.ori %66, %71 : vector<64x64xi1>
    %73 = arith.extui %72 : vector<64x64xi1> to vector<64x64xi32>
    %74 = arith.sitofp %73 : vector<64x64xi32> to vector<64x64xf32>
    %cst_22 = arith.constant dense<0.000000e+00> : vector<64xf32>
    %75 = vector.multi_reduction <add>, %74, %cst_22 [0] : vector<64x64xf32> to vector<64xf32>
    %76 = vector.shape_cast %75 : vector<64xf32> to vector<1x64xf32>
    %77 = tpu.iota {dimensions = array<i32: 0>} : vector<32x64xi32>
    %c0_i32 = arith.constant 0 : i32
    %78 = vector.broadcast %c0_i32 : i32 to vector<32x64xi32>
    %79 = arith.addi %77, %78 : vector<32x64xi32>
    %80 = arith.sitofp %79 : vector<32x64xi32> to vector<32x64xf32>
    %81 = vector.broadcast %76 : vector<1x64xf32> to vector<32x64xf32>
    %82 = arith.cmpf oeq, %81, %80 : vector<32x64xf32>
    %83 = arith.extui %82 : vector<32x64xi1> to vector<32x64xi32>
    %84 = arith.sitofp %83 : vector<32x64xi32> to vector<32x64xf32>
    %85 = tpu.iota {dimensions = array<i32: 0>} : vector<32x64xi32>
    %c32_i32 = arith.constant 32 : i32
    %86 = vector.broadcast %c32_i32 : i32 to vector<32x64xi32>
    %87 = arith.addi %85, %86 : vector<32x64xi32>
    %88 = arith.sitofp %87 : vector<32x64xi32> to vector<32x64xf32>
    %89 = vector.broadcast %76 : vector<1x64xf32> to vector<32x64xf32>
    %90 = arith.cmpf oeq, %89, %88 : vector<32x64xf32>
    %91 = arith.extui %90 : vector<32x64xi1> to vector<32x64xi32>
    %92 = arith.sitofp %91 : vector<32x64xi32> to vector<32x64xf32>
    %93 = vector.broadcast %61 : vector<1x64xf32> to vector<32x64xf32>
    %94 = arith.mulf %84, %93 : vector<32x64xf32>
    %cst_23 = arith.constant dense<0.000000e+00> : vector<32xf32>
    %95 = vector.multi_reduction <add>, %94, %cst_23 [1] : vector<32x64xf32> to vector<32xf32>
    %96 = vector.shape_cast %95 : vector<32xf32> to vector<32x1xf32>
    %97 = arith.truncf %84 : vector<32x64xf32> to vector<32x64xbf16>
    %98 = arith.truncf %0 : vector<64x64xf32> to vector<64x64xbf16>
    %cst_24 = arith.constant dense<0.000000e+00> : vector<32x64xf32>
    %99 = tpu.matmul %97, %98, %cst_24 {dimension_numbers = #tpu.dot_dimension_numbers<[1], [0], [0], [1], [0, 0, 1, 1], [], []>} : vector<32x64xbf16>, vector<64x64xbf16>, vector<32x64xf32> -> vector<32x64xf32>
    %100 = arith.truncf %99 : vector<32x64xf32> to vector<32x64xbf16>
    %101 = arith.truncf %84 : vector<32x64xf32> to vector<32x64xbf16>
    %cst_25 = arith.constant dense<0.000000e+00> : vector<32x32xf32>
    %102 = tpu.matmul %100, %101, %cst_25 {dimension_numbers = #tpu.dot_dimension_numbers<[1], [1], [0], [0], [0, 0, 1, 0], [], []>} : vector<32x64xbf16>, vector<32x64xbf16>, vector<32x32xf32> -> vector<32x32xf32>
    %103 = arith.truncf %84 : vector<32x64xf32> to vector<32x64xbf16>
    %104 = arith.truncf %1 : vector<64x32xf32> to vector<64x32xbf16>
    %cst_26 = arith.constant dense<0.000000e+00> : vector<32x32xf32>
    %105 = tpu.matmul %103, %104, %cst_26 {dimension_numbers = #tpu.dot_dimension_numbers<[1], [0], [0], [1], [0, 0, 1, 1], [], []>} : vector<32x64xbf16>, vector<64x32xbf16>, vector<32x32xf32> -> vector<32x32xf32>
    %106 = tpu.iota {dimensions = array<i32: 0>} : vector<32x32xi32>
    %107 = tpu.iota {dimensions = array<i32: 1>} : vector<32x32xi32>
    %108 = arith.cmpi eq, %106, %107 : vector<32x32xi32>
    %109 = arith.extui %108 : vector<32x32xi1> to vector<32x32xi32>
    %110 = arith.sitofp %109 : vector<32x32xi32> to vector<32x32xf32>
    %111 = arith.addf %102, %110 : vector<32x32xf32>
    %cst_27 = arith.constant dense<0.000000e+00> : vector<32xf32>
    %112 = vector.multi_reduction <add>, %111, %cst_27 [1] : vector<32x32xf32> to vector<32xf32>
    %113 = vector.shape_cast %112 : vector<32xf32> to vector<32x1xf32>
    %cst_28 = arith.constant 9.99999996E-13 : f32
    %114 = vector.broadcast %cst_28 : f32 to vector<32x1xf32>
    %115 = arith.maximumf %113, %114 : vector<32x1xf32>
    %116 = math.rsqrt %115 : vector<32x1xf32>
    %cst_29 = arith.constant dense<0.000000e+00> : vector<32xf32>
    %117 = vector.multi_reduction <add>, %111, %cst_29 [0] : vector<32x32xf32> to vector<32xf32>
    %118 = vector.shape_cast %117 : vector<32xf32> to vector<1x32xf32>
    %cst_30 = arith.constant 9.99999996E-13 : f32
    %119 = vector.broadcast %cst_30 : f32 to vector<1x32xf32>
    %120 = arith.maximumf %118, %119 : vector<1x32xf32>
    %121 = math.rsqrt %120 : vector<1x32xf32>
    %122 = vector.broadcast %116 : vector<32x1xf32> to vector<32x32xf32>
    %123 = arith.mulf %111, %122 : vector<32x32xf32>
    %124 = vector.broadcast %121 : vector<1x32xf32> to vector<32x32xf32>
    %125 = arith.mulf %123, %124 : vector<32x32xf32>
    %126 = arith.truncf %105 : vector<32x32xf32> to vector<32x32xbf16>
    %127 = arith.truncf %3 : vector<32x128xf32> to vector<32x128xbf16>
    %cst_31 = arith.constant dense<0.000000e+00> : vector<32x128xf32>
    %128 = tpu.matmul %126, %127, %cst_31 {dimension_numbers = #tpu.dot_dimension_numbers<[1], [0], [0], [1], [0, 0, 1, 1], [], []>} : vector<32x32xbf16>, vector<32x128xbf16>, vector<32x128xf32> -> vector<32x128xf32>
    %129 = arith.truncf %125 : vector<32x32xf32> to vector<32x32xbf16>
    %130 = arith.truncf %128 : vector<32x128xf32> to vector<32x128xbf16>
    %cst_32 = arith.constant dense<0.000000e+00> : vector<32x128xf32>
    %131 = tpu.matmul %129, %130, %cst_32 {dimension_numbers = #tpu.dot_dimension_numbers<[1], [0], [0], [1], [0, 0, 1, 1], [], []>} : vector<32x32xbf16>, vector<32x128xbf16>, vector<32x128xf32> -> vector<32x128xf32>
    %cst_33 = arith.constant 0.000000e+00 : f32
    %132 = vector.broadcast %cst_33 : f32 to vector<32x128xf32>
    %133 = arith.maximumf %131, %132 : vector<32x128xf32>
    %134 = arith.truncf %133 : vector<32x128xf32> to vector<32x128xbf16>
    %135 = arith.truncf %4 : vector<128x128xf32> to vector<128x128xbf16>
    %cst_34 = arith.constant dense<0.000000e+00> : vector<32x128xf32>
    %136 = tpu.matmul %134, %135, %cst_34 {dimension_numbers = #tpu.dot_dimension_numbers<[1], [0], [0], [1], [0, 0, 1, 1], [], []>} : vector<32x128xbf16>, vector<128x128xbf16>, vector<32x128xf32> -> vector<32x128xf32>
    %137 = arith.truncf %125 : vector<32x32xf32> to vector<32x32xbf16>
    %138 = arith.truncf %136 : vector<32x128xf32> to vector<32x128xbf16>
    %cst_35 = arith.constant dense<0.000000e+00> : vector<32x128xf32>
    %139 = tpu.matmul %137, %138, %cst_35 {dimension_numbers = #tpu.dot_dimension_numbers<[1], [0], [0], [1], [0, 0, 1, 1], [], []>} : vector<32x32xbf16>, vector<32x128xbf16>, vector<32x128xf32> -> vector<32x128xf32>
    %c1 = arith.constant 1 : index
    %c0_36 = arith.constant 0 : index
    %140 = vector.load %arg5[%c1, %c0_36] : memref<2x128xf32, #tpu.memory_space<vmem>>, vector<1x128xf32>
    %141 = arith.truncf %125 : vector<32x32xf32> to vector<32x32xbf16>
    %142 = arith.truncf %139 : vector<32x128xf32> to vector<32x128xbf16>
    %cst_37 = arith.constant dense<0.000000e+00> : vector<32x128xf32>
    %143 = tpu.matmul %141, %142, %cst_37 {dimension_numbers = #tpu.dot_dimension_numbers<[1], [0], [0], [1], [0, 0, 1, 1], [], []>} : vector<32x32xbf16>, vector<32x128xbf16>, vector<32x128xf32> -> vector<32x128xf32>
    %144 = vector.broadcast %140 : vector<1x128xf32> to vector<32x128xf32>
    %145 = arith.mulf %143, %144 : vector<32x128xf32>
    %cst_38 = arith.constant dense<0.000000e+00> : vector<32xf32>
    %146 = vector.multi_reduction <add>, %145, %cst_38 [1] : vector<32x128xf32> to vector<32xf32>
    %147 = vector.shape_cast %146 : vector<32xf32> to vector<32x1xf32>
    %148 = math.tanh %147 : vector<32x1xf32>
    %149 = vector.broadcast %148 : vector<32x1xf32> to vector<32x32xf32>
    %150 = arith.mulf %14, %149 : vector<32x32xf32>
    %cst_39 = arith.constant dense<0.000000e+00> : vector<32xf32>
    %151 = vector.multi_reduction <add>, %150, %cst_39 [0] : vector<32x32xf32> to vector<32xf32>
    %152 = vector.shape_cast %151 : vector<32xf32> to vector<1x32xf32>
    %153 = tpu.iota {dimensions = array<i32: 0>} : vector<32x32xi32>
    %154 = tpu.iota {dimensions = array<i32: 1>} : vector<32x32xi32>
    %155 = vector.broadcast %148 : vector<32x1xf32> to vector<32x32xf32>
    %156 = vector.broadcast %152 : vector<1x32xf32> to vector<32x32xf32>
    %157 = arith.cmpf ogt, %155, %156 : vector<32x32xf32>
    %158 = vector.broadcast %148 : vector<32x1xf32> to vector<32x32xf32>
    %159 = vector.broadcast %152 : vector<1x32xf32> to vector<32x32xf32>
    %160 = arith.cmpf oeq, %158, %159 : vector<32x32xf32>
    %161 = arith.cmpi slt, %153, %154 : vector<32x32xi32>
    %162 = arith.andi %160, %161 : vector<32x32xi1>
    %163 = arith.ori %157, %162 : vector<32x32xi1>
    %164 = arith.extui %163 : vector<32x32xi1> to vector<32x32xi32>
    %165 = arith.sitofp %164 : vector<32x32xi32> to vector<32x32xf32>
    %cst_40 = arith.constant dense<0.000000e+00> : vector<32xf32>
    %166 = vector.multi_reduction <add>, %165, %cst_40 [0] : vector<32x32xf32> to vector<32xf32>
    %167 = vector.shape_cast %166 : vector<32xf32> to vector<1x32xf32>
    %168 = tpu.iota {dimensions = array<i32: 0>} : vector<16x32xi32>
    %c0_i32_41 = arith.constant 0 : i32
    %169 = vector.broadcast %c0_i32_41 : i32 to vector<16x32xi32>
    %170 = arith.addi %168, %169 : vector<16x32xi32>
    %171 = arith.sitofp %170 : vector<16x32xi32> to vector<16x32xf32>
    %172 = vector.broadcast %167 : vector<1x32xf32> to vector<16x32xf32>
    %173 = arith.cmpf oeq, %172, %171 : vector<16x32xf32>
    %174 = arith.extui %173 : vector<16x32xi1> to vector<16x32xi32>
    %175 = arith.sitofp %174 : vector<16x32xi32> to vector<16x32xf32>
    %176 = tpu.iota {dimensions = array<i32: 0>} : vector<16x32xi32>
    %c16_i32 = arith.constant 16 : i32
    %177 = vector.broadcast %c16_i32 : i32 to vector<16x32xi32>
    %178 = arith.addi %176, %177 : vector<16x32xi32>
    %179 = arith.sitofp %178 : vector<16x32xi32> to vector<16x32xf32>
    %180 = vector.broadcast %167 : vector<1x32xf32> to vector<16x32xf32>
    %181 = arith.cmpf oeq, %180, %179 : vector<16x32xf32>
    %182 = arith.extui %181 : vector<16x32xi1> to vector<16x32xi32>
    %183 = arith.sitofp %182 : vector<16x32xi32> to vector<16x32xf32>
    %184 = vector.broadcast %152 : vector<1x32xf32> to vector<16x32xf32>
    %185 = arith.mulf %175, %184 : vector<16x32xf32>
    %cst_42 = arith.constant dense<0.000000e+00> : vector<16xf32>
    %186 = vector.multi_reduction <add>, %185, %cst_42 [1] : vector<16x32xf32> to vector<16xf32>
    %187 = vector.shape_cast %186 : vector<16xf32> to vector<16x1xf32>
    %188 = arith.truncf %175 : vector<16x32xf32> to vector<16x32xbf16>
    %189 = arith.truncf %102 : vector<32x32xf32> to vector<32x32xbf16>
    %cst_43 = arith.constant dense<0.000000e+00> : vector<16x32xf32>
    %190 = tpu.matmul %188, %189, %cst_43 {dimension_numbers = #tpu.dot_dimension_numbers<[1], [0], [0], [1], [0, 0, 1, 1], [], []>} : vector<16x32xbf16>, vector<32x32xbf16>, vector<16x32xf32> -> vector<16x32xf32>
    %191 = arith.truncf %190 : vector<16x32xf32> to vector<16x32xbf16>
    %192 = arith.truncf %175 : vector<16x32xf32> to vector<16x32xbf16>
    %cst_44 = arith.constant dense<0.000000e+00> : vector<16x16xf32>
    %193 = tpu.matmul %191, %192, %cst_44 {dimension_numbers = #tpu.dot_dimension_numbers<[1], [1], [0], [0], [0, 0, 1, 0], [], []>} : vector<16x32xbf16>, vector<16x32xbf16>, vector<16x16xf32> -> vector<16x16xf32>
    %194 = arith.truncf %175 : vector<16x32xf32> to vector<16x32xbf16>
    %195 = arith.truncf %105 : vector<32x32xf32> to vector<32x32xbf16>
    %cst_45 = arith.constant dense<0.000000e+00> : vector<16x32xf32>
    %196 = tpu.matmul %194, %195, %cst_45 {dimension_numbers = #tpu.dot_dimension_numbers<[1], [0], [0], [1], [0, 0, 1, 1], [], []>} : vector<16x32xbf16>, vector<32x32xbf16>, vector<16x32xf32> -> vector<16x32xf32>
    %197 = tpu.iota {dimensions = array<i32: 0>} : vector<16x16xi32>
    %198 = tpu.iota {dimensions = array<i32: 1>} : vector<16x16xi32>
    %199 = arith.cmpi eq, %197, %198 : vector<16x16xi32>
    %200 = arith.extui %199 : vector<16x16xi1> to vector<16x16xi32>
    %201 = arith.sitofp %200 : vector<16x16xi32> to vector<16x16xf32>
    %202 = arith.addf %193, %201 : vector<16x16xf32>
    %cst_46 = arith.constant dense<0.000000e+00> : vector<16xf32>
    %203 = vector.multi_reduction <add>, %202, %cst_46 [1] : vector<16x16xf32> to vector<16xf32>
    %204 = vector.shape_cast %203 : vector<16xf32> to vector<16x1xf32>
    %cst_47 = arith.constant 9.99999996E-13 : f32
    %205 = vector.broadcast %cst_47 : f32 to vector<16x1xf32>
    %206 = arith.maximumf %204, %205 : vector<16x1xf32>
    %207 = math.rsqrt %206 : vector<16x1xf32>
    %cst_48 = arith.constant dense<0.000000e+00> : vector<16xf32>
    %208 = vector.multi_reduction <add>, %202, %cst_48 [0] : vector<16x16xf32> to vector<16xf32>
    %209 = vector.shape_cast %208 : vector<16xf32> to vector<1x16xf32>
    %cst_49 = arith.constant 9.99999996E-13 : f32
    %210 = vector.broadcast %cst_49 : f32 to vector<1x16xf32>
    %211 = arith.maximumf %209, %210 : vector<1x16xf32>
    %212 = math.rsqrt %211 : vector<1x16xf32>
    %213 = vector.broadcast %207 : vector<16x1xf32> to vector<16x16xf32>
    %214 = arith.mulf %202, %213 : vector<16x16xf32>
    %215 = vector.broadcast %212 : vector<1x16xf32> to vector<16x16xf32>
    %216 = arith.mulf %214, %215 : vector<16x16xf32>
    %217 = arith.truncf %196 : vector<16x32xf32> to vector<16x32xbf16>
    %218 = arith.truncf %3 : vector<32x128xf32> to vector<32x128xbf16>
    %cst_50 = arith.constant dense<0.000000e+00> : vector<16x128xf32>
    %219 = tpu.matmul %217, %218, %cst_50 {dimension_numbers = #tpu.dot_dimension_numbers<[1], [0], [0], [1], [0, 0, 1, 1], [], []>} : vector<16x32xbf16>, vector<32x128xbf16>, vector<16x128xf32> -> vector<16x128xf32>
    %220 = arith.truncf %216 : vector<16x16xf32> to vector<16x16xbf16>
    %221 = arith.truncf %219 : vector<16x128xf32> to vector<16x128xbf16>
    %cst_51 = arith.constant dense<0.000000e+00> : vector<16x128xf32>
    %222 = tpu.matmul %220, %221, %cst_51 {dimension_numbers = #tpu.dot_dimension_numbers<[1], [0], [0], [1], [0, 0, 1, 1], [], []>} : vector<16x16xbf16>, vector<16x128xbf16>, vector<16x128xf32> -> vector<16x128xf32>
    %cst_52 = arith.constant 0.000000e+00 : f32
    %223 = vector.broadcast %cst_52 : f32 to vector<16x128xf32>
    %224 = arith.maximumf %222, %223 : vector<16x128xf32>
    %225 = arith.truncf %224 : vector<16x128xf32> to vector<16x128xbf16>
    %226 = arith.truncf %4 : vector<128x128xf32> to vector<128x128xbf16>
    %cst_53 = arith.constant dense<0.000000e+00> : vector<16x128xf32>
    %227 = tpu.matmul %225, %226, %cst_53 {dimension_numbers = #tpu.dot_dimension_numbers<[1], [0], [0], [1], [0, 0, 1, 1], [], []>} : vector<16x128xbf16>, vector<128x128xbf16>, vector<16x128xf32> -> vector<16x128xf32>
    %228 = arith.truncf %216 : vector<16x16xf32> to vector<16x16xbf16>
    %229 = arith.truncf %227 : vector<16x128xf32> to vector<16x128xbf16>
    %cst_54 = arith.constant dense<0.000000e+00> : vector<16x128xf32>
    %230 = tpu.matmul %228, %229, %cst_54 {dimension_numbers = #tpu.dot_dimension_numbers<[1], [0], [0], [1], [0, 0, 1, 1], [], []>} : vector<16x16xbf16>, vector<16x128xbf16>, vector<16x128xf32> -> vector<16x128xf32>
    %c0_55 = arith.constant 0 : index
    %c0_56 = arith.constant 0 : index
    %231 = vector.load %arg8[%c0_55, %c0_56] : memref<9x128xf32, #tpu.memory_space<vmem>>, vector<1x128xf32>
    %c1_57 = arith.constant 1 : index
    %c0_58 = arith.constant 0 : index
    %232 = vector.load %arg8[%c1_57, %c0_58] : memref<9x128xf32, #tpu.memory_space<vmem>>, vector<1x128xf32>
    %c2 = arith.constant 2 : index
    %c0_59 = arith.constant 0 : index
    %233 = vector.load %arg8[%c2, %c0_59] : memref<9x128xf32, #tpu.memory_space<vmem>>, vector<1x128xf32>
    %c0_60 = arith.constant 0 : index
    %c0_61 = arith.constant 0 : index
    %c0_62 = arith.constant 0 : index
    %234 = vector.load %arg6[%c0_60, %c0_61, %c0_62] : memref<3x128x128xf32, #tpu.memory_space<vmem>>, vector<1x128x128xf32>
    %235 = vector.shape_cast %234 : vector<1x128x128xf32> to vector<128x128xf32>
    %c0_63 = arith.constant 0 : index
    %236 = memref.load %arg10[%c0_63] : memref<3xf32, #tpu.memory_space<smem>>
    %c0_64 = arith.constant 0 : index
    %c0_65 = arith.constant 0 : index
    %c0_66 = arith.constant 0 : index
    %237 = vector.load %arg7[%c0_64, %c0_65, %c0_66] : memref<3x128x128xf32, #tpu.memory_space<vmem>>, vector<1x128x128xf32>
    %238 = vector.shape_cast %237 : vector<1x128x128xf32> to vector<128x128xf32>
    %c0_67 = arith.constant 0 : index
    %c0_68 = arith.constant 0 : index
    %239 = vector.load %arg9[%c0_67, %c0_68] : memref<3x128xf32, #tpu.memory_space<vmem>>, vector<1x128xf32>
    %240 = arith.truncf %48 : vector<64x128xf32> to vector<64x128xbf16>
    %241 = arith.truncf %235 : vector<128x128xf32> to vector<128x128xbf16>
    %cst_69 = arith.constant dense<0.000000e+00> : vector<64x128xf32>
    %242 = tpu.matmul %240, %241, %cst_69 {dimension_numbers = #tpu.dot_dimension_numbers<[1], [0], [0], [1], [0, 0, 1, 1], [], []>} : vector<64x128xbf16>, vector<128x128xbf16>, vector<64x128xf32> -> vector<64x128xf32>
    %243 = vector.broadcast %231 : vector<1x128xf32> to vector<64x128xf32>
    %244 = arith.addf %242, %243 : vector<64x128xf32>
    %cst_70 = arith.constant dense<0.000000e+00> : vector<128xf32>
    %245 = vector.multi_reduction <add>, %244, %cst_70 [0] : vector<64x128xf32> to vector<128xf32>
    %246 = vector.shape_cast %245 : vector<128xf32> to vector<1x128xf32>
    %cst_71 = arith.constant 6.400000e+01 : f32
    %247 = vector.broadcast %cst_71 : f32 to vector<1x128xf32>
    %248 = arith.divf %246, %247 : vector<1x128xf32>
    %249 = vector.broadcast %248 : vector<1x128xf32> to vector<64x128xf32>
    %250 = arith.subf %244, %249 : vector<64x128xf32>
    %251 = arith.mulf %250, %250 : vector<64x128xf32>
    %cst_72 = arith.constant dense<0.000000e+00> : vector<128xf32>
    %252 = vector.multi_reduction <add>, %251, %cst_72 [0] : vector<64x128xf32> to vector<128xf32>
    %253 = vector.shape_cast %252 : vector<128xf32> to vector<1x128xf32>
    %cst_73 = arith.constant 6.400000e+01 : f32
    %254 = vector.broadcast %cst_73 : f32 to vector<1x128xf32>
    %255 = arith.divf %253, %254 : vector<1x128xf32>
    %256 = vector.broadcast %248 : vector<1x128xf32> to vector<64x128xf32>
    %257 = arith.subf %244, %256 : vector<64x128xf32>
    %cst_74 = arith.constant 9.99999974E-6 : f32
    %258 = vector.broadcast %cst_74 : f32 to vector<1x128xf32>
    %259 = arith.addf %255, %258 : vector<1x128xf32>
    %260 = math.rsqrt %259 : vector<1x128xf32>
    %261 = vector.broadcast %260 : vector<1x128xf32> to vector<64x128xf32>
    %262 = arith.mulf %257, %261 : vector<64x128xf32>
    %263 = vector.broadcast %232 : vector<1x128xf32> to vector<64x128xf32>
    %264 = arith.mulf %262, %263 : vector<64x128xf32>
    %265 = vector.broadcast %233 : vector<1x128xf32> to vector<64x128xf32>
    %266 = arith.addf %264, %265 : vector<64x128xf32>
    %cst_75 = arith.constant 0.000000e+00 : f32
    %267 = vector.broadcast %cst_75 : f32 to vector<64x128xf32>
    %268 = arith.cmpf oge, %266, %267 : vector<64x128xf32>
    %269 = vector.broadcast %236 : f32 to vector<64x128xf32>
    %270 = arith.mulf %269, %266 : vector<64x128xf32>
    %271 = arith.select %268, %266, %270 : vector<64x128xi1>, vector<64x128xf32>
    %272 = arith.truncf %271 : vector<64x128xf32> to vector<64x128xbf16>
    %273 = arith.truncf %238 : vector<128x128xf32> to vector<128x128xbf16>
    %cst_76 = arith.constant dense<0.000000e+00> : vector<64x128xf32>
    %274 = tpu.matmul %272, %273, %cst_76 {dimension_numbers = #tpu.dot_dimension_numbers<[1], [0], [0], [1], [0, 0, 1, 1], [], []>} : vector<64x128xbf16>, vector<128x128xbf16>, vector<64x128xf32> -> vector<64x128xf32>
    %275 = vector.broadcast %239 : vector<1x128xf32> to vector<64x128xf32>
    %276 = arith.addf %274, %275 : vector<64x128xf32>
    %c3 = arith.constant 3 : index
    %c0_77 = arith.constant 0 : index
    %277 = vector.load %arg8[%c3, %c0_77] : memref<9x128xf32, #tpu.memory_space<vmem>>, vector<1x128xf32>
    %c4 = arith.constant 4 : index
    %c0_78 = arith.constant 0 : index
    %278 = vector.load %arg8[%c4, %c0_78] : memref<9x128xf32, #tpu.memory_space<vmem>>, vector<1x128xf32>
    %c5 = arith.constant 5 : index
    %c0_79 = arith.constant 0 : index
    %279 = vector.load %arg8[%c5, %c0_79] : memref<9x128xf32, #tpu.memory_space<vmem>>, vector<1x128xf32>
    %c1_80 = arith.constant 1 : index
    %c0_81 = arith.constant 0 : index
    %c0_82 = arith.constant 0 : index
    %280 = vector.load %arg6[%c1_80, %c0_81, %c0_82] : memref<3x128x128xf32, #tpu.memory_space<vmem>>, vector<1x128x128xf32>
    %281 = vector.shape_cast %280 : vector<1x128x128xf32> to vector<128x128xf32>
    %c1_83 = arith.constant 1 : index
    %282 = memref.load %arg10[%c1_83] : memref<3xf32, #tpu.memory_space<smem>>
    %c1_84 = arith.constant 1 : index
    %c0_85 = arith.constant 0 : index
    %c0_86 = arith.constant 0 : index
    %283 = vector.load %arg7[%c1_84, %c0_85, %c0_86] : memref<3x128x128xf32, #tpu.memory_space<vmem>>, vector<1x128x128xf32>
    %284 = vector.shape_cast %283 : vector<1x128x128xf32> to vector<128x128xf32>
    %c1_87 = arith.constant 1 : index
    %c0_88 = arith.constant 0 : index
    %285 = vector.load %arg9[%c1_87, %c0_88] : memref<3x128xf32, #tpu.memory_space<vmem>>, vector<1x128xf32>
    %286 = arith.truncf %139 : vector<32x128xf32> to vector<32x128xbf16>
    %287 = arith.truncf %281 : vector<128x128xf32> to vector<128x128xbf16>
    %cst_89 = arith.constant dense<0.000000e+00> : vector<32x128xf32>
    %288 = tpu.matmul %286, %287, %cst_89 {dimension_numbers = #tpu.dot_dimension_numbers<[1], [0], [0], [1], [0, 0, 1, 1], [], []>} : vector<32x128xbf16>, vector<128x128xbf16>, vector<32x128xf32> -> vector<32x128xf32>
    %289 = vector.broadcast %277 : vector<1x128xf32> to vector<32x128xf32>
    %290 = arith.addf %288, %289 : vector<32x128xf32>
    %cst_90 = arith.constant dense<0.000000e+00> : vector<128xf32>
    %291 = vector.multi_reduction <add>, %290, %cst_90 [0] : vector<32x128xf32> to vector<128xf32>
    %292 = vector.shape_cast %291 : vector<128xf32> to vector<1x128xf32>
    %cst_91 = arith.constant 3.200000e+01 : f32
    %293 = vector.broadcast %cst_91 : f32 to vector<1x128xf32>
    %294 = arith.divf %292, %293 : vector<1x128xf32>
    %295 = vector.broadcast %294 : vector<1x128xf32> to vector<32x128xf32>
    %296 = arith.subf %290, %295 : vector<32x128xf32>
    %297 = arith.mulf %296, %296 : vector<32x128xf32>
    %cst_92 = arith.constant dense<0.000000e+00> : vector<128xf32>
    %298 = vector.multi_reduction <add>, %297, %cst_92 [0] : vector<32x128xf32> to vector<128xf32>
    %299 = vector.shape_cast %298 : vector<128xf32> to vector<1x128xf32>
    %cst_93 = arith.constant 3.200000e+01 : f32
    %300 = vector.broadcast %cst_93 : f32 to vector<1x128xf32>
    %301 = arith.divf %299, %300 : vector<1x128xf32>
    %302 = vector.broadcast %294 : vector<1x128xf32> to vector<32x128xf32>
    %303 = arith.subf %290, %302 : vector<32x128xf32>
    %cst_94 = arith.constant 9.99999974E-6 : f32
    %304 = vector.broadcast %cst_94 : f32 to vector<1x128xf32>
    %305 = arith.addf %301, %304 : vector<1x128xf32>
    %306 = math.rsqrt %305 : vector<1x128xf32>
    %307 = vector.broadcast %306 : vector<1x128xf32> to vector<32x128xf32>
    %308 = arith.mulf %303, %307 : vector<32x128xf32>
    %309 = vector.broadcast %278 : vector<1x128xf32> to vector<32x128xf32>
    %310 = arith.mulf %308, %309 : vector<32x128xf32>
    %311 = vector.broadcast %279 : vector<1x128xf32> to vector<32x128xf32>
    %312 = arith.addf %310, %311 : vector<32x128xf32>
    %cst_95 = arith.constant 0.000000e+00 : f32
    %313 = vector.broadcast %cst_95 : f32 to vector<32x128xf32>
    %314 = arith.cmpf oge, %312, %313 : vector<32x128xf32>
    %315 = vector.broadcast %282 : f32 to vector<32x128xf32>
    %316 = arith.mulf %315, %312 : vector<32x128xf32>
    %317 = arith.select %314, %312, %316 : vector<32x128xi1>, vector<32x128xf32>
    %318 = arith.truncf %317 : vector<32x128xf32> to vector<32x128xbf16>
    %319 = arith.truncf %284 : vector<128x128xf32> to vector<128x128xbf16>
    %cst_96 = arith.constant dense<0.000000e+00> : vector<32x128xf32>
    %320 = tpu.matmul %318, %319, %cst_96 {dimension_numbers = #tpu.dot_dimension_numbers<[1], [0], [0], [1], [0, 0, 1, 1], [], []>} : vector<32x128xbf16>, vector<128x128xbf16>, vector<32x128xf32> -> vector<32x128xf32>
    %321 = vector.broadcast %285 : vector<1x128xf32> to vector<32x128xf32>
    %322 = arith.addf %320, %321 : vector<32x128xf32>
    %c6 = arith.constant 6 : index
    %c0_97 = arith.constant 0 : index
    %323 = vector.load %arg8[%c6, %c0_97] : memref<9x128xf32, #tpu.memory_space<vmem>>, vector<1x128xf32>
    %c7 = arith.constant 7 : index
    %c0_98 = arith.constant 0 : index
    %324 = vector.load %arg8[%c7, %c0_98] : memref<9x128xf32, #tpu.memory_space<vmem>>, vector<1x128xf32>
    %c8 = arith.constant 8 : index
    %c0_99 = arith.constant 0 : index
    %325 = vector.load %arg8[%c8, %c0_99] : memref<9x128xf32, #tpu.memory_space<vmem>>, vector<1x128xf32>
    %c2_100 = arith.constant 2 : index
    %c0_101 = arith.constant 0 : index
    %c0_102 = arith.constant 0 : index
    %326 = vector.load %arg6[%c2_100, %c0_101, %c0_102] : memref<3x128x128xf32, #tpu.memory_space<vmem>>, vector<1x128x128xf32>
    %327 = vector.shape_cast %326 : vector<1x128x128xf32> to vector<128x128xf32>
    %c2_103 = arith.constant 2 : index
    %328 = memref.load %arg10[%c2_103] : memref<3xf32, #tpu.memory_space<smem>>
    %c2_104 = arith.constant 2 : index
    %c0_105 = arith.constant 0 : index
    %c0_106 = arith.constant 0 : index
    %329 = vector.load %arg7[%c2_104, %c0_105, %c0_106] : memref<3x128x128xf32, #tpu.memory_space<vmem>>, vector<1x128x128xf32>
    %330 = vector.shape_cast %329 : vector<1x128x128xf32> to vector<128x128xf32>
    %c2_107 = arith.constant 2 : index
    %c0_108 = arith.constant 0 : index
    %331 = vector.load %arg9[%c2_107, %c0_108] : memref<3x128xf32, #tpu.memory_space<vmem>>, vector<1x128xf32>
    %332 = arith.truncf %230 : vector<16x128xf32> to vector<16x128xbf16>
    %333 = arith.truncf %327 : vector<128x128xf32> to vector<128x128xbf16>
    %cst_109 = arith.constant dense<0.000000e+00> : vector<16x128xf32>
    %334 = tpu.matmul %332, %333, %cst_109 {dimension_numbers = #tpu.dot_dimension_numbers<[1], [0], [0], [1], [0, 0, 1, 1], [], []>} : vector<16x128xbf16>, vector<128x128xbf16>, vector<16x128xf32> -> vector<16x128xf32>
    %335 = vector.broadcast %323 : vector<1x128xf32> to vector<16x128xf32>
    %336 = arith.addf %334, %335 : vector<16x128xf32>
    %cst_110 = arith.constant dense<0.000000e+00> : vector<128xf32>
    %337 = vector.multi_reduction <add>, %336, %cst_110 [0] : vector<16x128xf32> to vector<128xf32>
    %338 = vector.shape_cast %337 : vector<128xf32> to vector<1x128xf32>
    %cst_111 = arith.constant 1.600000e+01 : f32
    %339 = vector.broadcast %cst_111 : f32 to vector<1x128xf32>
    %340 = arith.divf %338, %339 : vector<1x128xf32>
    %341 = vector.broadcast %340 : vector<1x128xf32> to vector<16x128xf32>
    %342 = arith.subf %336, %341 : vector<16x128xf32>
    %343 = arith.mulf %342, %342 : vector<16x128xf32>
    %cst_112 = arith.constant dense<0.000000e+00> : vector<128xf32>
    %344 = vector.multi_reduction <add>, %343, %cst_112 [0] : vector<16x128xf32> to vector<128xf32>
    %345 = vector.shape_cast %344 : vector<128xf32> to vector<1x128xf32>
    %cst_113 = arith.constant 1.600000e+01 : f32
    %346 = vector.broadcast %cst_113 : f32 to vector<1x128xf32>
    %347 = arith.divf %345, %346 : vector<1x128xf32>
    %348 = vector.broadcast %340 : vector<1x128xf32> to vector<16x128xf32>
    %349 = arith.subf %336, %348 : vector<16x128xf32>
    %cst_114 = arith.constant 9.99999974E-6 : f32
    %350 = vector.broadcast %cst_114 : f32 to vector<1x128xf32>
    %351 = arith.addf %347, %350 : vector<1x128xf32>
    %352 = math.rsqrt %351 : vector<1x128xf32>
    %353 = vector.broadcast %352 : vector<1x128xf32> to vector<16x128xf32>
    %354 = arith.mulf %349, %353 : vector<16x128xf32>
    %355 = vector.broadcast %324 : vector<1x128xf32> to vector<16x128xf32>
    %356 = arith.mulf %354, %355 : vector<16x128xf32>
    %357 = vector.broadcast %325 : vector<1x128xf32> to vector<16x128xf32>
    %358 = arith.addf %356, %357 : vector<16x128xf32>
    %cst_115 = arith.constant 0.000000e+00 : f32
    %359 = vector.broadcast %cst_115 : f32 to vector<16x128xf32>
    %360 = arith.cmpf oge, %358, %359 : vector<16x128xf32>
    %361 = vector.broadcast %328 : f32 to vector<16x128xf32>
    %362 = arith.mulf %361, %358 : vector<16x128xf32>
    %363 = arith.select %360, %358, %362 : vector<16x128xi1>, vector<16x128xf32>
    %364 = arith.truncf %363 : vector<16x128xf32> to vector<16x128xbf16>
    %365 = arith.truncf %330 : vector<128x128xf32> to vector<128x128xbf16>
    %cst_116 = arith.constant dense<0.000000e+00> : vector<16x128xf32>
    %366 = tpu.matmul %364, %365, %cst_116 {dimension_numbers = #tpu.dot_dimension_numbers<[1], [0], [0], [1], [0, 0, 1, 1], [], []>} : vector<16x128xbf16>, vector<128x128xbf16>, vector<16x128xf32> -> vector<16x128xf32>
    %367 = vector.broadcast %331 : vector<1x128xf32> to vector<16x128xf32>
    %368 = arith.addf %366, %367 : vector<16x128xf32>
    %369 = arith.truncf %84 : vector<32x64xf32> to vector<32x64xbf16>
    %370 = arith.truncf %2 : vector<64x128xf32> to vector<64x128xbf16>
    %cst_117 = arith.constant dense<0.000000e+00> : vector<32x128xf32>
    %371 = tpu.matmul %369, %370, %cst_117 {dimension_numbers = #tpu.dot_dimension_numbers<[1], [0], [0], [1], [0, 0, 1, 1], [], []>} : vector<32x64xbf16>, vector<64x128xbf16>, vector<32x128xf32> -> vector<32x128xf32>
    %372 = arith.truncf %92 : vector<32x64xf32> to vector<32x64xbf16>
    %373 = arith.truncf %2 : vector<64x128xf32> to vector<64x128xbf16>
    %cst_118 = arith.constant dense<0.000000e+00> : vector<32x128xf32>
    %374 = tpu.matmul %372, %373, %cst_118 {dimension_numbers = #tpu.dot_dimension_numbers<[1], [0], [0], [1], [0, 0, 1, 1], [], []>} : vector<32x64xbf16>, vector<64x128xbf16>, vector<32x128xf32> -> vector<32x128xf32>
    %375 = arith.truncf %175 : vector<16x32xf32> to vector<16x32xbf16>
    %376 = arith.truncf %371 : vector<32x128xf32> to vector<32x128xbf16>
    %cst_119 = arith.constant dense<0.000000e+00> : vector<16x128xf32>
    %377 = tpu.matmul %375, %376, %cst_119 {dimension_numbers = #tpu.dot_dimension_numbers<[1], [0], [0], [1], [0, 0, 1, 1], [], []>} : vector<16x32xbf16>, vector<32x128xbf16>, vector<16x128xf32> -> vector<16x128xf32>
    %378 = arith.truncf %183 : vector<16x32xf32> to vector<16x32xbf16>
    %379 = arith.truncf %371 : vector<32x128xf32> to vector<32x128xbf16>
    %cst_120 = arith.constant dense<0.000000e+00> : vector<16x128xf32>
    %380 = tpu.matmul %378, %379, %cst_120 {dimension_numbers = #tpu.dot_dimension_numbers<[1], [0], [0], [1], [0, 0, 1, 1], [], []>} : vector<16x32xbf16>, vector<32x128xbf16>, vector<16x128xf32> -> vector<16x128xf32>
    %381 = arith.truncf %84 : vector<32x64xf32> to vector<32x64xbf16>
    %382 = arith.truncf %48 : vector<64x128xf32> to vector<64x128xbf16>
    %cst_121 = arith.constant dense<0.000000e+00> : vector<32x128xf32>
    %383 = tpu.matmul %381, %382, %cst_121 {dimension_numbers = #tpu.dot_dimension_numbers<[1], [0], [0], [1], [0, 0, 1, 1], [], []>} : vector<32x64xbf16>, vector<64x128xbf16>, vector<32x128xf32> -> vector<32x128xf32>
    %384 = arith.truncf %175 : vector<16x32xf32> to vector<16x32xbf16>
    %385 = arith.truncf %139 : vector<32x128xf32> to vector<32x128xbf16>
    %cst_122 = arith.constant dense<0.000000e+00> : vector<16x128xf32>
    %386 = tpu.matmul %384, %385, %cst_122 {dimension_numbers = #tpu.dot_dimension_numbers<[1], [0], [0], [1], [0, 0, 1, 1], [], []>} : vector<16x32xbf16>, vector<32x128xbf16>, vector<16x128xf32> -> vector<16x128xf32>
    %387 = arith.mulf %276, %276 : vector<64x128xf32>
    %cst_123 = arith.constant dense<0.000000e+00> : vector<64xf32>
    %388 = vector.multi_reduction <add>, %387, %cst_123 [1] : vector<64x128xf32> to vector<64xf32>
    %389 = vector.shape_cast %388 : vector<64xf32> to vector<64x1xf32>
    %390 = math.sqrt %389 : vector<64x1xf32>
    %cst_124 = arith.constant 9.99999996E-13 : f32
    %391 = vector.broadcast %cst_124 : f32 to vector<64x1xf32>
    %392 = arith.maximumf %390, %391 : vector<64x1xf32>
    %393 = vector.broadcast %392 : vector<64x1xf32> to vector<64x128xf32>
    %394 = arith.divf %276, %393 : vector<64x128xf32>
    %395 = arith.mulf %2, %2 : vector<64x128xf32>
    %cst_125 = arith.constant dense<0.000000e+00> : vector<64xf32>
    %396 = vector.multi_reduction <add>, %395, %cst_125 [1] : vector<64x128xf32> to vector<64xf32>
    %397 = vector.shape_cast %396 : vector<64xf32> to vector<64x1xf32>
    %398 = math.sqrt %397 : vector<64x1xf32>
    %cst_126 = arith.constant 9.99999996E-13 : f32
    %399 = vector.broadcast %cst_126 : f32 to vector<64x1xf32>
    %400 = arith.maximumf %398, %399 : vector<64x1xf32>
    %401 = vector.broadcast %400 : vector<64x1xf32> to vector<64x128xf32>
    %402 = arith.divf %2, %401 : vector<64x128xf32>
    %403 = arith.mulf %394, %402 : vector<64x128xf32>
    %cst_127 = arith.constant dense<0.000000e+00> : vector<64xf32>
    %404 = vector.multi_reduction <add>, %403, %cst_127 [1] : vector<64x128xf32> to vector<64xf32>
    %405 = vector.shape_cast %404 : vector<64xf32> to vector<64x1xf32>
    %cst_128 = arith.constant 5.000000e-01 : f32
    %406 = vector.broadcast %cst_128 : f32 to vector<64x1xf32>
    %407 = arith.divf %405, %406 : vector<64x1xf32>
    %408 = math.exp %407 : vector<64x1xf32>
    %cst_129 = arith.constant 6.400000e+01 : f32
    %409 = vector.broadcast %cst_129 : f32 to vector<64x1xf32>
    %410 = arith.divf %408, %409 : vector<64x1xf32>
    %cst_130 = arith.constant 9.99999993E-9 : f32
    %411 = vector.broadcast %cst_130 : f32 to vector<64x1xf32>
    %412 = arith.addf %410, %411 : vector<64x1xf32>
    %413 = math.log %412 : vector<64x1xf32>
    %cst_131 = arith.constant 0.000000e+00 : f32
    %414 = vector.broadcast %cst_131 : f32 to vector<64x1xf32>
    %415 = arith.subf %414, %413 : vector<64x1xf32>
    %416 = vector.shape_cast %415 : vector<64x1xf32> to vector<1x64x1xf32>
    %cst_132 = arith.constant dense<0.000000e+00> : vector<1xf32>
    %417 = vector.multi_reduction <add>, %416, %cst_132 [1, 2] : vector<1x64x1xf32> to vector<1xf32>
    %418 = vector.shape_cast %417 : vector<1xf32> to vector<1x1x1xf32>
    %419 = vector.extract %418[0, 0, 0] : f32 from vector<1x1x1xf32>
    %420 = vector.broadcast %419 : f32 to vector<1x1xf32>
    %cst_133 = arith.constant 6.400000e+01 : f32
    %421 = vector.broadcast %cst_133 : f32 to vector<1x1xf32>
    %422 = arith.divf %420, %421 : vector<1x1xf32>
    %423 = arith.mulf %322, %322 : vector<32x128xf32>
    %cst_134 = arith.constant dense<0.000000e+00> : vector<32xf32>
    %424 = vector.multi_reduction <add>, %423, %cst_134 [1] : vector<32x128xf32> to vector<32xf32>
    %425 = vector.shape_cast %424 : vector<32xf32> to vector<32x1xf32>
    %426 = math.sqrt %425 : vector<32x1xf32>
    %cst_135 = arith.constant 9.99999996E-13 : f32
    %427 = vector.broadcast %cst_135 : f32 to vector<32x1xf32>
    %428 = arith.maximumf %426, %427 : vector<32x1xf32>
    %429 = vector.broadcast %428 : vector<32x1xf32> to vector<32x128xf32>
    %430 = arith.divf %322, %429 : vector<32x128xf32>
    %431 = arith.mulf %371, %371 : vector<32x128xf32>
    %cst_136 = arith.constant dense<0.000000e+00> : vector<32xf32>
    %432 = vector.multi_reduction <add>, %431, %cst_136 [1] : vector<32x128xf32> to vector<32xf32>
    %433 = vector.shape_cast %432 : vector<32xf32> to vector<32x1xf32>
    %434 = math.sqrt %433 : vector<32x1xf32>
    %cst_137 = arith.constant 9.99999996E-13 : f32
    %435 = vector.broadcast %cst_137 : f32 to vector<32x1xf32>
    %436 = arith.maximumf %434, %435 : vector<32x1xf32>
    %437 = vector.broadcast %436 : vector<32x1xf32> to vector<32x128xf32>
    %438 = arith.divf %371, %437 : vector<32x128xf32>
    %439 = arith.mulf %430, %438 : vector<32x128xf32>
    %cst_138 = arith.constant dense<0.000000e+00> : vector<32xf32>
    %440 = vector.multi_reduction <add>, %439, %cst_138 [1] : vector<32x128xf32> to vector<32xf32>
    %441 = vector.shape_cast %440 : vector<32xf32> to vector<32x1xf32>
    %cst_139 = arith.constant 5.000000e-01 : f32
    %442 = vector.broadcast %cst_139 : f32 to vector<32x1xf32>
    %443 = arith.divf %441, %442 : vector<32x1xf32>
    %444 = math.exp %443 : vector<32x1xf32>
    %cst_140 = arith.constant 0.000000e+00 : f32
    %445 = vector.broadcast %cst_140 : f32 to vector<32x1xf32>
    %446 = arith.mulf %374, %374 : vector<32x128xf32>
    %cst_141 = arith.constant dense<0.000000e+00> : vector<32xf32>
    %447 = vector.multi_reduction <add>, %446, %cst_141 [1] : vector<32x128xf32> to vector<32xf32>
    %448 = vector.shape_cast %447 : vector<32xf32> to vector<32x1xf32>
    %449 = math.sqrt %448 : vector<32x1xf32>
    %cst_142 = arith.constant 9.99999996E-13 : f32
    %450 = vector.broadcast %cst_142 : f32 to vector<32x1xf32>
    %451 = arith.maximumf %449, %450 : vector<32x1xf32>
    %452 = vector.broadcast %451 : vector<32x1xf32> to vector<32x128xf32>
    %453 = arith.divf %374, %452 : vector<32x128xf32>
    %454 = arith.truncf %430 : vector<32x128xf32> to vector<32x128xbf16>
    %455 = arith.truncf %453 : vector<32x128xf32> to vector<32x128xbf16>
    %cst_143 = arith.constant dense<0.000000e+00> : vector<32x32xf32>
    %456 = tpu.matmul %454, %455, %cst_143 {dimension_numbers = #tpu.dot_dimension_numbers<[1], [1], [0], [0], [0, 0, 1, 0], [], []>} : vector<32x128xbf16>, vector<32x128xbf16>, vector<32x32xf32> -> vector<32x32xf32>
    %cst_144 = arith.constant 5.000000e-01 : f32
    %457 = vector.broadcast %cst_144 : f32 to vector<32x32xf32>
    %458 = arith.divf %456, %457 : vector<32x32xf32>
    %459 = math.exp %458 : vector<32x32xf32>
    %cst_145 = arith.constant dense<0.000000e+00> : vector<32xf32>
    %460 = vector.multi_reduction <add>, %459, %cst_145 [1] : vector<32x32xf32> to vector<32xf32>
    %461 = vector.shape_cast %460 : vector<32xf32> to vector<32x1xf32>
    %462 = arith.addf %445, %461 : vector<32x1xf32>
    %463 = arith.addf %462, %444 : vector<32x1xf32>
    %cst_146 = arith.constant 9.99999993E-9 : f32
    %464 = vector.broadcast %cst_146 : f32 to vector<32x1xf32>
    %465 = arith.addf %463, %464 : vector<32x1xf32>
    %466 = arith.divf %444, %465 : vector<32x1xf32>
    %467 = math.log %466 : vector<32x1xf32>
    %cst_147 = arith.constant 0.000000e+00 : f32
    %468 = vector.broadcast %cst_147 : f32 to vector<32x1xf32>
    %469 = arith.subf %468, %467 : vector<32x1xf32>
    %470 = vector.shape_cast %469 : vector<32x1xf32> to vector<1x32x1xf32>
    %cst_148 = arith.constant dense<0.000000e+00> : vector<1xf32>
    %471 = vector.multi_reduction <add>, %470, %cst_148 [1, 2] : vector<1x32x1xf32> to vector<1xf32>
    %472 = vector.shape_cast %471 : vector<1xf32> to vector<1x1x1xf32>
    %473 = vector.extract %472[0, 0, 0] : f32 from vector<1x1x1xf32>
    %474 = vector.broadcast %473 : f32 to vector<1x1xf32>
    %cst_149 = arith.constant 3.200000e+01 : f32
    %475 = vector.broadcast %cst_149 : f32 to vector<1x1xf32>
    %476 = arith.divf %474, %475 : vector<1x1xf32>
    %477 = arith.mulf %368, %368 : vector<16x128xf32>
    %cst_150 = arith.constant dense<0.000000e+00> : vector<16xf32>
    %478 = vector.multi_reduction <add>, %477, %cst_150 [1] : vector<16x128xf32> to vector<16xf32>
    %479 = vector.shape_cast %478 : vector<16xf32> to vector<16x1xf32>
    %480 = math.sqrt %479 : vector<16x1xf32>
    %cst_151 = arith.constant 9.99999996E-13 : f32
    %481 = vector.broadcast %cst_151 : f32 to vector<16x1xf32>
    %482 = arith.maximumf %480, %481 : vector<16x1xf32>
    %483 = vector.broadcast %482 : vector<16x1xf32> to vector<16x128xf32>
    %484 = arith.divf %368, %483 : vector<16x128xf32>
    %485 = arith.mulf %377, %377 : vector<16x128xf32>
    %cst_152 = arith.constant dense<0.000000e+00> : vector<16xf32>
    %486 = vector.multi_reduction <add>, %485, %cst_152 [1] : vector<16x128xf32> to vector<16xf32>
    %487 = vector.shape_cast %486 : vector<16xf32> to vector<16x1xf32>
    %488 = math.sqrt %487 : vector<16x1xf32>
    %cst_153 = arith.constant 9.99999996E-13 : f32
    %489 = vector.broadcast %cst_153 : f32 to vector<16x1xf32>
    %490 = arith.maximumf %488, %489 : vector<16x1xf32>
    %491 = vector.broadcast %490 : vector<16x1xf32> to vector<16x128xf32>
    %492 = arith.divf %377, %491 : vector<16x128xf32>
    %493 = arith.mulf %484, %492 : vector<16x128xf32>
    %cst_154 = arith.constant dense<0.000000e+00> : vector<16xf32>
    %494 = vector.multi_reduction <add>, %493, %cst_154 [1] : vector<16x128xf32> to vector<16xf32>
    %495 = vector.shape_cast %494 : vector<16xf32> to vector<16x1xf32>
    %cst_155 = arith.constant 5.000000e-01 : f32
    %496 = vector.broadcast %cst_155 : f32 to vector<16x1xf32>
    %497 = arith.divf %495, %496 : vector<16x1xf32>
    %498 = math.exp %497 : vector<16x1xf32>
    %cst_156 = arith.constant 0.000000e+00 : f32
    %499 = vector.broadcast %cst_156 : f32 to vector<16x1xf32>
    %500 = arith.mulf %374, %374 : vector<32x128xf32>
    %cst_157 = arith.constant dense<0.000000e+00> : vector<32xf32>
    %501 = vector.multi_reduction <add>, %500, %cst_157 [1] : vector<32x128xf32> to vector<32xf32>
    %502 = vector.shape_cast %501 : vector<32xf32> to vector<32x1xf32>
    %503 = math.sqrt %502 : vector<32x1xf32>
    %cst_158 = arith.constant 9.99999996E-13 : f32
    %504 = vector.broadcast %cst_158 : f32 to vector<32x1xf32>
    %505 = arith.maximumf %503, %504 : vector<32x1xf32>
    %506 = vector.broadcast %505 : vector<32x1xf32> to vector<32x128xf32>
    %507 = arith.divf %374, %506 : vector<32x128xf32>
    %508 = arith.truncf %484 : vector<16x128xf32> to vector<16x128xbf16>
    %509 = arith.truncf %507 : vector<32x128xf32> to vector<32x128xbf16>
    %cst_159 = arith.constant dense<0.000000e+00> : vector<16x32xf32>
    %510 = tpu.matmul %508, %509, %cst_159 {dimension_numbers = #tpu.dot_dimension_numbers<[1], [1], [0], [0], [0, 0, 1, 0], [], []>} : vector<16x128xbf16>, vector<32x128xbf16>, vector<16x32xf32> -> vector<16x32xf32>
    %cst_160 = arith.constant 5.000000e-01 : f32
    %511 = vector.broadcast %cst_160 : f32 to vector<16x32xf32>
    %512 = arith.divf %510, %511 : vector<16x32xf32>
    %513 = math.exp %512 : vector<16x32xf32>
    %cst_161 = arith.constant dense<0.000000e+00> : vector<16xf32>
    %514 = vector.multi_reduction <add>, %513, %cst_161 [1] : vector<16x32xf32> to vector<16xf32>
    %515 = vector.shape_cast %514 : vector<16xf32> to vector<16x1xf32>
    %516 = arith.addf %499, %515 : vector<16x1xf32>
    %517 = arith.mulf %380, %380 : vector<16x128xf32>
    %cst_162 = arith.constant dense<0.000000e+00> : vector<16xf32>
    %518 = vector.multi_reduction <add>, %517, %cst_162 [1] : vector<16x128xf32> to vector<16xf32>
    %519 = vector.shape_cast %518 : vector<16xf32> to vector<16x1xf32>
    %520 = math.sqrt %519 : vector<16x1xf32>
    %cst_163 = arith.constant 9.99999996E-13 : f32
    %521 = vector.broadcast %cst_163 : f32 to vector<16x1xf32>
    %522 = arith.maximumf %520, %521 : vector<16x1xf32>
    %523 = vector.broadcast %522 : vector<16x1xf32> to vector<16x128xf32>
    %524 = arith.divf %380, %523 : vector<16x128xf32>
    %525 = arith.truncf %484 : vector<16x128xf32> to vector<16x128xbf16>
    %526 = arith.truncf %524 : vector<16x128xf32> to vector<16x128xbf16>
    %cst_164 = arith.constant dense<0.000000e+00> : vector<16x16xf32>
    %527 = tpu.matmul %525, %526, %cst_164 {dimension_numbers = #tpu.dot_dimension_numbers<[1], [1], [0], [0], [0, 0, 1, 0], [], []>} : vector<16x128xbf16>, vector<16x128xbf16>, vector<16x16xf32> -> vector<16x16xf32>
    %cst_165 = arith.constant 5.000000e-01 : f32
    %528 = vector.broadcast %cst_165 : f32 to vector<16x16xf32>
    %529 = arith.divf %527, %528 : vector<16x16xf32>
    %530 = math.exp %529 : vector<16x16xf32>
    %cst_166 = arith.constant dense<0.000000e+00> : vector<16xf32>
    %531 = vector.multi_reduction <add>, %530, %cst_166 [1] : vector<16x16xf32> to vector<16xf32>
    %532 = vector.shape_cast %531 : vector<16xf32> to vector<16x1xf32>
    %533 = arith.addf %516, %532 : vector<16x1xf32>
    %534 = arith.addf %533, %498 : vector<16x1xf32>
    %cst_167 = arith.constant 9.99999993E-9 : f32
    %535 = vector.broadcast %cst_167 : f32 to vector<16x1xf32>
    %536 = arith.addf %534, %535 : vector<16x1xf32>
    %537 = arith.divf %498, %536 : vector<16x1xf32>
    %538 = math.log %537 : vector<16x1xf32>
    %cst_168 = arith.constant 0.000000e+00 : f32
    %539 = vector.broadcast %cst_168 : f32 to vector<16x1xf32>
    %540 = arith.subf %539, %538 : vector<16x1xf32>
    %541 = vector.shape_cast %540 : vector<16x1xf32> to vector<1x16x1xf32>
    %cst_169 = arith.constant dense<0.000000e+00> : vector<1xf32>
    %542 = vector.multi_reduction <add>, %541, %cst_169 [1, 2] : vector<1x16x1xf32> to vector<1xf32>
    %543 = vector.shape_cast %542 : vector<1xf32> to vector<1x1x1xf32>
    %544 = vector.extract %543[0, 0, 0] : f32 from vector<1x1x1xf32>
    %545 = vector.broadcast %544 : f32 to vector<1x1xf32>
    %cst_170 = arith.constant 1.600000e+01 : f32
    %546 = vector.broadcast %cst_170 : f32 to vector<1x1xf32>
    %547 = arith.divf %545, %546 : vector<1x1xf32>
    %cst_171 = arith.constant dense<0.000000e+00> : vector<128xf32>
    %548 = vector.multi_reduction <add>, %48, %cst_171 [0] : vector<64x128xf32> to vector<128xf32>
    %549 = vector.shape_cast %548 : vector<128xf32> to vector<1x128xf32>
    %cst_172 = arith.constant 6.400000e+01 : f32
    %550 = vector.broadcast %cst_172 : f32 to vector<1x128xf32>
    %551 = arith.divf %549, %550 : vector<1x128xf32>
    %552 = vector.broadcast %551 : vector<1x128xf32> to vector<64x128xf32>
    %553 = arith.subf %48, %552 : vector<64x128xf32>
    %cst_173 = arith.constant dense<0.000000e+00> : vector<128xf32>
    %554 = vector.multi_reduction <add>, %139, %cst_173 [0] : vector<32x128xf32> to vector<128xf32>
    %555 = vector.shape_cast %554 : vector<128xf32> to vector<1x128xf32>
    %cst_174 = arith.constant 3.200000e+01 : f32
    %556 = vector.broadcast %cst_174 : f32 to vector<1x128xf32>
    %557 = arith.divf %555, %556 : vector<1x128xf32>
    %558 = vector.broadcast %557 : vector<1x128xf32> to vector<32x128xf32>
    %559 = arith.subf %139, %558 : vector<32x128xf32>
    %cst_175 = arith.constant dense<0.000000e+00> : vector<128xf32>
    %560 = vector.multi_reduction <add>, %383, %cst_175 [0] : vector<32x128xf32> to vector<128xf32>
    %561 = vector.shape_cast %560 : vector<128xf32> to vector<1x128xf32>
    %cst_176 = arith.constant 3.200000e+01 : f32
    %562 = vector.broadcast %cst_176 : f32 to vector<1x128xf32>
    %563 = arith.divf %561, %562 : vector<1x128xf32>
    %564 = vector.broadcast %563 : vector<1x128xf32> to vector<32x128xf32>
    %565 = arith.subf %383, %564 : vector<32x128xf32>
    %566 = arith.mulf %553, %553 : vector<64x128xf32>
    %cst_177 = arith.constant dense<0.000000e+00> : vector<128xf32>
    %567 = vector.multi_reduction <add>, %566, %cst_177 [0] : vector<64x128xf32> to vector<128xf32>
    %568 = vector.shape_cast %567 : vector<128xf32> to vector<1x128xf32>
    %cst_178 = arith.constant 6.300000e+01 : f32
    %569 = vector.broadcast %cst_178 : f32 to vector<1x128xf32>
    %570 = arith.divf %568, %569 : vector<1x128xf32>
    %571 = arith.mulf %559, %559 : vector<32x128xf32>
    %cst_179 = arith.constant dense<0.000000e+00> : vector<128xf32>
    %572 = vector.multi_reduction <add>, %571, %cst_179 [0] : vector<32x128xf32> to vector<128xf32>
    %573 = vector.shape_cast %572 : vector<128xf32> to vector<1x128xf32>
    %cst_180 = arith.constant 3.100000e+01 : f32
    %574 = vector.broadcast %cst_180 : f32 to vector<1x128xf32>
    %575 = arith.divf %573, %574 : vector<1x128xf32>
    %576 = arith.subf %575, %570 : vector<1x128xf32>
    %577 = arith.mulf %576, %576 : vector<1x128xf32>
    %578 = vector.shape_cast %577 : vector<1x128xf32> to vector<1x1x128xf32>
    %cst_181 = arith.constant dense<0.000000e+00> : vector<1xf32>
    %579 = vector.multi_reduction <add>, %578, %cst_181 [1, 2] : vector<1x1x128xf32> to vector<1xf32>
    %580 = vector.shape_cast %579 : vector<1xf32> to vector<1x1x1xf32>
    %581 = vector.extract %580[0, 0, 0] : f32 from vector<1x1x1xf32>
    %582 = vector.broadcast %581 : f32 to vector<1x1xf32>
    %cst_182 = arith.constant 1.280000e+02 : f32
    %583 = vector.broadcast %cst_182 : f32 to vector<1x1xf32>
    %584 = arith.divf %582, %583 : vector<1x1xf32>
    %585 = arith.truncf %565 : vector<32x128xf32> to vector<32x128xbf16>
    %586 = arith.truncf %559 : vector<32x128xf32> to vector<32x128xbf16>
    %cst_183 = arith.constant dense<0.000000e+00> : vector<128x128xf32>
    %587 = tpu.matmul %585, %586, %cst_183 {dimension_numbers = #tpu.dot_dimension_numbers<[0], [0], [1], [1], [0, 1, 1, 1], [], []>} : vector<32x128xbf16>, vector<32x128xbf16>, vector<128x128xf32> -> vector<128x128xf32>
    %cst_184 = arith.constant 6.300000e+01 : f32
    %588 = vector.broadcast %cst_184 : f32 to vector<128x128xf32>
    %589 = arith.divf %587, %588 : vector<128x128xf32>
    %590 = arith.mulf %589, %589 : vector<128x128xf32>
    %591 = vector.shape_cast %590 : vector<128x128xf32> to vector<1x128x128xf32>
    %cst_185 = arith.constant dense<0.000000e+00> : vector<1xf32>
    %592 = vector.multi_reduction <add>, %591, %cst_185 [1, 2] : vector<1x128x128xf32> to vector<1xf32>
    %593 = vector.shape_cast %592 : vector<1xf32> to vector<1x1x1xf32>
    %594 = vector.extract %593[0, 0, 0] : f32 from vector<1x1x1xf32>
    %595 = vector.broadcast %594 : f32 to vector<1x1xf32>
    %cst_186 = arith.constant 1.638400e+04 : f32
    %596 = vector.broadcast %cst_186 : f32 to vector<1x1xf32>
    %597 = arith.divf %595, %596 : vector<1x1xf32>
    %cst_187 = arith.constant 1.000000e+00 : f32
    %598 = vector.broadcast %cst_187 : f32 to vector<1x1xf32>
    %599 = arith.mulf %598, %584 : vector<1x1xf32>
    %cst_188 = arith.constant 1.000000e+00 : f32
    %600 = vector.broadcast %cst_188 : f32 to vector<1x1xf32>
    %601 = arith.mulf %600, %597 : vector<1x1xf32>
    %602 = arith.addf %599, %601 : vector<1x1xf32>
    %cst_189 = arith.constant dense<0.000000e+00> : vector<128xf32>
    %603 = vector.multi_reduction <add>, %139, %cst_189 [0] : vector<32x128xf32> to vector<128xf32>
    %604 = vector.shape_cast %603 : vector<128xf32> to vector<1x128xf32>
    %cst_190 = arith.constant 3.200000e+01 : f32
    %605 = vector.broadcast %cst_190 : f32 to vector<1x128xf32>
    %606 = arith.divf %604, %605 : vector<1x128xf32>
    %607 = vector.broadcast %606 : vector<1x128xf32> to vector<32x128xf32>
    %608 = arith.subf %139, %607 : vector<32x128xf32>
    %cst_191 = arith.constant dense<0.000000e+00> : vector<128xf32>
    %609 = vector.multi_reduction <add>, %230, %cst_191 [0] : vector<16x128xf32> to vector<128xf32>
    %610 = vector.shape_cast %609 : vector<128xf32> to vector<1x128xf32>
    %cst_192 = arith.constant 1.600000e+01 : f32
    %611 = vector.broadcast %cst_192 : f32 to vector<1x128xf32>
    %612 = arith.divf %610, %611 : vector<1x128xf32>
    %613 = vector.broadcast %612 : vector<1x128xf32> to vector<16x128xf32>
    %614 = arith.subf %230, %613 : vector<16x128xf32>
    %cst_193 = arith.constant dense<0.000000e+00> : vector<128xf32>
    %615 = vector.multi_reduction <add>, %386, %cst_193 [0] : vector<16x128xf32> to vector<128xf32>
    %616 = vector.shape_cast %615 : vector<128xf32> to vector<1x128xf32>
    %cst_194 = arith.constant 1.600000e+01 : f32
    %617 = vector.broadcast %cst_194 : f32 to vector<1x128xf32>
    %618 = arith.divf %616, %617 : vector<1x128xf32>
    %619 = vector.broadcast %618 : vector<1x128xf32> to vector<16x128xf32>
    %620 = arith.subf %386, %619 : vector<16x128xf32>
    %621 = arith.mulf %608, %608 : vector<32x128xf32>
    %cst_195 = arith.constant dense<0.000000e+00> : vector<128xf32>
    %622 = vector.multi_reduction <add>, %621, %cst_195 [0] : vector<32x128xf32> to vector<128xf32>
    %623 = vector.shape_cast %622 : vector<128xf32> to vector<1x128xf32>
    %cst_196 = arith.constant 3.100000e+01 : f32
    %624 = vector.broadcast %cst_196 : f32 to vector<1x128xf32>
    %625 = arith.divf %623, %624 : vector<1x128xf32>
    %626 = arith.mulf %614, %614 : vector<16x128xf32>
    %cst_197 = arith.constant dense<0.000000e+00> : vector<128xf32>
    %627 = vector.multi_reduction <add>, %626, %cst_197 [0] : vector<16x128xf32> to vector<128xf32>
    %628 = vector.shape_cast %627 : vector<128xf32> to vector<1x128xf32>
    %cst_198 = arith.constant 1.500000e+01 : f32
    %629 = vector.broadcast %cst_198 : f32 to vector<1x128xf32>
    %630 = arith.divf %628, %629 : vector<1x128xf32>
    %631 = arith.subf %630, %625 : vector<1x128xf32>
    %632 = arith.mulf %631, %631 : vector<1x128xf32>
    %633 = vector.shape_cast %632 : vector<1x128xf32> to vector<1x1x128xf32>
    %cst_199 = arith.constant dense<0.000000e+00> : vector<1xf32>
    %634 = vector.multi_reduction <add>, %633, %cst_199 [1, 2] : vector<1x1x128xf32> to vector<1xf32>
    %635 = vector.shape_cast %634 : vector<1xf32> to vector<1x1x1xf32>
    %636 = vector.extract %635[0, 0, 0] : f32 from vector<1x1x1xf32>
    %637 = vector.broadcast %636 : f32 to vector<1x1xf32>
    %cst_200 = arith.constant 1.280000e+02 : f32
    %638 = vector.broadcast %cst_200 : f32 to vector<1x1xf32>
    %639 = arith.divf %637, %638 : vector<1x1xf32>
    %640 = arith.truncf %620 : vector<16x128xf32> to vector<16x128xbf16>
    %641 = arith.truncf %614 : vector<16x128xf32> to vector<16x128xbf16>
    %cst_201 = arith.constant dense<0.000000e+00> : vector<128x128xf32>
    %642 = tpu.matmul %640, %641, %cst_201 {dimension_numbers = #tpu.dot_dimension_numbers<[0], [0], [1], [1], [0, 1, 1, 1], [], []>} : vector<16x128xbf16>, vector<16x128xbf16>, vector<128x128xf32> -> vector<128x128xf32>
    %cst_202 = arith.constant 3.100000e+01 : f32
    %643 = vector.broadcast %cst_202 : f32 to vector<128x128xf32>
    %644 = arith.divf %642, %643 : vector<128x128xf32>
    %645 = arith.mulf %644, %644 : vector<128x128xf32>
    %646 = vector.shape_cast %645 : vector<128x128xf32> to vector<1x128x128xf32>
    %cst_203 = arith.constant dense<0.000000e+00> : vector<1xf32>
    %647 = vector.multi_reduction <add>, %646, %cst_203 [1, 2] : vector<1x128x128xf32> to vector<1xf32>
    %648 = vector.shape_cast %647 : vector<1xf32> to vector<1x1x1xf32>
    %649 = vector.extract %648[0, 0, 0] : f32 from vector<1x1x1xf32>
    %650 = vector.broadcast %649 : f32 to vector<1x1xf32>
    %cst_204 = arith.constant 1.638400e+04 : f32
    %651 = vector.broadcast %cst_204 : f32 to vector<1x1xf32>
    %652 = arith.divf %650, %651 : vector<1x1xf32>
    %cst_205 = arith.constant 1.000000e+00 : f32
    %653 = vector.broadcast %cst_205 : f32 to vector<1x1xf32>
    %654 = arith.mulf %653, %639 : vector<1x1xf32>
    %cst_206 = arith.constant 1.000000e+00 : f32
    %655 = vector.broadcast %cst_206 : f32 to vector<1x1xf32>
    %656 = arith.mulf %655, %652 : vector<1x1xf32>
    %657 = arith.addf %654, %656 : vector<1x1xf32>
    %c0_207 = arith.constant 0 : index
    %c0_208 = arith.constant 0 : index
    %658 = vector.load %arg11[%c0_207, %c0_208] : memref<64x128xf32, #tpu.memory_space<vmem>>, vector<64x128xf32>
    tpu.vector_store %arg11[%c0_207, %c0_208], %48 {strides = array<i32>} : memref<64x128xf32, #tpu.memory_space<vmem>>, vector<64x128xf32>,
    %c0_209 = arith.constant 0 : index
    %c0_210 = arith.constant 0 : index
    %659 = vector.load %arg13[%c0_209, %c0_210] : memref<32x1xf32, #tpu.memory_space<vmem>>, vector<32x1xf32>
    tpu.vector_store %arg13[%c0_209, %c0_210], %96 {strides = array<i32>} : memref<32x1xf32, #tpu.memory_space<vmem>>, vector<32x1xf32>,
    %c0_211 = arith.constant 0 : index
    %c0_212 = arith.constant 0 : index
    %660 = vector.load %arg14[%c0_211, %c0_212] : memref<16x1xf32, #tpu.memory_space<vmem>>, vector<16x1xf32>
    tpu.vector_store %arg14[%c0_211, %c0_212], %187 {strides = array<i32>} : memref<16x1xf32, #tpu.memory_space<vmem>>, vector<16x1xf32>,
    %cst_213 = arith.constant 1.000000e+00 : f32
    %661 = vector.broadcast %cst_213 : f32 to vector<1x1xf32>
    %662 = arith.mulf %661, %422 : vector<1x1xf32>
    %663 = arith.addf %476, %547 : vector<1x1xf32>
    %cst_214 = arith.constant 1.000000e+00 : f32
    %664 = vector.broadcast %cst_214 : f32 to vector<1x1xf32>
    %665 = arith.mulf %664, %663 : vector<1x1xf32>
    %cst_215 = arith.constant 5.000000e-01 : f32
    %666 = vector.broadcast %cst_215 : f32 to vector<1x1xf32>
    %667 = arith.mulf %665, %666 : vector<1x1xf32>
    %668 = arith.addf %662, %667 : vector<1x1xf32>
    %669 = arith.addf %602, %657 : vector<1x1xf32>
    %cst_216 = arith.constant 1.000000e+00 : f32
    %670 = vector.broadcast %cst_216 : f32 to vector<1x1xf32>
    %671 = arith.mulf %670, %669 : vector<1x1xf32>
    %cst_217 = arith.constant 5.000000e-01 : f32
    %672 = vector.broadcast %cst_217 : f32 to vector<1x1xf32>
    %673 = arith.mulf %671, %672 : vector<1x1xf32>
    %674 = arith.addf %668, %673 : vector<1x1xf32>
    %c0_218 = arith.constant 0 : index
    %c0_219 = arith.constant 0 : index
    %675 = vector.load %arg12[%c0_218, %c0_219] : memref<1x1xf32, #tpu.memory_space<vmem>>, vector<1x1xf32>
    tpu.vector_store %arg12[%c0_218, %c0_219], %674 {strides = array<i32>} : memref<1x1xf32, #tpu.memory_space<vmem>>, vector<1x1xf32>,
    return
  }
}

</mosaic_0001>

<bundles_post_ra>
// kernel: hpool_gcl_forward.1
= control target key start
LH: loop header
LB: loop body
LE: loop exit
PB: predicated region body
PF: predicated region fallthrough
CT: control target
= control target key end

     0   :  { %20 = vsyncpa [#allocation3], 0  ;;  %s7389_s0 = inlined_call_operand.vmem [shape: f32[64,64], index: 0, kind: input, shape index: {}]   ;;  %s7390_s1 = inlined_call_operand.vmem [shape: f32[64,32], index: 1, kind: input, shape index: {}]   ;;  %s7391_s2 = inlined_call_operand.vmem [shape: f32[64,128], index: 2, kind: input, shape index: {}]   ;;  %s7392_s3 = inlined_call_operand.hbm [shape: f32[32,128], index: 3, kind: input, shape index: {}]   ;;  %s7393_s4 = inlined_call_operand.hbm [shape: f32[128,128], index: 4, kind: input, shape index: {}]   ;;  %s7394_s5 = inlined_call_operand.vmem [shape: f32[2,128], index: 5, kind: input, shape index: {}]   ;;  %s7395_s6 = inlined_call_operand.hbm [shape: f32[3,128,128], index: 6, kind: input, shape index: {}]   ;;  %s7396_s7 = inlined_call_operand.hbm [shape: f32[3,128,128], index: 7, kind: input, shape index: {}]   ;;  %s7397_s8 = inlined_call_operand.hbm [shape: f32[9,128], index: 8, kind: input, shape index: {}]   ;;  %s7398_s9 = inlined_call_operand.hbm [shape: f32[3,128], index: 9, kind: input, shape index: {}]   ;;  %s7399_s10 = inlined_call_operand.hbm [shape: f32[3], index: 10, kind: input, shape index: {}]   ;;  %s7400_s11 = inlined_call_operand.hbm [shape: f32[64,128], index: 11, kind: output, shape index: {0}]   ;;  %s7401_s12 = inlined_call_operand.hbm [shape: f32[1,1], index: 12, kind: output, shape index: {1}]   ;;  %s7402_s13 = inlined_call_operand.vmem [shape: f32[32,1], index: 13, kind: output, shape index: {2}]   ;;  %s7403_s14 = inlined_call_operand.vmem [shape: f32[16,1], index: 14, kind: output, shape index: {3}]  }
   0x1   :  { %21 = vsyncpa [#allocation7], 0 }
   0x2   :  { %22 = vsyncpa [#allocation10], 0 }
   0x3   :  { %23 = vsyncpa [#allocation13], 0 }
   0x4   :  { %24 = vsyncpa [#allocation5], 0 }
   0x5   :  { %25 = vsyncpa [#allocation4], 0 }
   0x6   :  { %26 = vsyncpa [#allocation17], 0  ;;  %s5608_s29 = smov [#allocation6]   ;;  %s5609_s15 = smov [#allocation9]  }
   0x7   :  { %s50_s30 = sshll.u32 %s5608_s29, 4  ;;  %s76_s16 = sshll.u32 %s5609_s15, 4  ;;  %s51_s30 = int_to_ptr.vmem [resolvable:$true] %s50_s30  ;;  %s5696_s16 = int_to_ptr.vmem [resolvable:$true] %s76_s16 }
   0x8   :  { %s5408_s19 = scalar_lea.hbm %s7393_s4, 2048 }
   0x9   :  { %p5409_p0 = scmp.ne.s32.totalorder %s7393_s4, %s5408_s19  ;;  %p5412_p1 = scmp.lt.u32.totalorder %s5408_s19, %s7393_s4 }
   0xb   :  { %p5414_p2 = pnand %p5412_p1, %p5409_p0 }
   0xd   :  { %5417 = shalt.err (!%p5414_p2)
}
   0xe   :  { %s5418_s24 = scalar_lea.vmem %s51_s30, 2048  ;;  %p5423_p4 = scmp.lt.s32.totalorder %s51_s30, %s51_s30 }
   0xf   :  { %p5419_p3 = scmp.ne.s32.totalorder %s51_s30, %s5418_s24  ;;  %p5424_p5 = scmp.lt.s32.totalorder %s5418_s24, %s5418_s24 }
  0x11   :  { %p5425_p6 = por %p5424_p5, %p5423_p4 }
  0x13   :  { %p5426_p7 = pnand %p5425_p6, %p5419_p3 }
  0x15   :  { %5429 = shalt.err (!%p5426_p7)
}
  0x16   :  { %s5610_s25 = smov 128   ;;  %s5611_s26 = smov 8  }
  0x17   :  { %56 = dma.hbm_to_vmem [thread:$0]  %s7393_s4, 2048, %s51_s30, [#allocation7], %s5610_s25, %s5610_s25, %s5611_s26  }
  0x18   :  { %s5430_s17 = scalar_lea.hbm %s7396_s7, 6144 }
  0x19   :  { %p5431_p8 = scmp.ne.s32.totalorder %s7396_s7, %s5430_s17  ;;  %p5434_p9 = scmp.lt.u32.totalorder %s5430_s17, %s7396_s7 }
  0x1b   :  { %p5436_p10 = pnand %p5434_p9, %p5431_p8 }
  0x1d   :  { %5439 = shalt.err (!%p5436_p10)
}
  0x1e   :  { %s5440_s22 = scalar_lea.vmem %s5696_s16, 6144  ;;  %p5445_p12 = scmp.lt.s32.totalorder %s5696_s16, %s5696_s16 }
  0x1f   :  { %p5441_p11 = scmp.ne.s32.totalorder %s5696_s16, %s5440_s22  ;;  %p5446_p13 = scmp.lt.s32.totalorder %s5440_s22, %s5440_s22 }
  0x21   :  { %p5447_p0 = por %p5446_p13, %p5445_p12 }
  0x23   :  { %p5448_p1 = pnand %p5447_p0, %p5441_p11 }
  0x25   :  { %5451 = shalt.err (!%p5448_p1)
}
  0x26   :  { %82 = dma.hbm_to_vmem [thread:$0]  %s7396_s7, 6144, %s5696_s16, [#allocation10], %s5610_s25, %s5610_s25, %s5611_s26  }
  0x27   :  { %s5612_s23 = smov [#allocation2]   ;;  %s5613_s27 = smov [#allocation8]  }
  0x28   :  { %s38_s24 = sshll.u32 %s5612_s23, 4  ;;  %s64_s28 = sshll.u32 %s5613_s27, 4  ;;  %s39_s24 = int_to_ptr.vmem [resolvable:$true] %s38_s24  ;;  %s5733_s28 = int_to_ptr.vmem [resolvable:$true] %s64_s28 }
  0x29   :  { %s5452_s17 = scalar_lea.hbm %s7392_s3, 512 }
  0x2a   :  { %p5453_p2 = scmp.ne.s32.totalorder %s7392_s3, %s5452_s17  ;;  %p5456_p3 = scmp.lt.u32.totalorder %s5452_s17, %s7392_s3 }
  0x2c   :  { %p5458_p4 = pnand %p5456_p3, %p5453_p2 }
  0x2e   :  { %5461 = shalt.err (!%p5458_p4)
}
  0x2f   :  { %s5462_s7 = scalar_lea.vmem %s39_s24, 512  ;;  %p5467_p6 = scmp.lt.s32.totalorder %s39_s24, %s39_s24 }
  0x30   :  { %p5463_p5 = scmp.ne.s32.totalorder %s39_s24, %s5462_s7  ;;  %p5468_p7 = scmp.lt.s32.totalorder %s5462_s7, %s5462_s7 }
  0x32   :  { %p5469_p8 = por %p5468_p7, %p5467_p6 }
  0x34   :  { %p5470_p9 = pnand %p5469_p8, %p5463_p5 }
  0x36   :  { %5473 = shalt.err (!%p5470_p9)
}
  0x37   :  { %44 = dma.hbm_to_vmem [thread:$0]  %s7392_s3, 512, %s39_s24, [#allocation3], %s5610_s25, %s5610_s25, %s5611_s26  }
  0x38   :  { %s5474_s23 = scalar_lea.hbm %s7395_s6, 6144 }
  0x39   :  { %p5475_p10 = scmp.ne.s32.totalorder %s7395_s6, %s5474_s23  ;;  %p5478_p11 = scmp.lt.u32.totalorder %s5474_s23, %s7395_s6 }
  0x3b   :  { %p5480_p12 = pnand %p5478_p11, %p5475_p10 }
  0x3d   :  { %5483 = shalt.err (!%p5480_p12)
}
  0x3e   :  { %s5484_s18 = scalar_lea.vmem %s5733_s28, 6144  ;;  %p5489_p0 = scmp.lt.s32.totalorder %s5733_s28, %s5733_s28 }
  0x3f   :  { %p5485_p13 = scmp.ne.s32.totalorder %s5733_s28, %s5484_s18  ;;  %p5490_p1 = scmp.lt.s32.totalorder %s5484_s18, %s5484_s18 }
  0x41   :  { %p5491_p2 = por %p5490_p1, %p5489_p0 }
  0x43   :  { %p5492_p3 = pnand %p5491_p2, %p5485_p13 }
  0x45   :  { %5495 = shalt.err (!%p5492_p3)
}
  0x46   :  { %70 = dma.hbm_to_vmem [thread:$0]  %s7395_s6, 6144, %s5733_s28, [#allocation7], %s5610_s25, %s5610_s25, %s5611_s26  }
  0x47   :  { %s5614_s19 = smov [#allocation11]   ;;  %s5615_s21 = smov [#allocation12]  }
  0x48   :  { %s88_s20 = sshll.u32 %s5614_s19, 4  ;;  %s101_s7 = sshll.u32 %s5615_s21, 4  ;;  %s89_s20 = int_to_ptr.vmem [resolvable:$true] %s88_s20  ;;  %s102_s7 = int_to_ptr.vmem [resolvable:$true] %s101_s7 }
  0x49   :  { %s5496_s4 = scalar_lea.hbm %s7397_s8, 256 }
  0x4a   :  { %p5497_p4 = scmp.ne.s32.totalorder %s7397_s8, %s5496_s4  ;;  %p5500_p5 = scmp.lt.u32.totalorder %s5496_s4, %s7397_s8 }
  0x4c   :  { %p5502_p6 = pnand %p5500_p5, %p5497_p4 }
  0x4e   :  { %5505 = shalt.err (!%p5502_p6)
}
  0x4f   :  { %s5506_s6 = scalar_lea.vmem %s89_s20, 256  ;;  %p5511_p8 = scmp.lt.s32.totalorder %s89_s20, %s89_s20 }
  0x50   :  { %p5507_p7 = scmp.ne.s32.totalorder %s89_s20, %s5506_s6  ;;  %p5512_p9 = scmp.lt.s32.totalorder %s5506_s6, %s5506_s6 }
  0x52   :  { %p5513_p10 = por %p5512_p9, %p5511_p8 }
  0x54   :  { %p5514_p11 = pnand %p5513_p10, %p5507_p7 }
  0x56   :  { %5517 = shalt.err (!%p5514_p11)
}
  0x57   :  { %94 = dma.hbm_to_vmem [thread:$0]  %s7397_s8, 256, %s89_s20, [#allocation10], %s5610_s25, %s5610_s25, %s5611_s26  }
  0x58   :  { %s5518_s3 = scalar_lea.hbm %s7398_s9, 64 }
  0x59   :  { %p5519_p12 = scmp.ne.s32.totalorder %s7398_s9, %s5518_s3  ;;  %p5522_p13 = scmp.lt.u32.totalorder %s5518_s3, %s7398_s9 }
  0x5b   :  { %p5524_p0 = pnand %p5522_p13, %p5519_p12 }
  0x5d   :  { %5527 = shalt.err (!%p5524_p0)
}
  0x5e   :  { %s5528_s22 = scalar_lea.vmem %s102_s7, 64  ;;  %p5533_p2 = scmp.lt.s32.totalorder %s102_s7, %s102_s7 }
  0x5f   :  { %p5529_p1 = scmp.ne.s32.totalorder %s102_s7, %s5528_s22  ;;  %p5534_p3 = scmp.lt.s32.totalorder %s5528_s22, %s5528_s22 }
  0x61   :  { %p5535_p4 = por %p5534_p3, %p5533_p2 }
  0x63   :  { %p5536_p5 = pnand %p5535_p4, %p5529_p1 }
  0x65   :  { %5539 = shalt.err (!%p5536_p5)
}
  0x66   :  { %104 = dma.hbm_to_vmem [thread:$0]  %s7398_s9, 64, %s102_s7, [#allocation13]  }
  0x67   :  { %s5540_s23 = scalar_lea.hbm %s7399_s10, 16 }
  0x68   :  { %p5541_p6 = scmp.ne.s32.totalorder %s7399_s10, %s5540_s23  ;;  %p5544_p7 = scmp.lt.u32.totalorder %s5540_s23, %s7399_s10 }
  0x6a   :  { %p5546_p8 = pnand %p5544_p7, %p5541_p6 }
  0x6c   :  { %5549 = shalt.err (!%p5546_p8)
}
  0x6d   :  { %s5616_s15 = smov [#allocation14]  }
  0x6e   :  { %112 = dma.hbm_to_smem %s7399_s10, 16, %s5616_s15, [#allocation5]  }
  0x6f   :  { %5594 = dma.done.wait [#allocation3], 512  }
  0x70   :  { %5595 = vsyncadd [#allocation3], 4294966784 }
  0x71   :  { %5596 = dma.done.wait [#allocation7], 8192  }
  0x72   :  { %5597 = vsyncadd [#allocation7], 4294959104 }
  0x73   :  { %5598 = dma.done.wait [#allocation10], 6400  }
  0x74   :  { %5599 = vsyncadd [#allocation10], 4294960896 }
  0x75   :  { %5600 = dma.done.wait [#allocation13], 64  }
  0x76   :  { %5601 = vsyncadd [#allocation13], 4294967232 }
  0x77   :  { %5602 = dma.done.wait [#allocation5], 16  }
  0x78   :  { %5603 = vsyncadd [#allocation5], 4294967280 }
  0x79   :  { %134 = sfence }
  0x7a   :  { %v160_v0 = vld [vmem:[#allocation2] sm:$0xff]  ;;  %v161_v1 = vld [vmem:[#allocation2 + $0x8] sm:$0xff]  ;;  %v162_v2 = vld [vmem:[#allocation2 + $0x10] sm:$0xff]  ;;  %v180_v3 = vlaneseq  ;;  %vm7424_vm0 = vcmask 261120   ;;  %vm7426_vm2 = vcmask 523264   ;;  %v7404_v18 = vmov 0.0  }
  0x7b   :  { %v5809_v4 = vpack.c.bf16 %v161_v1, %v160_v0  ;;  %v163_v5 = vld [vmem:[#allocation2 + $0x18] sm:$0xff]  ;;  %v144_v6 = vld [vmem:[%s7390_s1] sm:$0xff]  ;;  %v145_v7 = vld [vmem:[%s7390_s1 + $0x8] sm:$0xff]  ;;  %s1802_s16 = sld [smem:[#allocation14]]  ;;  %s4342_s22 = sld [smem:[#allocation14 + $0x1]] }
  0x7c   :  { %v5817_v8 = vpack.c.bf16 %v163_v5, %v162_v2  ;;  %v5819_v9 = vpack.c.bf16 %v145_v7, %v144_v6  ;;  %v5821_v10 = vshrl.u32 %v180_v3, 7  ;;  %v5823_v11 = vand.u32 127, %v180_v3  ;;  %v146_v12 = vld [vmem:[%s7390_s1 + $0x10] sm:$0xff]  ;;  %v147_v13 = vld [vmem:[%s7390_s1 + $0x18] sm:$0xff]  ;;  %v148_v14 = vld [vmem:[%s7390_s1 + $0x20] sm:$0xff] }
  0x7d   :  { %4608 = vmatprep.subr.bf16.mxu0 %v5809_v4  ;;  %v149_v15 = vld [vmem:[%s7390_s1 + $0x28] sm:$0xff]  ;;  %v5844_v16 = vld [vmem:[%s7389_s0] sm:$0xff]  ;;  %v5858_v20 = vld [vmem:[%s7389_s0 + $0x10] sm:$0xff]  ;;  %v5869_v24 = vpack.c.bf16 %v147_v13, %v146_v12 }
  0x7e   :  { %4609 = vmatpush3.bf16.msra.mxu0 %v5809_v4  ;;  %4612 = vmatprep.mubr.msk.bf16.mxu0 %vm7424_vm0, %v5819_v9  ;;  %vm191_vm1 = vcmp.eq.s32.totalorder %v5821_v10, %v5823_v11  ;;  %v5849_v17 = vadd.s32 16, %v5821_v10  ;;  %v5861_v21 = vadd.s32 8, %v5821_v10  ;;  %v5864_v22 = vadd.s32 24, %v5821_v10  ;;  %v5880_v26 = vld [vmem:[%s7389_s0 + $0x8] sm:$0xff]  ;;  %v5885_v27 = vld [vmem:[%s7389_s0 + $0x18] sm:$0xff]  ;;  %v5930_v38 = vld [vmem:[%s7389_s0 + $0x20] sm:$0xff] }
  0x7f   :  { %4610 = vmatprep.subr.bf16.mxu0 %v5817_v8  ;;  %v5853_v19 = vsel %vm191_vm1, 1.0, %v7404_v18  ;;  %v5867_v23 = vadd.s32 40, %v5821_v10  ;;  %v5888_v28 = vadd.s32 32, %v5821_v10  ;;  %v5890_v29 = vpack.c.bf16 %v149_v15, %v148_v14  ;;  %v5923_v37 = vld [vmem:[%s7389_s0 + $0x28] sm:$0xff]  ;;  %v150_v44 = vld [vmem:[%s7390_s1 + $0x30] sm:$0xff]  ;;  %v151_v45 = vld [vmem:[%s7390_s1 + $0x38] sm:$0xff] }
  0x80   :  { %v5873_v25 = vadd.f32 %v5853_v19, %v5844_v16  ;;  %vm193_vm3 = vcmp.eq.s32.totalorder %v5849_v17, %v5823_v11  ;;  %vm192_vm4 = vcmp.eq.s32.totalorder %v5861_v21, %v5823_v11  ;;  %vm194_vm5 = vcmp.eq.s32.totalorder %v5864_v22, %v5823_v11  ;;  %v5970_v50 = vld [vmem:[%s7389_s0 + $0x38] sm:$0xff]  ;;  %v5982_v54 = vld [vmem:[%s7389_s0 + $0x30] sm:$0xff]  ;;  %v164_v5 = vld [vmem:[#allocation6] sm:$0xff]  ;;  %s4347_s1 = sld [smem:[#allocation14 + $0x2]] }
  0x81   :  { %v5893_v30 = vsel %vm193_vm3, 1.0, %v7404_v18  ;;  %v5907_v33 = vsel %vm192_vm4, 1.0, %v7404_v18  ;;  %v5910_v34 = vsel %vm194_vm5, 1.0, %v7404_v18  ;;  %vm196_vm6 = vcmp.eq.s32.totalorder %v5867_v23, %v5823_v11  ;;  %v165_v6 = vld [vmem:[#allocation6 + $0x8] sm:$0xff]  ;;  %v166_v7 = vld [vmem:[#allocation6 + $0x10] sm:$0xff]  ;;  %v167_v13 = vld [vmem:[#allocation6 + $0x18] sm:$0xff] }
  0x82   :  { %4611 = vmatpush3.bf16.msra.mxu0 %v5817_v8  ;;  %v224_v31 = vsel %vm7426_vm2, %v5873_v25, 0.0  ;;  %v5904_v32 = vadd.f32 %v5893_v30, %v5858_v20  ;;  %v5914_v35 = vadd.f32 %v5907_v33, %v5880_v26  ;;  %v5918_v36 = vadd.f32 %v5910_v34, %v5885_v27 }
  0x83   :  { %225 = vadd.xlane.f32.xlu0 %v224_v31  ;;  %v5935_v40 = vsel %vm196_vm6, 1.0, %v7404_v18  ;;  %vm195_vm7 = vcmp.eq.s32.totalorder %v5888_v28, %v5823_v11  ;;  %v5965_v49 = vadd.s32 56, %v5821_v10  ;;  %v5973_v51 = vadd.s32 48, %v5821_v10 }
  0x84   :  { %v230_v39 = vsel %vm7426_vm2, %v5904_v32, 0.0  ;;  %v227_v41 = vsel %vm7426_vm2, %v5914_v35, 0.0  ;;  %v233_v42 = vsel %vm7426_vm2, %v5918_v36, 0.0  ;;  %v5946_v43 = vsel %vm195_vm7, 1.0, %v7404_v18 }
  0x85   :  { %4613 = vmatmul.mubr.msk.bf16.vlgmr.msra.gmra.mrb[0].mxu0 %vm7424_vm0, %v5869_v24  ;;  %231 = vadd.xlane.f32.xlu1 %v230_v39  ;;  %v264_v46 = vadd.f32 %v227_v41, %v224_v31  ;;  %v5958_v47 = vadd.f32 %v5935_v40, %v5923_v37  ;;  %v5962_v48 = vadd.f32 %v5946_v43, %v5930_v38  ;;  %v168_v31 = vld [vmem:[#allocation6 + $0x20] sm:$0xff] }
  0x86   :  { %4616 = vmatprep.mubr.msk.bf16.mxu0 %vm7424_vm0, %v5890_v29  ;;  %vm198_vm8 = vcmp.eq.s32.totalorder %v5965_v49, %v5823_v11  ;;  %v5984_v55 = vpack.c.bf16 %v151_v45, %v150_v44  ;;  %vm197_vm9 = vcmp.eq.s32.totalorder %v5973_v51, %v5823_v11  ;;  %v6010_v12 = vpack.c.bf16 %v165_v6, %v164_v5  ;;  %v170_v44 = vld [vmem:[#allocation6 + $0x30] sm:$0xff]  ;;  %v171_v45 = vld [vmem:[#allocation6 + $0x38] sm:$0xff] }
  0x87   :  { %228 = vadd.xlane.f32.xlu0 %v227_v41  ;;  %v265_v52 = vadd.f32 %v264_v46, %v230_v39  ;;  %v236_v53 = vsel %vm7426_vm2, %v5962_v48, 0.0  ;;  %v5987_v56 = vsel %vm198_vm8, 1.0, %v7404_v18  ;;  %v239_v58 = vsel %vm7426_vm2, %v5958_v47, 0.0  ;;  %v169_v39 = vld [vmem:[#allocation6 + $0x28] sm:$0xff] }
  0x88   :  { %v5995_v59 = vadd.f32 %v5987_v56, %v5970_v50  ;;  %v5998_v60 = vsel %vm197_vm9, 1.0, %v7404_v18  ;;  %v6012_v15 = vpack.c.bf16 %v167_v13, %v166_v7  ;;  %4636 = vmatprep.subr.bf16.mxu0 %v6010_v12  ;;  %v6017_v41 = vpack.c.bf16 %v169_v39, %v168_v31 }
  0x89   :  { %234 = vadd.xlane.f32.xlu1 %v233_v42  ;;  %v266_v57 = vadd.f32 %v265_v52, %v233_v42  ;;  %v6002_v61 = vadd.f32 %v5998_v60, %v5982_v54  ;;  %4637 = vmatpush3.bf16.msra.mxu0 %v6010_v12  ;;  %v6021_v46 = vpack.c.bf16 %v171_v45, %v170_v44 }
  0x8a   :  { %v245_v0 = vsel %vm7426_vm2, %v5995_v59, 0.0  ;;  %4638 = vmatprep.subr.bf16.mxu0 %v6012_v15  ;;  %vm7422_vm10 = vcmp.lt.s32.totalorder %v5821_v10, %v5823_v11  ;;  %vm7423_vm11 = vcmp.lt.s32.totalorder %v5861_v21, %v5823_v11  ;;  %vm7425_vm14 = vcmp.lt.s32.totalorder %v5849_v17, %v5823_v11 }
  0x8b   :  { %237 = vadd.xlane.f32.xlu0 %v236_v53  ;;  %v267_v62 = vadd.f32 %v266_v57, %v236_v53  ;;  %v242_v63 = vsel %vm7426_vm2, %v6002_v61, 0.0  ;;  %v172_v53 = vld [vmem:[#allocation6 + $0x40] sm:$0xff]  ;;  %v173_v57 = vld [vmem:[#allocation6 + $0x48] sm:$0xff]  ;;  %vm7427_vm1 = vcmp.lt.s32.totalorder %v5864_v22, %v5823_v11  ;;  %vm773_vm5 = vcmp.lt.s32.totalorder %v5888_v28, %v5823_v11 }
  0x8c   :  { %vm774_vm8 = vcmp.lt.s32.totalorder %v5867_v23, %v5823_v11 }
  0x8d   :  { %4617 = vmatmul.mubr.msk.bf16.gmra.mrb[4].mxu0 %vm7424_vm0, %v5984_v55  ;;  %240 = vadd.xlane.f32.xlu1 %v239_v58  ;;  %v268_v1 = vadd.f32 %v267_v62, %v239_v58  ;;  %v6025_v58 = vpack.c.bf16 %v173_v57, %v172_v53 }
  0x8e   :  { %4639 = vmatpush3.bf16.msra.mxu0 %v6012_v15 }
  0x8f   :  { %243 = vadd.xlane.f32.xlu0 %v242_v63  ;;  %v269_v2 = vadd.f32 %v268_v1, %v242_v63  ;;  %4640 = vmatprep.subr.bf16.mxu0 %v6017_v41  ;;  %7439 = vst [vmem:[#allocation25_spill] sm:$0xff] %v6025_v58  ;;  %v174_v63 = vld [vmem:[#allocation6 + $0x50] sm:$0xff] }
  0x91   :  { %246 = vadd.xlane.f32.xlu1 %v245_v0  ;;  %v270_v3 = vadd.f32 %v269_v2, %v245_v0  ;;  %v175_v0 = vld [vmem:[#allocation6 + $0x58] sm:$0xff] }
  0x92   :  { %4641 = vmatpush3.bf16.msra.mxu0 %v6017_v41  ;;  %v6029_v1 = vpack.c.bf16 %v175_v0, %v174_v63 }
  0x93   :  { %v271_v14 = vrot.slane %v270_v3, 4  ;;  %4642 = vmatprep.subr.bf16.mxu0 %v6021_v46 }
  0x94   :  { %7440 = vst [vmem:[#allocation26_spill] sm:$0xff] %v6029_v1 }
  0x95   :  { %v272_v42 = vadd.f32 %v271_v14, %v270_v3 }
  0x96   :  { %4643 = vmatpush3.bf16.msra.mxu0 %v6021_v46 }
  0x97   :  { %v273_v52 = vrot.slane %v272_v42, 2  ;;  %4644 = vmatprep.subr.bf16.mxu0 %v6025_v58 }
  0x99   :  { %v274_v62 = vadd.f32 %v273_v52, %v272_v42 }
  0x9a   :  { %4645 = vmatpush3.bf16.msra.mxu0 %v6025_v58 }
  0x9b   :  { %v275_v2 = vrot.slane %v274_v62, 1  ;;  %4646 = vmatprep.subr.bf16.mxu0 %v6029_v1 }
  0x9d   :  { %v276_v3 = vadd.f32 %v275_v2, %v274_v62 }
  0x9e   :  { %4647 = vmatpush3.bf16.msra.mxu0 %v6029_v1 }
  0x9f   :  { %v277_v6 = vmax.f32 %v276_v3, 1e-12 }
 0x110   :  { %v226_v5 = vpop.xlane.xlu0 %225 }
 0x111   :  { %v248_v7 = vmax.f32 %v226_v5, 1e-12 }
 0x112   :  { %v232_v62 = vpop.xlane.xlu1 %231 }
 0x113   :  { %5116 = vrsqrt.f32 %v248_v7  ;;  %v250_v3 = vmax.f32 %v232_v62, 1e-12 }
 0x114   :  { %v229_v13 = vpop.xlane.xlu0 %228  ;;  %5118 = vrsqrt.f32 %v277_v6 }
 0x115   :  { %v249_v14 = vmax.f32 %v229_v13, 1e-12 }
 0x116   :  { %v235_v63 = vpop.xlane.xlu1 %234 }
 0x117   :  { %5120 = vrsqrt.f32 %v249_v14  ;;  %v251_v6 = vmax.f32 %v235_v63, 1e-12 }
 0x118   :  { %v238_v0 = vpop.xlane.xlu0 %237  ;;  %5122 = vrsqrt.f32 %v250_v3 }
 0x11a   :  { %v241_v2 = vpop.xlane.xlu1 %240 }
 0x11b   :  { %v253_v5 = vmax.f32 %v241_v2, 1e-12 }
 0x11d   :  { %v5117_v31 = vpop.eup %5116 }
 0x11e   :  { %v279_v39 = vmul.f32 %v5117_v31, %v5873_v25  ;;  %v6035_v42 = vpop.eup %5118  ;;  %v252_v25 = vmax.f32 %v238_v0, 1e-12  ;;  %v247_v7 = vpop.xlane.xlu1 %246 }
 0x120   :  { %v287_v52 = vmul.f32 %v6035_v42, %v279_v39  ;;  %5124 = vrsqrt.f32 %v252_v25  ;;  %v255_v39 = vmax.f32 %v247_v7, 1e-12 }
 0x121   :  { %v5121_v44 = vpop.eup %5120  ;;  %5126 = vrsqrt.f32 %v253_v5 }
 0x122   :  { %v280_v45 = vmul.f32 %v5121_v44, %v5914_v35  ;;  %v244_v35 = vpop.xlane.xlu0 %243  ;;  %5128 = vrsqrt.f32 %v251_v6  ;;  %v5123_v62 = vpop.eup %5122 }
 0x123   :  { %v254_v14 = vmax.f32 %v244_v35, 1e-12 }
 0x124   :  { %v288_v53 = vmul.f32 %v6035_v42, %v280_v45 }
 0x125   :  { %5130 = vrsqrt.f32 %v254_v14  ;;  %v281_v14 = vmul.f32 %v5123_v62, %v5904_v32 }
 0x126   :  { %v6040_v57 = vpack.c.bf16 %v288_v53, %v287_v52  ;;  %5132 = vrsqrt.f32 %v255_v39 }
 0x128   :  { %4628 = vmatprep.mubr.msk.bf16.mxu1 %vm7426_vm2, %v6040_v57 }
 0x12a   :  { %v5125_v0 = vpop.eup %5124 }
 0x12b   :  { %v5127_v63 = vpop.eup %5126  ;;  %v283_v7 = vmul.f32 %v5125_v0, %v5962_v48 }
 0x12c   :  { %v5129_v3 = vpop.eup %5128 }
 0x12d   :  { %v282_v39 = vmul.f32 %v5129_v3, %v5918_v36  ;;  %v179_v3 = vld [vmem:[#allocation6 + $0x78] sm:$0xff] }
 0x12f   :  { %v290_v48 = vmul.f32 %v6035_v42, %v282_v39 }
 0x158   :  { %v4614_v13 = vpop.f32.mrb[0].mxu0 }
 0x159   :  { %v348_v31 = vpop.f32.mrb[1].mxu0 }
 0x15a   :  { %v4615_v44 = vpop.f32.mrb[2].mxu0 }
 0x15b   :  { %v384_v45 = vpack.c.bf16 %v4615_v44, %v4614_v13  ;;  %v351_v52 = vpop.f32.mrb[3].mxu0  ;;  %v284_v13 = vmul.f32 %v5127_v63, %v5958_v47  ;;  %v5131_v44 = vpop.eup %5130 }
 0x15c   :  { %v383_v53 = vpack.c.bf16 %v351_v52, %v348_v31  ;;  %v5133_v52 = vpop.eup %5132  ;;  %v285_v47 = vmul.f32 %v5131_v44, %v6002_v61 }
 0x15d   :  { %v292_v18 = vmul.f32 %v6035_v42, %v284_v13  ;;  %v286_v0 = vmul.f32 %v5133_v52, %v5995_v59  ;;  %v177_v59 = vld [vmem:[#allocation6 + $0x68] sm:$0xff] }
 0x15e   :  { %4620 = vmatprep.subr.bf16.mxu1 %v383_v53  ;;  %v293_v62 = vmul.f32 %v6035_v42, %v285_v47 }
 0x15f   :  { %4621 = vmatpush3.bf16.msra.mxu1 %v383_v53  ;;  %v291_v53 = vmul.f32 %v6035_v42, %v283_v7  ;;  %v294_v63 = vmul.f32 %v6035_v42, %v286_v0 }
 0x160   :  { %v4618_v2 = vpop.f32.mrb[4].mxu0  ;;  %4622 = vmatprep.subr.bf16.mxu1 %v384_v45 }
 0x161   :  { %v364_v25 = vpop.f32.mrb[5].mxu0  ;;  %v6054_v32 = vpack.c.bf16 %v292_v18, %v291_v53  ;;  %v176_v18 = vld [vmem:[#allocation6 + $0x60] sm:$0xff] }
 0x162   :  { %v4619_v5 = vpop.f32.mrb[6].mxu0  ;;  %v6070_v61 = vpack.c.bf16 %v177_v59, %v176_v18 }
 0x163   :  { %v386_v6 = vpack.c.bf16 %v4619_v5, %v4618_v2  ;;  %v367_v35 = vpop.f32.mrb[7].mxu0  ;;  %4623 = vmatpush3.bf16.msra.mxu1 %v384_v45  ;;  %v289_v45 = vmul.f32 %v6035_v42, %v281_v14  ;;  %v6064_v2 = vpack.c.bf16 %v294_v63, %v293_v62  ;;  %v178_v42 = vld [vmem:[#allocation6 + $0x70] sm:$0xff] }
 0x164   :  { %v385_v31 = vpack.c.bf16 %v367_v35, %v364_v25  ;;  %7441 = vst [vmem:[#allocation27_spill] sm:$0xff] %v6070_v61  ;;  %4648 = vmatprep.subr.bf16.mxu0 %v6070_v61  ;;  %v6074_v25 = vpack.c.bf16 %v179_v3, %v178_v42 }
 0x165   :  { %v6056_v36 = vpack.c.bf16 %v290_v48, %v289_v45  ;;  %4649 = vmatpush3.bf16.msra.mxu0 %v6070_v61 }
 0x166   :  { %4624 = vmatprep.subr.bf16.mxu1 %v385_v31  ;;  %7442 = vst [vmem:[#allocation28_spill] sm:$0xff] %v6074_v25  ;;  %4650 = vmatprep.subr.bf16.mxu0 %v6074_v25 }
 0x167   :  { %4625 = vmatpush3.bf16.msra.mxu1 %v385_v31 }
 0x168   :  { %4626 = vmatprep.subr.bf16.mxu1 %v386_v6 }
 0x169   :  { %4651 = vmatpush3.bf16.msra.mxu0 %v6074_v25 }
 0x16b   :  { %4627 = vmatpush3.bf16.msra.mxu1 %v386_v6 }
 0x16e   :  { %4629 = vmatmul.mubr.msk.bf16.vlgmr.msra.gmra.mrb[0].mxu1 %vm7426_vm2, %v6056_v36 }
 0x16f   :  { %4632 = vmatprep.mubr.msk.bf16.mxu1 %vm7426_vm2, %v6054_v32 }
 0x176   :  { %4633 = vmatmul.mubr.msk.bf16.gmra.mrb[4].mxu1 %vm7426_vm2, %v6064_v2 }
 0x177   :  { %4668 = vmatprep.mubr.msk.bf16.mxu1 %vm7426_vm2, %v6040_v57 }
 0x241   :  { %v4630_v5 = vpop.f32.mrb[0].mxu1 }
 0x242   :  { %v433_v6 = vpop.f32.mrb[1].mxu1  ;;  %v466_v7 = vmax.f32 %v4630_v5, 0.0 }
 0x243   :  { %v4631_v35 = vpop.f32.mrb[2].mxu1  ;;  %v464_v14 = vmax.f32 %v433_v6, 0.0 }
 0x244   :  { %v467_v13 = vmax.f32 %v4631_v35, 0.0  ;;  %v436_v31 = vpop.f32.mrb[3].mxu1 }
 0x245   :  { %v465_v39 = vmax.f32 %v436_v31, 0.0 }
 0x246   :  { %v473_v44 = vpack.c.bf16 %v467_v13, %v466_v7 }
 0x247   :  { %v472_v52 = vpack.c.bf16 %v465_v39, %v464_v14 }
 0x249   :  { %v4634_v53 = vpop.f32.mrb[4].mxu1  ;;  %4652 = vmatprep.mubr.bf16.mxu0 %v472_v52 }
 0x24a   :  { %v449_v45 = vpop.f32.mrb[5].mxu1  ;;  %4653 = vmatmul.mubr.bf16.vlgmr.msra.gmra.mrb[8].mxu0 %v473_v44  ;;  %v470_v47 = vmax.f32 %v4634_v53, 0.0 }
 0x24b   :  { %v4635_v48 = vpop.f32.mrb[6].mxu1  ;;  %v468_v63 = vmax.f32 %v449_v45, 0.0 }
 0x24c   :  { %v471_v0 = vmax.f32 %v4635_v48, 0.0  ;;  %v452_v62 = vpop.f32.mrb[7].mxu1 }
 0x24d   :  { %v469_v18 = vmax.f32 %v452_v62, 0.0 }
 0x24e   :  { %v475_v59 = vpack.c.bf16 %v471_v0, %v470_v47 }
 0x24f   :  { %v474_v42 = vpack.c.bf16 %v469_v18, %v468_v63 }
 0x251   :  { %4656 = vmatprep.mubr.bf16.mxu0 %v474_v42 }
 0x252   :  { %4657 = vmatmul.mubr.bf16.gmra.mrb[12].mxu0 %v475_v59 }
 0x31d   :  { %v4654_v3 = vpop.f32.mrb[8].mxu0 }
 0x31e   :  { %v518_v5 = vpop.f32.mrb[9].mxu0 }
 0x31f   :  { %v4655_v6 = vpop.f32.mrb[10].mxu0 }
 0x320   :  { %v550_v35 = vpack.c.bf16 %v4655_v6, %v4654_v3  ;;  %v521_v7 = vpop.f32.mrb[11].mxu0 }
 0x321   :  { %v549_v13 = vpack.c.bf16 %v521_v7, %v518_v5 }
 0x323   :  { %4660 = vmatprep.subr.bf16.mxu1 %v549_v13 }
 0x324   :  { %4661 = vmatpush3.bf16.msra.mxu1 %v549_v13 }
 0x325   :  { %v4658_v31 = vpop.f32.mrb[12].mxu0  ;;  %4662 = vmatprep.subr.bf16.mxu1 %v550_v35 }
 0x326   :  { %v534_v14 = vpop.f32.mrb[13].mxu0 }
 0x327   :  { %v4659_v39 = vpop.f32.mrb[14].mxu0 }
 0x328   :  { %v552_v44 = vpack.c.bf16 %v4659_v39, %v4658_v31  ;;  %v537_v52 = vpop.f32.mrb[15].mxu0  ;;  %4663 = vmatpush3.bf16.msra.mxu1 %v550_v35 }
 0x329   :  { %v551_v53 = vpack.c.bf16 %v537_v52, %v534_v14 }
 0x32b   :  { %4664 = vmatprep.subr.bf16.mxu1 %v551_v53 }
 0x32c   :  { %4665 = vmatpush3.bf16.msra.mxu1 %v551_v53 }
 0x32d   :  { %4666 = vmatprep.subr.bf16.mxu1 %v552_v44 }
 0x330   :  { %4667 = vmatpush3.bf16.msra.mxu1 %v552_v44 }
 0x333   :  { %4669 = vmatmul.mubr.msk.bf16.vlgmr.msra.gmra.mrb[8].mxu1 %vm7426_vm2, %v6056_v36 }
 0x334   :  { %4672 = vmatprep.mubr.msk.bf16.mxu1 %vm7426_vm2, %v6054_v32 }
 0x33b   :  { %4673 = vmatmul.mubr.msk.bf16.gmra.mrb[12].mxu1 %vm7426_vm2, %v6064_v2 }
 0x33c   :  { %4684 = vmatprep.mubr.msk.bf16.mxu1 %vm7426_vm2, %v6040_v57 }
 0x406   :  { %v4670_v45 = vpop.f32.mrb[8].mxu1 }
 0x407   :  { %4211 = vst [vmem:[#allocation15 + $0x10] sm:$0xff] %v4670_v45  ;;  %v587_v48 = vpop.f32.mrb[9].mxu1 }
 0x408   :  { %4209 = vst [vmem:[#allocation15] sm:$0xff] %v587_v48  ;;  %v4671_v47 = vpop.f32.mrb[10].mxu1 }
 0x409   :  { %v6086_v0 = vpack.c.bf16 %v4671_v47, %v4670_v45  ;;  %4212 = vst [vmem:[#allocation15 + $0x18] sm:$0xff] %v4671_v47  ;;  %v590_v62 = vpop.f32.mrb[11].mxu1 }
 0x40a   :  { %v6088_v63 = vpack.c.bf16 %v590_v62, %v587_v48  ;;  %v3661_v18 = vadd.f32 %v590_v62, %v587_v48  ;;  %4210 = vst [vmem:[#allocation15 + $0x8] sm:$0xff] %v590_v62 }
 0x40b   :  { %7443 = vst [vmem:[#allocation29_spill] sm:$0xff] %v6086_v0 }
 0x40c   :  { %7444 = vst [vmem:[#allocation30_spill] sm:$0xff] %v6088_v63  ;;  %v3662_v59 = vadd.f32 %v4670_v45, %v3661_v18  ;;  %4676 = vmatprep.subr.bf16.mxu1 %v6088_v63 }
 0x40d   :  { %4677 = vmatpush3.bf16.msra.mxu1 %v6088_v63 }
 0x40e   :  { %v4674_v42 = vpop.f32.mrb[12].mxu1  ;;  %4678 = vmatprep.subr.bf16.mxu1 %v6086_v0  ;;  %v3663_v57 = vadd.f32 %v4671_v47, %v3662_v59 }
 0x40f   :  { %4215 = vst [vmem:[#allocation15 + $0x30] sm:$0xff] %v4674_v42  ;;  %v603_v3 = vpop.f32.mrb[13].mxu1 }
 0x410   :  { %v3664_v5 = vadd.f32 %v3663_v57, %v603_v3  ;;  %4213 = vst [vmem:[#allocation15 + $0x20] sm:$0xff] %v603_v3  ;;  %v4675_v6 = vpop.f32.mrb[14].mxu1 }
 0x411   :  { %v6093_v35 = vpack.c.bf16 %v4675_v6, %v4674_v42  ;;  %4216 = vst [vmem:[#allocation15 + $0x38] sm:$0xff] %v4675_v6  ;;  %v606_v7 = vpop.f32.mrb[15].mxu1  ;;  %4679 = vmatpush3.bf16.msra.mxu1 %v6086_v0 }
 0x412   :  { %v6096_v13 = vpack.c.bf16 %v606_v7, %v603_v3  ;;  %v3665_v31 = vadd.f32 %v3664_v5, %v606_v7  ;;  %4214 = vst [vmem:[#allocation15 + $0x28] sm:$0xff] %v606_v7 }
 0x413   :  { %7445 = vst [vmem:[#allocation31_spill] sm:$0xff] %v6093_v35 }
 0x414   :  { %7446 = vst [vmem:[#allocation32_spill] sm:$0xff] %v6096_v13  ;;  %v3666_v14 = vadd.f32 %v4674_v42, %v3665_v31  ;;  %4680 = vmatprep.subr.bf16.mxu1 %v6096_v13 }
 0x415   :  { %4681 = vmatpush3.bf16.msra.mxu1 %v6096_v13 }
 0x416   :  { %v3667_v39 = vadd.f32 %v4675_v6, %v3666_v14  ;;  %4682 = vmatprep.subr.bf16.mxu1 %v6093_v35 }
 0x418   :  { %v3668_v44 = vrot.slane %v3667_v39, 4 }
 0x419   :  { %4683 = vmatpush3.bf16.msra.mxu1 %v6093_v35 }
 0x41a   :  { %v3669_v52 = vadd.f32 %v3668_v44, %v3667_v39 }
 0x41c   :  { %v3670_v53 = vrot.slane %v3669_v52, 2  ;;  %4685 = vmatmul.mubr.msk.bf16.vlgmr.msra.gmra.mrb[16].mxu1 %vm7426_vm2, %v6056_v36 }
 0x41d   :  { %4688 = vmatprep.mubr.msk.bf16.mxu1 %vm7426_vm2, %v6054_v32 }
 0x41e   :  { %v3671_v18 = vadd.f32 %v3670_v53, %v3669_v52 }
 0x420   :  { %v3672_v59 = vrot.slane %v3671_v18, 1 }
 0x422   :  { %v3673_v57 = vadd.f32 %v3672_v59, %v3671_v18 }
 0x424   :  { %v3674_v5 = vmul.f32 0.015625, %v3673_v57  ;;  %4689 = vmatmul.mubr.msk.bf16.gmra.mrb[20].mxu1 %vm7426_vm2, %v6064_v2 }
 0x426   :  { %v3675_v31 = vsub.f32 %v587_v48, %v3674_v5  ;;  %v3676_v14 = vsub.f32 %v590_v62, %v3674_v5  ;;  %v3677_v13 = vsub.f32 %v4670_v45, %v3674_v5  ;;  %v3678_v0 = vsub.f32 %v4671_v47, %v3674_v5  ;;  %v4298_v47 = vld [vmem:[%s7394_s5] ss:$0 sm:$0xff] }
 0x427   :  { %v3679_v35 = vsub.f32 %v603_v3, %v3674_v5  ;;  %v3680_v39 = vsub.f32 %v606_v7, %v3674_v5  ;;  %v3681_v44 = vsub.f32 %v4674_v42, %v3674_v5  ;;  %v3682_v63 = vsub.f32 %v4675_v6, %v3674_v5 }
 0x428   :  { %v3711_v25 = vmul.f32 %v3675_v31, %v3675_v31  ;;  %v3712_v36 = vmul.f32 %v3676_v14, %v3676_v14  ;;  %v3713_v61 = vmul.f32 %v3677_v13, %v3677_v13  ;;  %v3714_v32 = vmul.f32 %v3678_v0, %v3678_v0 }
 0x429   :  { %v3715_v53 = vmul.f32 %v3679_v35, %v3679_v35  ;;  %v3716_v59 = vmul.f32 %v3680_v39, %v3680_v39  ;;  %v3717_v58 = vmul.f32 %v3681_v44, %v3681_v44  ;;  %v3718_v48 = vmul.f32 %v3682_v63, %v3682_v63 }
 0x42a   :  { %v3719_v1 = vadd.f32 %v3712_v36, %v3711_v25  ;;  %v875_v44 = vpack.c.bf16 %v5880_v26, %v5844_v16  ;;  %v876_v36 = vpack.c.bf16 %v5885_v27, %v5858_v20 }
 0x42c   :  { %v3720_v52 = vadd.f32 %v3719_v1, %v3713_v61  ;;  %4692 = vmatprep.subr.bf16.mxu0 %v875_v44 }
 0x42d   :  { %4693 = vmatpush3.bf16.msra.mxu0 %v875_v44 }
 0x42e   :  { %v3721_v18 = vadd.f32 %v3720_v52, %v3714_v32  ;;  %4694 = vmatprep.subr.bf16.mxu0 %v876_v36  ;;  %v877_v32 = vpack.c.bf16 %v5923_v37, %v5930_v38  ;;  %v878_v52 = vpack.c.bf16 %v5970_v50, %v5982_v54 }
 0x430   :  { %v3722_v57 = vadd.f32 %v3721_v18, %v3715_v53 }
 0x431   :  { %4695 = vmatpush3.bf16.msra.mxu0 %v876_v36 }
 0x432   :  { %v3723_v2 = vadd.f32 %v3722_v57, %v3716_v59  ;;  %4696 = vmatprep.subr.bf16.mxu0 %v877_v32 }
 0x434   :  { %v3724_v62 = vadd.f32 %v3723_v2, %v3717_v58 }
 0x435   :  { %4697 = vmatpush3.bf16.msra.mxu0 %v877_v32 }
 0x436   :  { %v6108_v45 = vadd.f32 %v3724_v62, %v3718_v48  ;;  %4698 = vmatprep.subr.bf16.mxu0 %v878_v52 }
 0x438   :  { %7447 = vst [vmem:[#allocation33_spill] sm:$0xff] %v6108_v45 }
 0x439   :  { %4699 = vmatpush3.bf16.msra.mxu0 %v878_v52 }
 0x43a   :  { %4712 = vmatprep.subr.bf16.mxu0 %v5819_v9 }
 0x4ef   :  { %v4686_v42 = vpop.f32.mrb[16].mxu1 }
 0x4f0   :  { %v657_v3 = vpop.f32.mrb[17].mxu1  ;;  %v694_v61 = vmul.f32 %v4686_v42, %v4298_v47 }
 0x4f1   :  { %v692_v6 = vmul.f32 %v4298_v47, %v657_v3  ;;  %v4687_v25 = vpop.f32.mrb[18].mxu1 }
 0x4f2   :  { %v660_v0 = vpop.f32.mrb[19].mxu1  ;;  %v695_v35 = vmul.f32 %v4687_v25, %v4298_v47 }
 0x4f3   :  { %v693_v1 = vmul.f32 %v4298_v47, %v660_v0  ;;  %700 = vadd.xlane.f32.xlu0 %v692_v6 }
 0x4f5   :  { %702 = vadd.xlane.f32.xlu1 %v693_v1 }
 0x4f7   :  { %704 = vadd.xlane.f32.xlu0 %v694_v61  ;;  %v4690_v7 = vpop.f32.mrb[20].mxu1 }
 0x4f8   :  { %v673_v63 = vpop.f32.mrb[21].mxu1  ;;  %v698_v14 = vmul.f32 %v4690_v7, %v4298_v47 }
 0x4f9   :  { %v696_v58 = vmul.f32 %v4298_v47, %v673_v63  ;;  %706 = vadd.xlane.f32.xlu1 %v695_v35  ;;  %v4691_v13 = vpop.f32.mrb[22].mxu1 }
 0x4fa   :  { %v676_v5 = vpop.f32.mrb[23].mxu1  ;;  %v699_v39 = vmul.f32 %v4691_v13, %v4298_v47 }
 0x4fb   :  { %v697_v31 = vmul.f32 %v4298_v47, %v676_v5  ;;  %708 = vadd.xlane.f32.xlu0 %v696_v58 }
 0x4fd   :  { %710 = vadd.xlane.f32.xlu1 %v697_v31 }
 0x4ff   :  { %712 = vadd.xlane.f32.xlu0 %v698_v14 }
 0x501   :  { %714 = vadd.xlane.f32.xlu1 %v699_v39 }
 0x580   :  { %v701_v16 = vpop.xlane.xlu0 %700 }
 0x581   :  { %5134 = vtanh.f32 %v701_v16 }
 0x582   :  { %v703_v26 = vpop.xlane.xlu1 %702 }
 0x583   :  { %5136 = vtanh.f32 %v703_v26 }
 0x584   :  { %v705_v53 = vpop.xlane.xlu0 %704 }
 0x585   :  { %5138 = vtanh.f32 %v705_v53 }
 0x586   :  { %v707_v20 = vpop.xlane.xlu1 %706 }
 0x587   :  { %5140 = vtanh.f32 %v707_v20 }
 0x588   :  { %v709_v27 = vpop.xlane.xlu0 %708 }
 0x589   :  { %5142 = vtanh.f32 %v709_v27 }
 0x58a   :  { %v711_v37 = vpop.xlane.xlu1 %710 }
 0x58b   :  { %v6122_v38 = vpop.eup %5134  ;;  %5144 = vtanh.f32 %v711_v37 }
 0x58c   :  { %v724_v50 = vmul.f32 %v6122_v38, %v5853_v19  ;;  %v713_v54 = vpop.xlane.xlu0 %712 }
 0x58d   :  { %v6126_v18 = vpop.eup %5136  ;;  %5146 = vtanh.f32 %v713_v54 }
 0x58e   :  { %v725_v59 = vmul.f32 %v6126_v18, %v5907_v33  ;;  %v715_v57 = vpop.xlane.xlu1 %714  ;;  %v732_v48 = vsel %vm7426_vm2, %v724_v50, 0.0 }
 0x58f   :  { %v6130_v2 = vpop.eup %5138  ;;  %5148 = vtanh.f32 %v715_v57 }
 0x590   :  { %v733_v62 = vsel %vm7426_vm2, %v725_v59, 0.0  ;;  %v726_v47 = vmul.f32 %v6130_v2, %v5893_v30  ;;  %v7456_v59 = vmov 0 }
 0x591   :  { %v6136_v42 = vpop.eup %5140  ;;  %v734_v3 = vadd.f32 %v733_v62, %v732_v48 }
 0x592   :  { %v735_v6 = vsel %vm7426_vm2, %v726_v47, 0.0  ;;  %v727_v25 = vmul.f32 %v6136_v42, %v5910_v34 }
 0x593   :  { %v6141_v0 = vpop.eup %5142  ;;  %v736_v1 = vadd.f32 %v735_v6, %v734_v3 }
 0x594   :  { %v737_v61 = vsel %vm7426_vm2, %v727_v25, 0.0  ;;  %v728_v35 = vmul.f32 %v6141_v0, %v5946_v43 }
 0x595   :  { %v6146_v7 = vpop.eup %5144  ;;  %v738_v63 = vadd.f32 %v737_v61, %v736_v1 }
 0x596   :  { %v739_v58 = vsel %vm7426_vm2, %v728_v35, 0.0  ;;  %v729_v13 = vmul.f32 %v6146_v7, %v5935_v40 }
 0x597   :  { %v6151_v5 = vpop.eup %5146  ;;  %v740_v31 = vadd.f32 %v739_v58, %v738_v63 }
 0x598   :  { %v741_v14 = vsel %vm7426_vm2, %v729_v13, 0.0  ;;  %v730_v39 = vmul.f32 %v6151_v5, %v5998_v60 }
 0x599   :  { %v6156_v44 = vpop.eup %5148  ;;  %v742_v36 = vadd.f32 %v741_v14, %v740_v31 }
 0x59a   :  { %v743_v43 = vsel %vm7426_vm2, %v730_v39, 0.0  ;;  %v731_v32 = vmul.f32 %v6156_v44, %v5987_v56 }
 0x59b   :  { %v744_v52 = vadd.f32 %v743_v43, %v742_v36 }
 0x59c   :  { %v745_v16 = vsel %vm7426_vm2, %v731_v32, 0.0 }
 0x59d   :  { %v746_v40 = vadd.f32 %v745_v16, %v744_v52  ;;  %v830_v16 = vcvt.s32.f32 %v5821_v10 }
 0x59f   :  { %v747_v26 = vrot.slane %v746_v40, 4 }
 0x5a1   :  { %v748_v53 = vadd.f32 %v747_v26, %v746_v40  ;;  %v831_v26 = vcvt.s32.f32 %v5861_v21 }
 0x5a3   :  { %v749_v20 = vrot.slane %v748_v53, 2 }
 0x5a5   :  { %v750_v27 = vadd.f32 %v749_v20, %v748_v53  ;;  %v832_v53 = vcvt.s32.f32 %v5849_v17  ;;  %v833_v20 = vcvt.s32.f32 %v5864_v22 }
 0x5a7   :  { %v751_v37 = vrot.slane %v750_v27, 1 }
 0x5a9   :  { %v6162_v50 = vadd.f32 %v751_v37, %v750_v27 }
 0x5ab   :  { %vm761_vm12 = vcmp.eq.f32.partialorder %v6122_v38, %v6162_v50  ;;  %vm762_vm13 = vcmp.eq.f32.partialorder %v6126_v18, %v6162_v50  ;;  %vm763_vm15 = vcmp.eq.f32.partialorder %v6130_v2, %v6162_v50  ;;  %vm764_vm3 = vcmp.eq.f32.partialorder %v6136_v42, %v6162_v50 }
 0x5ac   :  { %vm6183_vm4 = vmand %vm761_vm12, %vm7422_vm10  ;;  %vm765_vm6 = vcmp.eq.f32.partialorder %v6141_v0, %v6162_v50  ;;  %vm766_vm9 = vcmp.eq.f32.partialorder %v6146_v7, %v6162_v50  ;;  %vm775_vm10 = vcmp.lt.s32.totalorder %v5973_v51, %v5823_v11  ;;  %vm753_vm0 = vcmp.gt.f32.partialorder %v6122_v38, %v6162_v50 }
 0x5ad   :  { %vm6194_vm7 = vmand %vm762_vm13, %vm7423_vm11  ;;  %vm767_vm13 = vcmp.eq.f32.partialorder %v6151_v5, %v6162_v50  ;;  %v7462_v38 = vmov 0.0  }
 0x5ae   :  { %vm6205_vm12 = vmand %vm763_vm15, %vm7425_vm14  ;;  %vm754_vm14 = vcmp.gt.f32.partialorder %v6126_v18, %v6162_v50 }
 0x5af   :  { %vm6216_vm11 = vmand %vm764_vm3, %vm7427_vm1  ;;  %vm755_vm3 = vcmp.gt.f32.partialorder %v6130_v2, %v6162_v50 }
 0x5b0   :  { %vm6222_vm15 = vmand %vm765_vm6, %vm773_vm5  ;;  %vm756_vm5 = vcmp.gt.f32.partialorder %v6136_v42, %v6162_v50 }
 0x5b1   :  { %v7457_v59 = vsel %vm6222_vm15, 4294967295, %v7456_v59  ;;  %vm6228_vm2 = vmand %vm766_vm9, %vm774_vm8  ;;  %vm757_vm15 = vcmp.gt.f32.partialorder %v6141_v0, %v6162_v50 }
 0x5b2   :  { %vm6234_vm1 = vmand %vm767_vm13, %vm775_vm10  ;;  %vm758_vm10 = vcmp.gt.f32.partialorder %v6146_v7, %v6162_v50  ;;  %vm7463_vm13 = vcmask 523264  }
 0x5b3   :  { %vm785_vm6 = vmor %vm753_vm0, %vm6183_vm4  ;;  %vm776_vm0 = vcmp.lt.s32.totalorder %v5965_v49, %v5823_v11  ;;  %vm768_vm4 = vcmp.eq.f32.partialorder %v6156_v44, %v6162_v50 }
 0x5b4   :  { %vm786_vm8 = vmor %vm754_vm14, %vm6194_vm7  ;;  %v4299_v18 = vsel %vm785_vm6, 1.0, %v7462_v38 }
 0x5b5   :  { %vm787_vm9 = vmor %vm755_vm3, %vm6205_vm12  ;;  %v4300_v2 = vsel %vm786_vm8, 1.0, %v7462_v38  ;;  %v809_v48 = vsel %vm7463_vm13, %v4299_v18, 0.0  ;;  %vm759_vm12 = vcmp.gt.f32.partialorder %v6151_v5, %v6162_v50  ;;  %vm7465_vm3 = vnez %v7457_v59 }
 0x5b6   :  { %vm788_vm14 = vmor %vm756_vm5, %vm6216_vm11  ;;  %v4301_v62 = vsel %vm787_vm9, 1.0, %v7462_v38  ;;  %vm760_vm11 = vcmp.gt.f32.partialorder %v6156_v44, %v6162_v50 }
 0x5b7   :  { %vm7464_vm7 = vmmov %vm7463_vm13  ;;  %v4302_v42 = vsel %vm788_vm14, 1.0, %v7462_v38 }
 0x5b8   :  { %v810_v47 = vsel %vm7464_vm7, %v4300_v2, 0.0  ;;  %vm789_vm6 = vmor %vm757_vm15, %vm7465_vm3  ;;  %v814_v0 = vsel %vm7464_vm7, %v4302_v42, 0.0 }
 0x5b9   :  { %v811_v3 = vadd.f32 %v810_v47, %v809_v48  ;;  %vm790_vm8 = vmor %vm758_vm10, %vm6228_vm2  ;;  %v4303_v6 = vsel %vm789_vm6, 1.0, %v7462_v38 }
 0x5ba   :  { %vm7466_vm13 = vmmov %vm7464_vm7  ;;  %v4304_v1 = vsel %vm790_vm8, 1.0, %v7462_v38 }
 0x5bb   :  { %v812_v49 = vsel %vm7466_vm13, %v4301_v62, 0.0  ;;  %vm784_vm5 = vmand %vm768_vm4, %vm776_vm0 }
 0x5bc   :  { %v813_v25 = vadd.f32 %v812_v49, %v811_v3  ;;  %vm791_vm9 = vmor %vm759_vm12, %vm6234_vm1 }
 0x5bd   :  { %vm792_vm15 = vmor %vm760_vm11, %vm784_vm5  ;;  %v4305_v7 = vsel %vm791_vm9, 1.0, %v7462_v38 }
 0x5be   :  { %v815_v61 = vadd.f32 %v814_v0, %v813_v25  ;;  %vm7467_vm14 = vmmov %vm7464_vm7  ;;  %v4306_v13 = vsel %vm792_vm15, 1.0, %v7462_v38 }
 0x5bf   :  { %v816_v35 = vsel %vm7467_vm14, %v4303_v6, 0.0  ;;  %vm7468_vm2 = vmmov %vm7464_vm7 }
 0x5c0   :  { %v817_v63 = vadd.f32 %v816_v35, %v815_v61  ;;  %v818_v58 = vsel %vm7468_vm2, %v4304_v1, 0.0  ;;  %vm7469_vm10 = vmmov %vm7468_vm2  ;;  %v7487_v1 = vld [vmem:[#allocation25_spill] sm:$0xff]  ;;  %v7488_v61 = vld [vmem:[#allocation26_spill] sm:$0xff] }
 0x5c1   :  { %v820_v31 = vsel %vm7469_vm10, %v4305_v7, 0.0  ;;  %vm7470_vm1 = vmmov %vm7468_vm2  ;;  %vm7485_vm10 = vcmask 261120   ;;  %v7489_v35 = vld [vmem:[#allocation27_spill] sm:$0xff]  ;;  %v7490_v7 = vld [vmem:[#allocation28_spill] sm:$0xff] }
 0x5c2   :  { %v819_v5 = vadd.f32 %v818_v58, %v817_v63  ;;  %v822_v39 = vsel %vm7470_vm1, %v4306_v13, 0.0  ;;  %vm7471_vm6 = vmmov %vm7470_vm1 }
 0x5c3   :  { %vm7472_vm8 = vmmov %vm7470_vm1 }
 0x5c4   :  { %v821_v14 = vadd.f32 %v820_v31, %v819_v5  ;;  %vm7473_vm13 = vmmov %vm7470_vm1 }
 0x5c5   :  { %vm7474_vm11 = vmmov %vm7470_vm1 }
 0x5c6   :  { %v823_v44 = vadd.f32 %v822_v39, %v821_v14  ;;  %vm7478_vm5 = vmmov %vm7470_vm1 }
 0x5c7   :  { %vm7480_vm9 = vmmov %vm7470_vm1 }
 0x5c8   :  { %v824_v36 = vrot.slane %v823_v44, 4  ;;  %vm7481_vm7 = vmmov %vm7470_vm1 }
 0x5c9   :  { %vm7482_vm15 = vmmov %vm7470_vm1 }
 0x5ca   :  { %v825_v43 = vadd.f32 %v824_v36, %v823_v44  ;;  %vm7483_vm14 = vmmov %vm7470_vm1 }
 0x5cb   :  { %vm7484_vm2 = vmmov %vm7470_vm1 }
 0x5cc   :  { %v826_v32 = vrot.slane %v825_v43, 2  ;;  %vm7486_vm1 = vmmov %vm7485_vm10 }
 0x5ce   :  { %v827_v52 = vadd.f32 %v826_v32, %v825_v43 }
 0x5d0   :  { %v828_v40 = vrot.slane %v827_v52, 1 }
 0x5d2   :  { %v6286_v27 = vadd.f32 %v828_v40, %v827_v52 }
 0x5d4   :  { %vm834_vm0 = vcmp.eq.f32.partialorder %v6286_v27, %v830_v16  ;;  %vm835_vm4 = vcmp.eq.f32.partialorder %v6286_v27, %v831_v26  ;;  %vm836_vm12 = vcmp.eq.f32.partialorder %v6286_v27, %v832_v53  ;;  %vm837_vm3 = vcmp.eq.f32.partialorder %v6286_v27, %v833_v20 }
 0x5d5   :  { %v4307_v37 = vsel %vm834_vm0, 1.0, %v7462_v38  ;;  %v4308_v56 = vsel %vm835_vm4, 1.0, %v7462_v38  ;;  %v4309_v60 = vsel %vm836_vm12, 1.0, %v7462_v38  ;;  %v4310_v54 = vsel %vm837_vm3, 1.0, %v7462_v38  ;;  %vm7491_vm0 = vmmov %vm7486_vm1 }
 0x5d6   :  { %v6302_v23 = vpack.c.bf16 %v4308_v56, %v4307_v37  ;;  %v6304_v59 = vpack.c.bf16 %v4310_v54, %v4309_v60  ;;  %v6315_v57 = vmul.f32 %v4308_v56, %v6162_v50  ;;  %v6318_v18 = vmul.f32 %v4307_v37, %v6162_v50  ;;  %vm7492_vm4 = vmmov %vm7491_vm0 }
 0x5d7   :  { %v6321_v2 = vmul.f32 %v4310_v54, %v6162_v50  ;;  %v6327_v48 = vmul.f32 %v4309_v60, %v6162_v50  ;;  %vm7493_vm12 = vmmov %vm7491_vm0 }
 0x5d8   :  { %4700 = vmatprep.mubr.msk.bf16.mxu0 %vm7471_vm6, %v6302_v23  ;;  %5086 = vmatprep.subr.msk.bf16.mxu1 %vm7472_vm8, %v6302_v23  ;;  %v880_v51 = vsel %vm7473_vm13, %v6302_v23, 0  ;;  %7475 = vst [vmem:[#allocation34_spill] sm:$0xff] %v6315_v57  ;;  %7476 = vst [vmem:[#allocation35_spill] sm:$0xff] %v6318_v18  ;;  %v883_v62 = vsel %vm7481_vm7, %v6304_v59, 0  ;;  %vm7428_vm7 = vmmov 0  }
 0x5d9   :  { %4701 = vmatmul.mubr.msk.bf16.vlgmr.msra.gmra.mrb[16].mxu0 %vm7474_vm11, %v6304_v59  ;;  %4705 = vmatpush3.bf16.xpose.msra.mxu1 %v880_v51  ;;  %7477 = vst [vmem:[#allocation36_spill] sm:$0xff] %v6321_v2  ;;  %7479 = vst [vmem:[#allocation37_spill] sm:$0xff] %v6327_v48 }
 0x5da   :  { %4713 = vmatpush3.bf16.msra.mxu0 %v5819_v9  ;;  %5087 = vmatprep.subr.msk.bf16.mxu1 %vm7478_vm5, %v6304_v59  ;;  %vm7494_vm3 = vmmov %vm7491_vm0 }
 0x5db   :  { %4720 = vmatprep.mubr.msk.bf16.mxu0 %vm7480_vm9, %v6302_v23  ;;  %4714 = vmatprep.subr.bf16.mxu0 %v5869_v24  ;;  %vm7495_vm6 = vmmov %vm7491_vm0 }
 0x5dc   :  { %vm7496_vm8 = vmmov %vm7491_vm0 }
 0x5dd   :  { %vm7497_vm13 = vmmov %vm7491_vm0 }
 0x5de   :  { %4715 = vmatpush3.bf16.msra.mxu0 %v5869_v24  ;;  %vm7498_vm11 = vmmov %vm7491_vm0 }
 0x5df   :  { %4716 = vmatprep.subr.bf16.mxu0 %v5890_v29  ;;  %vm7499_vm5 = vmmov %vm7491_vm0 }
 0x5e0   :  { %vm7500_vm9 = vmmov %vm7491_vm0 }
 0x5e1   :  { %4707 = vmatpush3.bf16.xpose.msra.mxu1 %v883_v62 }
 0x5e2   :  { %4717 = vmatpush3.bf16.msra.mxu0 %v5890_v29  ;;  %4724 = vmatprep.subr.bf16.mxu1 %v5809_v4 }
 0x5e3   :  { %4718 = vmatprep.subr.bf16.mxu0 %v5984_v55 }
 0x5e6   :  { %4719 = vmatpush3.bf16.msra.mxu0 %v5984_v55 }
 0x5e9   :  { %4721 = vmatmul.mubr.msk.bf16.vlgmr.msra.gmra.mrb[20].mxu0 %vm7482_vm15, %v6304_v59  ;;  %vm7502_vm15 = vmmov %vm7491_vm0 }
 0x6ac   :  { %v4702_v9 = vpop.f32.mrb[16].mxu0 }
 0x6ad   :  { %v919_v50 = vpop.f32.mrb[17].mxu0 }
 0x6ae   :  { %v4703_v24 = vpop.f32.mrb[18].mxu0 }
 0x6af   :  { %v935_v47 = vpack.c.bf16 %v4703_v24, %v4702_v9  ;;  %v922_v42 = vpop.f32.mrb[19].mxu0 }
 0x6b0   :  { %v934_v3 = vpack.c.bf16 %v922_v42, %v919_v50 }
 0x6b2   :  { %4708 = vmatprep.mubr.msk.bf16.mxu1 %vm7483_vm14, %v934_v3  ;;  %vm7503_vm14 = vmmov %vm7491_vm0 }
 0x6b3   :  { %4709 = vmatmul.mubr.msk.bf16.vlgmr.msra.gmra.mrb[24].mxu1 %vm7484_vm2, %v935_v47  ;;  %vm7504_vm2 = vmmov %vm7491_vm0 }
 0x6b4   :  { %4725 = vmatpush3.bf16.msra.mxu1 %v5809_v4 }
 0x6b5   :  { %4726 = vmatprep.subr.bf16.mxu1 %v5817_v8 }
 0x6b8   :  { %4727 = vmatpush3.bf16.msra.mxu1 %v5817_v8 }
 0x6b9   :  { %4740 = vmatprep.subr.bf16.mxu1 %v6010_v12 }
 0x6bc   :  { %v4722_v29 = vpop.f32.mrb[20].mxu0 }
 0x6bd   :  { %v1025_v55 = vpop.f32.mrb[21].mxu0 }
 0x6be   :  { %v4723_v49 = vpop.f32.mrb[22].mxu0 }
 0x6bf   :  { %v6348_v6 = vpack.c.bf16 %v4723_v49, %v4722_v29  ;;  %v1028_v25 = vpop.f32.mrb[23].mxu0 }
 0x6c0   :  { %v6350_v0 = vpack.c.bf16 %v1028_v25, %v1025_v55 }
 0x6c2   :  { %4728 = vmatprep.mubr.msk.bf16.mxu1 %vm7485_vm10, %v6350_v0  ;;  %vm7505_vm10 = vmmov %vm7491_vm0 }
 0x6c3   :  { %4729 = vmatmul.mubr.msk.bf16.vlgmr.msra.gmra.mrb[28].mxu1 %vm7486_vm1, %v6348_v6 }
 0x6c4   :  { %4741 = vmatpush3.bf16.msra.mxu1 %v6010_v12 }
 0x6c5   :  { %4742 = vmatprep.subr.bf16.mxu1 %v6012_v15 }
 0x6c8   :  { %4743 = vmatpush3.bf16.msra.mxu1 %v6012_v15 }
 0x6c9   :  { %4744 = vmatprep.subr.bf16.mxu1 %v6017_v41 }
 0x6cc   :  { %4745 = vmatpush3.bf16.msra.mxu1 %v6017_v41 }
 0x6cd   :  { %4746 = vmatprep.subr.bf16.mxu1 %v6021_v46 }
 0x6d0   :  { %4747 = vmatpush3.bf16.msra.mxu1 %v6021_v46 }
 0x6d1   :  { %4748 = vmatprep.subr.bf16.mxu1 %v7487_v1 }
 0x6d4   :  { %4749 = vmatpush3.bf16.msra.mxu1 %v7487_v1 }
 0x6d5   :  { %4750 = vmatprep.subr.bf16.mxu1 %v7488_v61 }
 0x6d8   :  { %4751 = vmatpush3.bf16.msra.mxu1 %v7488_v61 }
 0x6d9   :  { %4752 = vmatprep.subr.bf16.mxu1 %v7489_v35 }
 0x6dc   :  { %4753 = vmatpush3.bf16.msra.mxu1 %v7489_v35 }
 0x6dd   :  { %4754 = vmatprep.subr.bf16.mxu1 %v7490_v7 }
 0x6e0   :  { %4755 = vmatpush3.bf16.msra.mxu1 %v7490_v7 }
 0x6e1   :  { %4792 = vmatprep.subr.bf16.mxu1 %v7462_v38 }
 0x786   :  { %v6372_v63 = vpop.f32.mrb[24].mxu1 }
 0x787   :  { %v6374_v58 = vpop.f32.mrb[25].mxu1  ;;  %v1042_v39 = vadd.f32 %v6372_v63, %v5893_v30 }
 0x788   :  { %v1040_v13 = vadd.f32 %v5853_v19, %v6374_v58  ;;  %v6378_v5 = vpop.f32.mrb[26].mxu1 }
 0x789   :  { %v1451_v31 = vpack.c.bf16 %v6378_v5, %v6372_v63  ;;  %v6382_v14 = vpop.f32.mrb[27].mxu1  ;;  %v1043_v32 = vadd.f32 %v6378_v5, %v5910_v34  ;;  %v1050_v20 = vsel %vm7493_vm12, %v1042_v39, 0.0  ;;  %v4325_v5 = vld [vmem:[%s7394_s5 + $0x1] ss:$0 sm:$0xff] }
 0x78a   :  { %v1041_v44 = vadd.f32 %v5907_v33, %v6382_v14  ;;  %v1450_v36 = vpack.c.bf16 %v6382_v14, %v6374_v58  ;;  %v1044_v43 = vsel %vm7491_vm0, %v1040_v13, 0.0 }
 0x78b   :  { %1045 = vadd.xlane.f32.xlu0 %v1044_v43  ;;  %v1053_v56 = vsel %vm7494_vm3, %v1043_v32, 0.0 }
 0x78c   :  { %v1047_v52 = vsel %vm7492_vm4, %v1041_v44, 0.0  ;;  %vm7506_vm4 = vcmp.lt.s32.totalorder %v5864_v22, %v5823_v11 }
 0x78d   :  { %1048 = vadd.xlane.f32.xlu1 %v1047_v52  ;;  %v1064_v40 = vadd.f32 %v1047_v52, %v1044_v43 }
 0x78f   :  { %1051 = vadd.xlane.f32.xlu0 %v1050_v20  ;;  %v1065_v37 = vadd.f32 %v1064_v40, %v1050_v20 }
 0x791   :  { %1054 = vadd.xlane.f32.xlu1 %v1053_v56  ;;  %v1066_v60 = vadd.f32 %v1065_v37, %v1053_v56 }
 0x793   :  { %v1067_v47 = vrot.slane %v1066_v60, 4 }
 0x795   :  { %v1068_v42 = vadd.f32 %v1067_v47, %v1066_v60 }
 0x796   :  { %v4730_v54 = vpop.f32.mrb[28].mxu1 }
 0x797   :  { %v1125_v51 = vpop.f32.mrb[29].mxu1  ;;  %v1069_v3 = vrot.slane %v1068_v42, 2 }
 0x798   :  { %v4731_v62 = vpop.f32.mrb[30].mxu1 }
 0x799   :  { %v1143_v9 = vpack.c.bf16 %v4731_v62, %v4730_v54  ;;  %v1128_v50 = vpop.f32.mrb[31].mxu1  ;;  %v1070_v29 = vadd.f32 %v1069_v3, %v1068_v42 }
 0x79a   :  { %v1142_v24 = vpack.c.bf16 %v1128_v50, %v1125_v51 }
 0x79b   :  { %v1071_v55 = vrot.slane %v1070_v29, 1 }
 0x79c   :  { %4732 = vmatprep.subr.bf16.mxu0 %v1142_v24 }
 0x79d   :  { %4733 = vmatpush3.bf16.msra.mxu0 %v1142_v24  ;;  %v1072_v49 = vadd.f32 %v1071_v55, %v1070_v29 }
 0x79e   :  { %4734 = vmatprep.subr.bf16.mxu0 %v1143_v9 }
 0x79f   :  { %v1073_v52 = vmax.f32 %v1072_v49, 1e-12 }
 0x7a1   :  { %4735 = vmatpush3.bf16.msra.mxu0 %v1143_v9 }
 0x818   :  { %v1046_v25 = vpop.xlane.xlu0 %1045 }
 0x819   :  { %v1056_v43 = vmax.f32 %v1046_v25, 1e-12 }
 0x81a   :  { %v1049_v40 = vpop.xlane.xlu1 %1048 }
 0x81b   :  { %5150 = vrsqrt.f32 %v1056_v43  ;;  %v1057_v20 = vmax.f32 %v1049_v40, 1e-12 }
 0x81c   :  { %v1052_v37 = vpop.xlane.xlu0 %1051 }
 0x81d   :  { %5152 = vrsqrt.f32 %v1057_v20  ;;  %v1058_v56 = vmax.f32 %v1052_v37, 1e-12 }
 0x81e   :  { %5154 = vrsqrt.f32 %v1073_v52  ;;  %v1055_v54 = vpop.xlane.xlu1 %1054 }
 0x81f   :  { %5156 = vrsqrt.f32 %v1058_v56  ;;  %v1059_v51 = vmax.f32 %v1055_v54, 1e-12 }
 0x821   :  { %5158 = vrsqrt.f32 %v1059_v51 }
 0x825   :  { %v5151_v62 = vpop.eup %5150 }
 0x826   :  { %v1075_v60 = vmul.f32 %v5151_v62, %v1040_v13 }
 0x827   :  { %v5153_v9 = vpop.eup %5152 }
 0x828   :  { %v5155_v50 = vpop.eup %5154  ;;  %v1076_v24 = vmul.f32 %v5153_v9, %v1041_v44 }
 0x829   :  { %v5157_v47 = vpop.eup %5156  ;;  %v1079_v3 = vmul.f32 %v5155_v50, %v1075_v60 }
 0x82a   :  { %v1077_v42 = vmul.f32 %v5157_v47, %v1042_v39  ;;  %v1080_v29 = vmul.f32 %v5155_v50, %v1076_v24 }
 0x82b   :  { %v5159_v55 = vpop.eup %5158 }
 0x82c   :  { %v1078_v49 = vmul.f32 %v5159_v55, %v1043_v32  ;;  %v1140_v25 = vpack.c.bf16 %v1080_v29, %v1079_v3  ;;  %v1081_v43 = vmul.f32 %v5155_v50, %v1077_v42 }
 0x82e   :  { %4736 = vmatprep.mubr.msk.bf16.mxu0 %vm7495_vm6, %v1140_v25  ;;  %v1082_v52 = vmul.f32 %v5155_v50, %v1078_v49 }
 0x830   :  { %v1141_v40 = vpack.c.bf16 %v1082_v52, %v1081_v43 }
 0x832   :  { %4737 = vmatmul.mubr.msk.bf16.vlgmr.msra.gmra.mrb[24].mxu0 %vm7496_vm8, %v1141_v40 }
 0x833   :  { %4764 = vmatprep.mubr.msk.bf16.mxu0 %vm7497_vm13, %v1140_v25 }
 0x905   :  { %v4738_v13 = vpop.f32.mrb[24].mxu0 }
 0x906   :  { %v1184_v20 = vpop.f32.mrb[25].mxu0  ;;  %v1201_v44 = vmax.f32 %v4738_v13, 0.0 }
 0x907   :  { %v4739_v37 = vpop.f32.mrb[26].mxu0  ;;  %v1199_v54 = vmax.f32 %v1184_v20, 0.0 }
 0x908   :  { %v1202_v56 = vmax.f32 %v4739_v37, 0.0  ;;  %v1187_v39 = vpop.f32.mrb[27].mxu0 }
 0x909   :  { %v1200_v51 = vmax.f32 %v1187_v39, 0.0 }
 0x90a   :  { %v1204_v62 = vpack.c.bf16 %v1202_v56, %v1201_v44 }
 0x90b   :  { %v1203_v32 = vpack.c.bf16 %v1200_v51, %v1199_v54 }
 0x90d   :  { %4756 = vmatprep.mubr.bf16.mxu1 %v1203_v32 }
 0x90e   :  { %4757 = vmatmul.mubr.bf16.vlgmr.msra.gmra.mrb[32].mxu1 %v1204_v62 }
 0x90f   :  { %4794 = vmatprep.mubr.msk.bf16.mxu1 %vm7428_vm7, %v7462_v38 }
 0x9e1   :  { %v4758_v60 = vpop.f32.mrb[32].mxu1 }
 0x9e2   :  { %v1239_v9 = vpop.f32.mrb[33].mxu1 }
 0x9e3   :  { %v4759_v50 = vpop.f32.mrb[34].mxu1 }
 0x9e4   :  { %v1255_v24 = vpack.c.bf16 %v4759_v50, %v4758_v60  ;;  %v1242_v47 = vpop.f32.mrb[35].mxu1 }
 0x9e5   :  { %v1254_v42 = vpack.c.bf16 %v1242_v47, %v1239_v9 }
 0x9e7   :  { %4760 = vmatprep.subr.bf16.mxu0 %v1254_v42 }
 0x9e8   :  { %4761 = vmatpush3.bf16.msra.mxu0 %v1254_v42 }
 0x9e9   :  { %4762 = vmatprep.subr.bf16.mxu0 %v1255_v24 }
 0x9ec   :  { %4763 = vmatpush3.bf16.msra.mxu0 %v1255_v24 }
 0x9ef   :  { %4765 = vmatmul.mubr.msk.bf16.vlgmr.msra.gmra.mrb[28].mxu0 %vm7498_vm11, %v1141_v40 }
 0x9f0   :  { %4772 = vmatprep.mubr.msk.bf16.mxu0 %vm7499_vm5, %v1140_v25  ;;  %vm7509_vm5 = vcmp.lt.s32.totalorder %v5821_v10, %v5823_v11 }
 0xac2   :  { %v4766_v3 = vpop.f32.mrb[28].mxu0 }
 0xac3   :  { %v1290_v29 = vpop.f32.mrb[29].mxu0 }
 0xac4   :  { %v4767_v55 = vpop.f32.mrb[30].mxu0 }
 0xac5   :  { %v6401_v49 = vpack.c.bf16 %v4767_v55, %v4766_v3  ;;  %v1293_v43 = vpop.f32.mrb[31].mxu0 }
 0xac6   :  { %v6403_v52 = vpack.c.bf16 %v1293_v43, %v1290_v29  ;;  %v3683_v13 = vadd.f32 %v1293_v43, %v1290_v29 }
 0xac8   :  { %v3684_v20 = vadd.f32 %v4766_v3, %v3683_v13  ;;  %4768 = vmatprep.subr.bf16.mxu0 %v6403_v52 }
 0xac9   :  { %4769 = vmatpush3.bf16.msra.mxu0 %v6403_v52 }
 0xaca   :  { %v3685_v37 = vadd.f32 %v4767_v55, %v3684_v20  ;;  %4770 = vmatprep.subr.bf16.mxu0 %v6401_v49 }
 0xacc   :  { %v3686_v44 = vrot.slane %v3685_v37, 4 }
 0xacd   :  { %4771 = vmatpush3.bf16.msra.mxu0 %v6401_v49 }
 0xace   :  { %v3687_v25 = vadd.f32 %v3686_v44, %v3685_v37  ;;  %4776 = vmatprep.subr.bf16.mxu0 %v7462_v38 }
 0xad0   :  { %v3688_v56 = vrot.slane %v3687_v25, 2  ;;  %4773 = vmatmul.mubr.msk.bf16.vlgmr.msra.gmra.mrb[32].mxu0 %vm7500_vm9, %v1141_v40 }
 0xad1   :  { %4777 = vmatpush3.bf16.msra.mxu0 %v1450_v36  ;;  %4780 = vmatprep.mubr.msk.bf16.mxu0 %vm7428_vm7, %v7462_v38 }
 0xad2   :  { %v3689_v39 = vadd.f32 %v3688_v56, %v3687_v25  ;;  %4778 = vmatprep.subr.bf16.mxu0 %v7462_v38 }
 0xad4   :  { %v3690_v54 = vrot.slane %v3689_v39, 1 }
 0xad5   :  { %4779 = vmatpush3.bf16.msra.mxu0 %v1451_v31 }
 0xad6   :  { %v3691_v51 = vadd.f32 %v3690_v54, %v3689_v39  ;;  %4784 = vmatprep.subr.bf16.mxu0 %v7462_v38 }
 0xad8   :  { %v3692_v62 = vmul.f32 0.03125, %v3691_v51 }
 0xada   :  { %v3694_v32 = vsub.f32 %v1293_v43, %v3692_v62  ;;  %v3693_v60 = vsub.f32 %v1290_v29, %v3692_v62  ;;  %v3695_v9 = vsub.f32 %v4766_v3, %v3692_v62  ;;  %v3696_v40 = vsub.f32 %v4767_v55, %v3692_v62 }
 0xadc   :  { %v3735_v50 = vmul.f32 %v3694_v32, %v3694_v32  ;;  %v3734_v24 = vmul.f32 %v3693_v60, %v3693_v60  ;;  %v6419_v58 = vpack.c.bf16 %v3694_v32, %v3693_v60  ;;  %v6421_v14 = vpack.c.bf16 %v3696_v40, %v3695_v9 }
 0xadd   :  { %v3736_v47 = vmul.f32 %v3695_v9, %v3695_v9  ;;  %v3737_v42 = vmul.f32 %v3696_v40, %v3696_v40 }
 0xade   :  { %v3738_v36 = vadd.f32 %v3735_v50, %v3734_v24 }
 0xae0   :  { %v3739_v13 = vadd.f32 %v3738_v36, %v3736_v47 }
 0xae2   :  { %v6423_v63 = vadd.f32 %v3739_v13, %v3737_v42 }
 0xae4   :  { %7501 = vst [vmem:[#allocation25_spill] sm:$0xff] %v6423_v63 }
 0xba3   :  { %v4774_v31 = vpop.f32.mrb[32].mxu0 }
 0xba4   :  { %v1342_v29 = vpop.f32.mrb[33].mxu0  ;;  %v1363_v37 = vmul.f32 %v4774_v31, %v4325_v5 }
 0xba5   :  { %v1361_v3 = vmul.f32 %v4325_v5, %v1342_v29  ;;  %v4775_v55 = vpop.f32.mrb[34].mxu0 }
 0xba6   :  { %v1345_v43 = vpop.f32.mrb[35].mxu0  ;;  %v1364_v44 = vmul.f32 %v4775_v55, %v4325_v5 }
 0xba7   :  { %v1362_v20 = vmul.f32 %v4325_v5, %v1345_v43  ;;  %1365 = vadd.xlane.f32.xlu0 %v1361_v3 }
 0xba9   :  { %1367 = vadd.xlane.f32.xlu1 %v1362_v20 }
 0xbab   :  { %1369 = vadd.xlane.f32.xlu0 %v1363_v37 }
 0xbad   :  { %1371 = vadd.xlane.f32.xlu1 %v1364_v44 }
 0xc34   :  { %v1366_v25 = vpop.xlane.xlu0 %1365 }
 0xc35   :  { %5160 = vtanh.f32 %v1366_v25 }
 0xc36   :  { %v1368_v56 = vpop.xlane.xlu1 %1367 }
 0xc37   :  { %5162 = vtanh.f32 %v1368_v56 }
 0xc38   :  { %v1370_v39 = vpop.xlane.xlu0 %1369 }
 0xc39   :  { %5164 = vtanh.f32 %v1370_v39 }
 0xc3a   :  { %v1372_v54 = vpop.xlane.xlu1 %1371 }
 0xc3b   :  { %5166 = vtanh.f32 %v1372_v54 }
 0xc3f   :  { %v5161_v51 = vpop.eup %5160 }
 0xc40   :  { %v1377_v62 = vmul.f32 %v5161_v51, %v5853_v19 }
 0xc41   :  { %v5163_v32 = vpop.eup %5162 }
 0xc42   :  { %v1378_v60 = vmul.f32 %v5163_v32, %v5907_v33  ;;  %v1381_v40 = vsel %vm7502_vm15, %v1377_v62, 0.0 }
 0xc43   :  { %v5165_v9 = vpop.eup %5164 }
 0xc44   :  { %v1382_v50 = vsel %vm7503_vm14, %v1378_v60, 0.0  ;;  %v1379_v24 = vmul.f32 %v5165_v9, %v5893_v30  ;;  %v7507_v30 = vmov 0  ;;  %vm7510_vm14 = vcmp.lt.s32.totalorder %v5861_v21, %v5823_v11 }
 0xc45   :  { %v5167_v36 = vpop.eup %5166  ;;  %v1383_v47 = vadd.f32 %v1382_v50, %v1381_v40 }
 0xc46   :  { %v1384_v42 = vsel %vm7504_vm2, %v1379_v24, 0.0  ;;  %v1380_v13 = vmul.f32 %v5167_v36, %v5910_v34 }
 0xc47   :  { %v1385_v5 = vadd.f32 %v1384_v42, %v1383_v47 }
 0xc48   :  { %v1386_v31 = vsel %vm7505_vm10, %v1380_v13, 0.0 }
 0xc49   :  { %v1387_v29 = vadd.f32 %v1386_v31, %v1385_v5 }
 0xc4b   :  { %v1388_v3 = vrot.slane %v1387_v29, 4 }
 0xc4d   :  { %v1389_v55 = vadd.f32 %v1388_v3, %v1387_v29 }
 0xc4f   :  { %v1390_v43 = vrot.slane %v1389_v55, 2 }
 0xc51   :  { %v1391_v20 = vadd.f32 %v1390_v43, %v1389_v55 }
 0xc53   :  { %v1392_v37 = vrot.slane %v1391_v20, 1 }
 0xc55   :  { %v1393_v44 = vadd.f32 %v1392_v37, %v1391_v20 }
 0xc57   :  { %vm1397_vm1 = vcmp.gt.f32.partialorder %v5167_v36, %v1393_v44  ;;  %vm1401_vm0 = vcmp.eq.f32.partialorder %v5167_v36, %v1393_v44  ;;  %vm1398_vm3 = vcmp.eq.f32.partialorder %v5161_v51, %v1393_v44  ;;  %vm1399_vm6 = vcmp.eq.f32.partialorder %v5163_v32, %v1393_v44 }
 0xc58   :  { %vm1405_vm12 = vmand %vm1401_vm0, %vm7506_vm4  ;;  %vm1400_vm13 = vcmp.eq.f32.partialorder %v5165_v9, %v1393_v44  ;;  %vm1394_vm11 = vcmp.gt.f32.partialorder %v5161_v51, %v1393_v44  ;;  %vm1395_vm15 = vcmp.gt.f32.partialorder %v5163_v32, %v1393_v44  ;;  %vm1396_vm10 = vcmp.gt.f32.partialorder %v5165_v9, %v1393_v44 }
 0xc59   :  { %vm6443_vm8 = vmor %vm1397_vm1, %vm1405_vm12  ;;  %vm7511_vm0 = vcmp.lt.s32.totalorder %v5849_v17, %v5823_v11 }
 0xc5a   :  { %v7508_v30 = vsel %vm6443_vm8, 4294967295, %v7507_v30  ;;  %vm1402_vm9 = vmand %vm1398_vm3, %vm7509_vm5  ;;  %vm7512_vm8 = vcmask 261120  }
 0xc5b   :  { %vm1403_vm2 = vmand %vm1399_vm6, %vm7510_vm14  ;;  %vm7514_vm6 = vnez %v7508_v30 }
 0xc5c   :  { %vm1404_vm4 = vmand %vm1400_vm13, %vm7511_vm0  ;;  %v4329_v51 = vsel %vm7514_vm6, 1.0, %v7462_v38  ;;  %vm7437_vm0 = vcmask 130048  }
 0xc5d   :  { %vm1406_vm1 = vmor %vm1394_vm11, %vm1402_vm9 }
 0xc5e   :  { %vm1407_vm12 = vmor %vm1395_vm15, %vm1403_vm2  ;;  %v4326_v34 = vsel %vm1406_vm1, 1.0, %v7462_v38  ;;  %vm7521_vm15 = vmmov 0  }
 0xc5f   :  { %vm1408_vm7 = vmor %vm1396_vm10, %vm1404_vm4  ;;  %v4327_v25 = vsel %vm1407_vm12, 1.0, %v7462_v38  ;;  %v1418_v56 = vsel %vm7512_vm8, %v4326_v34, 0.0  ;;  %vm7529_vm4 = vcmask 523264  }
 0xc60   :  { %v4328_v39 = vsel %vm1408_vm7, 1.0, %v7462_v38  ;;  %vm7513_vm3 = vmmov %vm7512_vm8 }
 0xc61   :  { %v1419_v54 = vsel %vm7513_vm3, %v4327_v25, 0.0  ;;  %vm7515_vm5 = vmmov %vm7513_vm3 }
 0xc62   :  { %v1420_v62 = vadd.f32 %v1419_v54, %v1418_v56  ;;  %v1421_v11 = vsel %vm7515_vm5, %v4328_v39, 0.0  ;;  %vm7516_vm13 = vmmov %vm7513_vm3 }
 0xc63   :  { %v1423_v60 = vsel %vm7516_vm13, %v4329_v51, 0.0  ;;  %vm7519_vm11 = vmmov %vm7513_vm3 }
 0xc64   :  { %v1422_v32 = vadd.f32 %v1421_v11, %v1420_v62  ;;  %vm7520_vm9 = vmmov %vm7513_vm3 }
 0xc65   :  { %vm7522_vm14 = vmmov %vm7513_vm3 }
 0xc66   :  { %v1424_v9 = vadd.f32 %v1423_v60, %v1422_v32  ;;  %vm7523_vm2 = vmmov %vm7513_vm3 }
 0xc67   :  { %vm7524_vm10 = vmmov %vm7523_vm2 }
 0xc68   :  { %v1425_v40 = vrot.slane %v1424_v9, 4  ;;  %vm7530_vm3 = vmmov %vm7529_vm4 }
 0xc69   :  { %vm7531_vm6 = vmmov %vm7530_vm3 }
 0xc6a   :  { %v1426_v50 = vadd.f32 %v1425_v40, %v1424_v9 }
 0xc6c   :  { %v1427_v24 = vrot.slane %v1426_v50, 2 }
 0xc6e   :  { %v1428_v36 = vadd.f32 %v1427_v24, %v1426_v50 }
 0xc70   :  { %v1429_v47 = vrot.slane %v1428_v36, 1 }
 0xc72   :  { %v6466_v42 = vadd.f32 %v1429_v47, %v1428_v36 }
 0xc74   :  { %vm1431_vm7 = vcmp.eq.f32.partialorder %v6466_v42, %v830_v16  ;;  %vm1432_vm8 = vcmp.eq.f32.partialorder %v6466_v42, %v831_v26 }
 0xc75   :  { %v4330_v13 = vsel %vm1431_vm7, 1.0, %v7462_v38  ;;  %v4331_v5 = vsel %vm1432_vm8, 1.0, %v7462_v38  ;;  %vm7533_vm7 = vmmov %vm7530_vm3 }
 0xc76   :  { %v6476_v31 = vpack.c.bf16 %v4331_v5, %v4330_v13  ;;  %v6478_v29 = vmul.f32 %v4331_v5, %v1393_v44  ;;  %v6480_v3 = vmul.f32 %v4330_v13, %v1393_v44  ;;  %vm7534_vm8 = vmmov %vm7530_vm3 }
 0xc78   :  { %7517 = vst [vmem:[#allocation26_spill] sm:$0xff] %v6478_v29  ;;  %7518 = vst [vmem:[#allocation27_spill] sm:$0xff] %v6480_v3  ;;  %4781 = vmatmul.mubr.msk.bf16.vlgmr.msra.gmra.mrb[36].mxu0 %vm7519_vm11, %v6476_v31  ;;  %v1453_v10 = vsel %vm7520_vm9, %v6476_v31, 0 }
 0xc79   :  { %4785 = vmatpush3.bf16.msra.mxu0 %v6350_v0  ;;  %4793 = vmatpush3.bf16.xpose.msra.mxu1 %v1453_v10  ;;  %vm7535_vm11 = vmmov %vm7530_vm3 }
 0xc7a   :  { %4786 = vmatprep.subr.bf16.mxu0 %v7462_v38  ;;  %4788 = vmatprep.mubr.msk.bf16.mxu0 %vm7521_vm15, %v7462_v38 }
 0xc7b   :  { %4806 = vmatprep.subr.bf16.mxu1 %v7462_v38 }
 0xc7d   :  { %4787 = vmatpush3.bf16.msra.mxu0 %v6348_v6 }
 0xc7e   :  { %4798 = vmatprep.subr.bf16.mxu0 %v7462_v38 }
 0xc80   :  { %4789 = vmatmul.mubr.msk.bf16.vlgmr.msra.gmra.mrb[40].mxu0 %vm7522_vm14, %v6476_v31 }
 0xc81   :  { %4799 = vmatpush3.bf16.msra.mxu0 %v5809_v4  ;;  %4802 = vmatprep.mubr.msk.bf16.mxu0 %vm7521_vm15, %v7462_v38 }
 0xc82   :  { %4800 = vmatprep.subr.bf16.mxu0 %v7462_v38 }
 0xc85   :  { %4801 = vmatpush3.bf16.msra.mxu0 %v5817_v8 }
 0xc86   :  { %4812 = vmatprep.subr.bf16.mxu0 %v7462_v38 }
 0xd4b   :  { %v1489_v16 = vpop.f32.mrb[36].mxu0 }
 0xd4c   :  { %v4782_v26 = vpop.f32.mrb[37].mxu0 }
 0xd4d   :  { %v1492_v0 = vpop.f32.mrb[38].mxu0 }
 0xd4e   :  { %v1496_v6 = vpack.c.bf16 %v1492_v0, %v1489_v16  ;;  %v4783_v55 = vpop.f32.mrb[39].mxu0 }
 0xd50   :  { %4795 = vmatmul.mubr.msk.bf16.vlgmr.msra.gmra.mrb[36].mxu1 %vm7523_vm2, %v1496_v6 }
 0xd51   :  { %4808 = vmatprep.mubr.msk.bf16.mxu1 %vm7521_vm15, %v7462_v38 }
 0xd53   :  { %v1531_v4 = vpop.f32.mrb[40].mxu0 }
 0xd54   :  { %v4790_v43 = vpop.f32.mrb[41].mxu0 }
 0xd55   :  { %v1534_v20 = vpop.f32.mrb[42].mxu0 }
 0xd56   :  { %v1606_v37 = vpack.c.bf16 %v1534_v20, %v1531_v4  ;;  %v4791_v44 = vpop.f32.mrb[43].mxu0 }
 0xd57   :  { %v1786_v44 = vld [vmem:[#allocation8] sm:$0xff] }
 0xd58   :  { %4803 = vmatmul.mubr.msk.bf16.vlgmr.msra.gmra.mrb[44].mxu0 %vm7524_vm10, %v1606_v37 }
 0xd59   :  { %4813 = vmatpush3.bf16.msra.mxu0 %v6010_v12  ;;  %4828 = vmatprep.mubr.msk.bf16.mxu0 %vm7521_vm15, %v7462_v38 }
 0xd5a   :  { %4814 = vmatprep.subr.bf16.mxu0 %v7462_v38 }
 0xd5d   :  { %4815 = vmatpush3.bf16.msra.mxu0 %v6012_v15 }
 0xd5e   :  { %4816 = vmatprep.subr.bf16.mxu0 %v7462_v38 }
 0xd61   :  { %4817 = vmatpush3.bf16.msra.mxu0 %v6017_v41 }
 0xd62   :  { %4818 = vmatprep.subr.bf16.mxu0 %v7462_v38 }
 0xd65   :  { %4819 = vmatpush3.bf16.msra.mxu0 %v6021_v46 }
 0xd66   :  { %4820 = vmatprep.subr.bf16.mxu0 %v7462_v38 }
 0xd69   :  { %4821 = vmatpush3.bf16.msra.mxu0 %v7487_v1 }
 0xd6a   :  { %4822 = vmatprep.subr.bf16.mxu0 %v7462_v38 }
 0xd6d   :  { %4823 = vmatpush3.bf16.msra.mxu0 %v7488_v61 }
 0xd6e   :  { %4824 = vmatprep.subr.bf16.mxu0 %v7462_v38 }
 0xd71   :  { %4825 = vmatpush3.bf16.msra.mxu0 %v7489_v35 }
 0xd72   :  { %4826 = vmatprep.subr.bf16.mxu0 %v7462_v38 }
 0xd75   :  { %4827 = vmatpush3.bf16.msra.mxu0 %v7490_v7 }
 0xe23   :  { %v1575_v8 = vpop.f32.mrb[36].mxu1 }
 0xe24   :  { %v1576_v12 = vadd.f32 %v5853_v19, %v1575_v8  ;;  %v4796_v15 = vpop.f32.mrb[37].mxu1  ;;  %v1787_v8 = vld [vmem:[#allocation8 + $0x8] sm:$0xff] }
 0xe25   :  { %v1578_v41 = vpop.f32.mrb[38].mxu1 }
 0xe26   :  { %v1579_v46 = vadd.f32 %v5907_v33, %v1578_v41  ;;  %v4797_v1 = vpop.f32.mrb[39].mxu1  ;;  %v1583_v30 = vsel %vm7437_vm0, %v1576_v12, 0.0 }
 0xe27   :  { %1584 = vadd.xlane.f32.xlu0 %v1583_v30 }
 0xe28   :  { %v1586_v61 = vsel %vm7437_vm0, %v1579_v46, 0.0 }
 0xe29   :  { %1587 = vadd.xlane.f32.xlu1 %v1586_v61  ;;  %v1593_v35 = vadd.f32 %v1586_v61, %v1583_v30  ;;  %v1788_v61 = vld [vmem:[#allocation8 + $0x10] sm:$0xff] }
 0xe2b   :  { %v1644_v34 = vpop.f32.mrb[44].mxu0  ;;  %v1594_v19 = vrot.slane %v1593_v35, 4 }
 0xe2c   :  { %v4804_v25 = vpop.f32.mrb[45].mxu0 }
 0xe2d   :  { %v1647_v56 = vpop.f32.mrb[46].mxu0  ;;  %v1595_v54 = vadd.f32 %v1594_v19, %v1593_v35  ;;  %v1789_v35 = vld [vmem:[#allocation8 + $0x18] sm:$0xff]  ;;  %v1790_v25 = vld [vmem:[#allocation8 + $0x20] sm:$0xff]  ;;  %v1792_v19 = vld [vmem:[#allocation8 + $0x30] sm:$0xff] }
 0xe2e   :  { %v1652_v7 = vpack.c.bf16 %v1647_v56, %v1644_v34  ;;  %v4805_v39 = vpop.f32.mrb[47].mxu0  ;;  %v1821_v34 = vpack.c.bf16 %v1789_v35, %v1788_v61  ;;  %v1791_v56 = vld [vmem:[#allocation8 + $0x28] sm:$0xff]  ;;  %v2097_v61 = vld [vmem:[#allocation8 + $0xd8] sm:$0xff] }
 0xe2f   :  { %v1596_v51 = vrot.slane %v1595_v54, 2  ;;  %v1822_v39 = vpack.c.bf16 %v1791_v56, %v1790_v25  ;;  %v2099_v25 = vld [vmem:[#allocation8 + $0xe8] sm:$0xff] }
 0xe30   :  { %4807 = vmatpush3.bf16.msra.mxu1 %v1652_v7  ;;  %v7525_v7 = vld [vmem:[#allocation30_spill] sm:$0xff] }
 0xe31   :  { %4832 = vmatprep.subr.bf16.mxu1 %v7462_v38  ;;  %v1597_v33 = vadd.f32 %v1596_v51, %v1595_v54  ;;  %v1793_v54 = vld [vmem:[#allocation8 + $0x38] sm:$0xff] }
 0xe32   :  { %v1823_v51 = vpack.c.bf16 %v1793_v54, %v1792_v19  ;;  %v2101_v19 = vld [vmem:[#allocation8 + $0xf8] sm:$0xff] }
 0xe33   :  { %v1598_v62 = vrot.slane %v1597_v33, 1 }
 0xe35   :  { %v1599_v11 = vadd.f32 %v1598_v62, %v1597_v33  ;;  %v1794_v33 = vld [vmem:[#allocation8 + $0x40] sm:$0xff]  ;;  %v1795_v62 = vld [vmem:[#allocation8 + $0x48] sm:$0xff] }
 0xe37   :  { %v1600_v40 = vmax.f32 %v1599_v11, 1e-12  ;;  %v1824_v11 = vpack.c.bf16 %v1795_v62, %v1794_v33  ;;  %v2314_v33 = vld [vmem:[#allocation8 + $0x108] sm:$0xff] }
 0xeb4   :  { %v1585_v32 = vpop.xlane.xlu0 %1584 }
 0xeb5   :  { %v1589_v60 = vmax.f32 %v1585_v32, 1e-12  ;;  %v1796_v32 = vld [vmem:[#allocation8 + $0x50] sm:$0xff] }
 0xeb6   :  { %v1588_v9 = vpop.xlane.xlu1 %1587 }
 0xeb7   :  { %5168 = vrsqrt.f32 %v1589_v60  ;;  %v1590_v50 = vmax.f32 %v1588_v9, 1e-12  ;;  %v1797_v60 = vld [vmem:[#allocation8 + $0x58] sm:$0xff] }
 0xeb8   :  { %v1825_v9 = vpack.c.bf16 %v1797_v60, %v1796_v32  ;;  %v2316_v32 = vld [vmem:[#allocation8 + $0x118] sm:$0xff] }
 0xeb9   :  { %5170 = vrsqrt.f32 %v1590_v50  ;;  %v1799_v50 = vld [vmem:[#allocation8 + $0x68] sm:$0xff] }
 0xeba   :  { %5172 = vrsqrt.f32 %v1600_v40  ;;  %v1798_v40 = vld [vmem:[#allocation8 + $0x60] sm:$0xff] }
 0xec1   :  { %v5169_v24 = vpop.eup %5168 }
 0xec2   :  { %v1602_v36 = vmul.f32 %v5169_v24, %v1576_v12  ;;  %v1826_v24 = vpack.c.bf16 %v1799_v50, %v1798_v40  ;;  %v2318_v40 = vld [vmem:[#allocation8 + $0x128] sm:$0xff] }
 0xec3   :  { %v5171_v47 = vpop.eup %5170 }
 0xec4   :  { %v1603_v13 = vmul.f32 %v5171_v47, %v1579_v46  ;;  %v5173_v5 = vpop.eup %5172  ;;  %v1820_v46 = vpack.c.bf16 %v1787_v8, %v1786_v44  ;;  %v1801_v47 = vld [vmem:[#allocation8 + $0x78] sm:$0xff]  ;;  %v2092_v44 = vld [vmem:[#allocation8 + $0xb0] sm:$0xff] }
 0xec5   :  { %v1604_v10 = vmul.f32 %v5173_v5, %v1602_v36  ;;  %v1800_v36 = vld [vmem:[#allocation8 + $0x70] sm:$0xff]  ;;  %v2093_v8 = vld [vmem:[#allocation8 + $0xb8] sm:$0xff] }
 0xec6   :  { %v1605_v16 = vmul.f32 %v5173_v5, %v1603_v13  ;;  %v1827_v13 = vpack.c.bf16 %v1801_v47, %v1800_v36  ;;  %v2086_v5 = vld [vmem:[#allocation8 + $0x80] sm:$0xff]  ;;  %v2320_v36 = vld [vmem:[#allocation8 + $0x138] sm:$0xff] }
 0xec8   :  { %v1651_v26 = vpack.c.bf16 %v1605_v16, %v1604_v10  ;;  %v2087_v10 = vld [vmem:[#allocation8 + $0x88] sm:$0xff] }
 0xec9   :  { %v2121_v16 = vpack.c.bf16 %v2087_v10, %v2086_v5  ;;  %v2322_v5 = vld [vmem:[#allocation8 + $0x148] sm:$0xff] }
 0xeca   :  { %4809 = vmatmul.mubr.msk.bf16.vlgmr.msra.gmra.mrb[40].mxu1 %vm7437_vm0, %v1651_v26 }
 0xecb   :  { %4834 = vmatprep.mubr.msk.bf16.mxu1 %vm7521_vm15, %v7462_v38 }
 0xf9d   :  { %v1690_v0 = vpop.f32.mrb[40].mxu1 }
 0xf9e   :  { %v4810_v6 = vpop.f32.mrb[41].mxu1  ;;  %v1697_v4 = vmax.f32 %v1690_v0, 0.0  ;;  %v2089_v0 = vld [vmem:[#allocation8 + $0x98] sm:$0xff] }
 0xf9f   :  { %v1693_v55 = vpop.f32.mrb[42].mxu1 }
 0xfa0   :  { %v1698_v43 = vmax.f32 %v1693_v55, 0.0  ;;  %v4811_v20 = vpop.f32.mrb[43].mxu1  ;;  %v2090_v55 = vld [vmem:[#allocation8 + $0xa0] sm:$0xff] }
 0xfa1   :  { %v7527_v20 = vld [vmem:[#allocation32_spill] sm:$0xff] }
 0xfa2   :  { %v1699_v37 = vpack.c.bf16 %v1698_v43, %v1697_v4  ;;  %v2091_v4 = vld [vmem:[#allocation8 + $0xa8] sm:$0xff]  ;;  %v7526_v43 = vld [vmem:[#allocation29_spill] sm:$0xff] }
 0xfa4   :  { %4829 = vmatmul.mubr.bf16.vlgmr.msra.gmra.mrb[48].mxu0 %v1699_v37  ;;  %v2123_v37 = vpack.c.bf16 %v2091_v4, %v2090_v55  ;;  %v2326_v55 = vld [vmem:[#allocation8 + $0x168] sm:$0xff] }
0x1077   :  { %v1734_v12 = vpop.f32.mrb[48].mxu0 }
0x1078   :  { %v4830_v15 = vpop.f32.mrb[49].mxu0 }
0x1079   :  { %v1737_v41 = vpop.f32.mrb[50].mxu0  ;;  %v2094_v15 = vld [vmem:[#allocation8 + $0xc0] sm:$0xff] }
0x107a   :  { %v1741_v1 = vpack.c.bf16 %v1737_v41, %v1734_v12  ;;  %v4831_v30 = vpop.f32.mrb[51].mxu0  ;;  %v2124_v12 = vpack.c.bf16 %v2093_v8, %v2092_v44  ;;  %v2095_v41 = vld [vmem:[#allocation8 + $0xc8] sm:$0xff]  ;;  %v2328_v44 = vld [vmem:[#allocation8 + $0x178] sm:$0xff]  ;;  %v152_v8 = vld [vmem:[%s7391_s2] sm:$0xff] }
0x107b   :  { %v2096_v30 = vld [vmem:[#allocation8 + $0xd0] sm:$0xff] }
0x107c   :  { %4833 = vmatpush3.bf16.msra.mxu1 %v1741_v1  ;;  %v2125_v1 = vpack.c.bf16 %v2095_v41, %v2094_v15  ;;  %v2126_v35 = vpack.c.bf16 %v2097_v61, %v2096_v30  ;;  %v1804_v30 = vld [vmem:[#allocation9 + $0x8] sm:$0xff] }
0x107d   :  { %4838 = vmatprep.subr.bf16.mxu1 %v1820_v46 }
0x107f   :  { %4835 = vmatmul.mubr.msk.bf16.vlgmr.msra.gmra.mrb[44].mxu1 %vm7437_vm0, %v1651_v26  ;;  %v2088_v26 = vld [vmem:[#allocation8 + $0x90] sm:$0xff] }
0x1080   :  { %4839 = vmatpush3.bf16.msra.mxu1 %v1820_v46  ;;  %4854 = vmatprep.mubr.bf16.mxu1 %v7525_v7  ;;  %v2122_v6 = vpack.c.bf16 %v2089_v0, %v2088_v26  ;;  %v7528_v46 = vld [vmem:[#allocation31_spill] sm:$0xff]  ;;  %v2324_v26 = vld [vmem:[#allocation8 + $0x158] sm:$0xff] }
0x1081   :  { %4840 = vmatprep.subr.bf16.mxu1 %v1821_v34 }
0x1084   :  { %4841 = vmatpush3.bf16.msra.mxu1 %v1821_v34  ;;  %v2098_v34 = vld [vmem:[#allocation8 + $0xe0] sm:$0xff] }
0x1085   :  { %4842 = vmatprep.subr.bf16.mxu1 %v1822_v39  ;;  %v2127_v56 = vpack.c.bf16 %v2099_v25, %v2098_v34  ;;  %v1806_v34 = vld [vmem:[#allocation9 + $0x18] sm:$0xff] }
0x1088   :  { %4843 = vmatpush3.bf16.msra.mxu1 %v1822_v39  ;;  %v2100_v39 = vld [vmem:[#allocation8 + $0xf0] sm:$0xff] }
0x1089   :  { %4844 = vmatprep.subr.bf16.mxu1 %v1823_v51  ;;  %v2128_v54 = vpack.c.bf16 %v2101_v19, %v2100_v39  ;;  %v1808_v39 = vld [vmem:[#allocation9 + $0x28] sm:$0xff] }
0x108c   :  { %4845 = vmatpush3.bf16.msra.mxu1 %v1823_v51  ;;  %v2313_v51 = vld [vmem:[#allocation8 + $0x100] sm:$0xff] }
0x108d   :  { %4846 = vmatprep.subr.bf16.mxu1 %v1824_v11  ;;  %v2349_v62 = vpack.c.bf16 %v2314_v33, %v2313_v51  ;;  %v1810_v51 = vld [vmem:[#allocation9 + $0x38] sm:$0xff] }
0x1090   :  { %4847 = vmatpush3.bf16.msra.mxu1 %v1824_v11  ;;  %v2315_v11 = vld [vmem:[#allocation8 + $0x110] sm:$0xff] }
0x1091   :  { %4848 = vmatprep.subr.bf16.mxu1 %v1825_v9  ;;  %v2350_v60 = vpack.c.bf16 %v2316_v32, %v2315_v11  ;;  %v1812_v11 = vld [vmem:[#allocation9 + $0x48] sm:$0xff] }
0x1094   :  { %4849 = vmatpush3.bf16.msra.mxu1 %v1825_v9  ;;  %v2317_v9 = vld [vmem:[#allocation8 + $0x120] sm:$0xff] }
0x1095   :  { %4850 = vmatprep.subr.bf16.mxu1 %v1826_v24  ;;  %v2351_v50 = vpack.c.bf16 %v2318_v40, %v2317_v9  ;;  %v1814_v9 = vld [vmem:[#allocation9 + $0x58] sm:$0xff] }
0x1098   :  { %4851 = vmatpush3.bf16.msra.mxu1 %v1826_v24  ;;  %v2319_v24 = vld [vmem:[#allocation8 + $0x130] sm:$0xff] }
0x1099   :  { %4852 = vmatprep.subr.bf16.mxu1 %v1827_v13  ;;  %v2352_v47 = vpack.c.bf16 %v2320_v36, %v2319_v24  ;;  %v1816_v24 = vld [vmem:[#allocation9 + $0x68] sm:$0xff] }
0x109c   :  { %4853 = vmatpush3.bf16.msra.mxu1 %v1827_v13  ;;  %v2321_v13 = vld [vmem:[#allocation8 + $0x140] sm:$0xff] }
0x109d   :  { %4886 = vmatprep.subr.bf16.mxu1 %v2121_v16  ;;  %v2353_v10 = vpack.c.bf16 %v2322_v5, %v2321_v13  ;;  %v1818_v13 = vld [vmem:[#allocation9 + $0x78] sm:$0xff] }
0x109f   :  { %4855 = vmatmul.mubr.bf16.vlgmr.msra.gmra.mrb[48].mxu1 %v7526_v43 }
0x10a0   :  { %4858 = vmatprep.mubr.bf16.mxu1 %v7527_v20  ;;  %4887 = vmatpush3.bf16.msra.mxu1 %v2121_v16  ;;  %v2323_v16 = vld [vmem:[#allocation8 + $0x150] sm:$0xff] }
0x10a1   :  { %4888 = vmatprep.subr.bf16.mxu1 %v2122_v6  ;;  %v2354_v0 = vpack.c.bf16 %v2324_v26, %v2323_v16  ;;  %v2105_v16 = vld [vmem:[#allocation9 + $0x88] sm:$0xff] }
0x10a4   :  { %4889 = vmatpush3.bf16.msra.mxu1 %v2122_v6  ;;  %v2325_v6 = vld [vmem:[#allocation8 + $0x160] sm:$0xff] }
0x10a5   :  { %4890 = vmatprep.subr.bf16.mxu1 %v2123_v37  ;;  %v2355_v4 = vpack.c.bf16 %v2326_v55, %v2325_v6  ;;  %v154_v6 = vld [vmem:[%s7391_s2 + $0x10] sm:$0xff]  ;;  %v155_v55 = vld [vmem:[%s7391_s2 + $0x18] sm:$0xff] }
0x10a7   :  { %4859 = vmatmul.mubr.bf16.gmra.mrb[52].mxu1 %v7528_v46 }
0x10a8   :  { %4891 = vmatpush3.bf16.msra.mxu1 %v2123_v37  ;;  %4902 = vmatprep.mubr.bf16.mxu1 %v6403_v52  ;;  %v2327_v37 = vld [vmem:[#allocation8 + $0x170] sm:$0xff] }
0x10a9   :  { %4892 = vmatprep.subr.bf16.mxu1 %v2124_v12  ;;  %v2356_v15 = vpack.c.bf16 %v2328_v44, %v2327_v37 }
0x10ac   :  { %4893 = vmatpush3.bf16.msra.mxu1 %v2124_v12  ;;  %v153_v12 = vld [vmem:[%s7391_s2 + $0x8] sm:$0xff] }
0x10ad   :  { %4894 = vmatprep.subr.bf16.mxu1 %v2125_v1  ;;  %v6553_v41 = vpack.c.bf16 %v153_v12, %v152_v8 }
0x10b0   :  { %4895 = vmatpush3.bf16.msra.mxu1 %v2125_v1  ;;  %v1803_v1 = vld [vmem:[#allocation9] sm:$0xff] }
0x10b1   :  { %4896 = vmatprep.subr.bf16.mxu1 %v2126_v35  ;;  %v2005_v61 = vpack.c.bf16 %v1804_v30, %v1803_v1  ;;  %v156_v1 = vld [vmem:[%s7391_s2 + $0x20] sm:$0xff]  ;;  %v157_v30 = vld [vmem:[%s7391_s2 + $0x28] sm:$0xff] }
0x10b3   :  { %4862 = vmatprep.subr.bf16.mxu0 %v2005_v61 }
0x10b4   :  { %4897 = vmatpush3.bf16.msra.mxu1 %v2126_v35  ;;  %4863 = vmatpush3.bf16.msra.mxu0 %v2005_v61  ;;  %v1805_v35 = vld [vmem:[#allocation9 + $0x10] sm:$0xff] }
0x10b5   :  { %4898 = vmatprep.subr.bf16.mxu1 %v2127_v56  ;;  %v2006_v25 = vpack.c.bf16 %v1806_v34, %v1805_v35  ;;  %v846_v35 = vadd.s32 32, %v5861_v21 }
0x10b7   :  { %4864 = vmatprep.subr.bf16.mxu0 %v2006_v25 }
0x10b8   :  { %4899 = vmatpush3.bf16.msra.mxu1 %v2127_v56  ;;  %4865 = vmatpush3.bf16.msra.mxu0 %v2006_v25  ;;  %v1807_v56 = vld [vmem:[#allocation9 + $0x20] sm:$0xff]  ;;  %v2502_v25 = vpack.c.bf16 %v157_v30, %v156_v1 }
0x10b9   :  { %4900 = vmatprep.subr.bf16.mxu1 %v2128_v54  ;;  %v2007_v19 = vpack.c.bf16 %v1808_v39, %v1807_v56  ;;  %v158_v56 = vld [vmem:[%s7391_s2 + $0x30] sm:$0xff]  ;;  %v159_v39 = vld [vmem:[%s7391_s2 + $0x38] sm:$0xff] }
0x10bb   :  { %4866 = vmatprep.subr.bf16.mxu0 %v2007_v19 }
0x10bc   :  { %4901 = vmatpush3.bf16.msra.mxu1 %v2128_v54  ;;  %4867 = vmatpush3.bf16.msra.mxu0 %v2007_v19  ;;  %v1809_v54 = vld [vmem:[#allocation9 + $0x30] sm:$0xff] }
0x10bd   :  { %4926 = vmatprep.subr.bf16.mxu1 %v7462_v38  ;;  %v2008_v33 = vpack.c.bf16 %v1810_v51, %v1809_v54  ;;  %v849_v54 = vcvt.s32.f32 %v5888_v28  ;;  %v850_v51 = vcvt.s32.f32 %v846_v35 }
0x10bf   :  { %4903 = vmatmul.mubr.bf16.vlgmr.msra.gmra.mrb[56].mxu1 %v6401_v49  ;;  %4868 = vmatprep.subr.bf16.mxu0 %v2008_v33  ;;  %vm853_vm1 = vcmp.eq.f32.partialorder %v6286_v27, %v849_v54  ;;  %vm854_vm12 = vcmp.eq.f32.partialorder %v6286_v27, %v850_v51 }
0x10c0   :  { %4927 = vmatpush3.bf16.msra.mxu1 %v2349_v62  ;;  %4942 = vmatprep.mubr.msk.bf16.mxu1 %vm7521_vm15, %v7462_v38  ;;  %v1811_v62 = vld [vmem:[#allocation9 + $0x40] sm:$0xff] }
0x10c1   :  { %4928 = vmatprep.subr.bf16.mxu1 %v7462_v38  ;;  %4869 = vmatpush3.bf16.msra.mxu0 %v2008_v33  ;;  %v2009_v32 = vpack.c.bf16 %v1812_v11, %v1811_v62  ;;  %v2503_v62 = vpack.c.bf16 %v159_v39, %v158_v56 }
0x10c3   :  { %4870 = vmatprep.subr.bf16.mxu0 %v2009_v32 }
0x10c4   :  { %4929 = vmatpush3.bf16.msra.mxu1 %v2350_v60  ;;  %v1813_v60 = vld [vmem:[#allocation9 + $0x50] sm:$0xff] }
0x10c5   :  { %4930 = vmatprep.subr.bf16.mxu1 %v7462_v38  ;;  %4871 = vmatpush3.bf16.msra.mxu0 %v2009_v32  ;;  %v2010_v40 = vpack.c.bf16 %v1814_v9, %v1813_v60  ;;  %v4354_v9 = vsel %vm853_vm1, 1.0, %v7462_v38 }
0x10c7   :  { %4872 = vmatprep.subr.bf16.mxu0 %v2010_v40 }
0x10c8   :  { %4931 = vmatpush3.bf16.msra.mxu1 %v2351_v50  ;;  %v1815_v50 = vld [vmem:[#allocation9 + $0x60] sm:$0xff] }
0x10c9   :  { %4932 = vmatprep.subr.bf16.mxu1 %v7462_v38  ;;  %4873 = vmatpush3.bf16.msra.mxu0 %v2010_v40  ;;  %v2011_v36 = vpack.c.bf16 %v1816_v24, %v1815_v50  ;;  %v4355_v40 = vsel %vm854_vm12, 1.0, %v7462_v38 }
0x10ca   :  { %v2561_v24 = vpack.c.bf16 %v4355_v40, %v4354_v9 }
0x10cb   :  { %4874 = vmatprep.subr.bf16.mxu0 %v2011_v36 }
0x10cc   :  { %4933 = vmatpush3.bf16.msra.mxu1 %v2352_v47  ;;  %v1817_v47 = vld [vmem:[#allocation9 + $0x70] sm:$0xff] }
0x10cd   :  { %4934 = vmatprep.subr.bf16.mxu1 %v7462_v38  ;;  %4875 = vmatpush3.bf16.msra.mxu0 %v2011_v36  ;;  %v2012_v5 = vpack.c.bf16 %v1818_v13, %v1817_v47  ;;  %v847_v36 = vadd.s32 32, %v5849_v17  ;;  %v848_v13 = vadd.s32 32, %v5864_v22 }
0x10cf   :  { %4876 = vmatprep.subr.bf16.mxu0 %v2012_v5 }
0x10d0   :  { %4935 = vmatpush3.bf16.msra.mxu1 %v2353_v10  ;;  %v2104_v10 = vld [vmem:[#allocation9 + $0x80] sm:$0xff] }
0x10d1   :  { %4936 = vmatprep.subr.bf16.mxu1 %v7462_v38  ;;  %4877 = vmatpush3.bf16.msra.mxu0 %v2012_v5  ;;  %v6556_v26 = vpack.c.bf16 %v2105_v16, %v2104_v10 }
0x10d3   :  { %4906 = vmatprep.subr.bf16.mxu0 %v6556_v26 }
0x10d4   :  { %4937 = vmatpush3.bf16.msra.mxu1 %v2354_v0 }
0x10d5   :  { %4938 = vmatprep.subr.bf16.mxu1 %v7462_v38 }
0x10d8   :  { %4939 = vmatpush3.bf16.msra.mxu1 %v2355_v4 }
0x10d9   :  { %4940 = vmatprep.subr.bf16.mxu1 %v7462_v38 }
0x10dc   :  { %4941 = vmatpush3.bf16.msra.mxu1 %v2356_v15  ;;  %v2501_v15 = vpack.c.bf16 %v155_v55, %v154_v6  ;;  %v852_v6 = vcvt.s32.f32 %v848_v13 }
0x10dd   :  { %4966 = vmatprep.subr.bf16.mxu1 %v6553_v41 }
0x10de   :  { %vm856_vm13 = vcmp.eq.f32.partialorder %v6286_v27, %v852_v6 }
0x1152   :  { %v1776_v0 = vpop.f32.mrb[44].mxu1 }
0x1153   :  { %v4836_v4 = vpop.f32.mrb[45].mxu1 }
0x1154   :  { %v1779_v37 = vpop.f32.mrb[46].mxu1  ;;  %v4338_v4 = vld [vmem:[#allocation11] ss:$0 sm:$0xff] }
0x1155   :  { %v2348_v44 = vpack.c.bf16 %v1779_v37, %v1776_v0  ;;  %v3966_v8 = vadd.f32 %v1779_v37, %v1776_v0  ;;  %v4837_v12 = vpop.f32.mrb[47].mxu1 }
0x1157   :  { %v3967_v61 = vrot.slane %v3966_v8, 4  ;;  %4943 = vmatmul.mubr.bf16.vlgmr.msra.gmra.mrb[60].mxu1 %v2348_v44 }
0x1158   :  { %4967 = vmatpush3.bf16.msra.mxu1 %v6553_v41  ;;  %4974 = vmatprep.mubr.msk.bf16.mxu1 %vm7529_vm4, %v6302_v23 }
0x1159   :  { %v3968_v34 = vadd.f32 %v3967_v61, %v3966_v8  ;;  %4968 = vmatprep.subr.bf16.mxu1 %v2501_v15 }
0x115b   :  { %v3969_v19 = vrot.slane %v3968_v34, 2 }
0x115c   :  { %4969 = vmatpush3.bf16.msra.mxu1 %v2501_v15 }
0x115d   :  { %v3970_v33 = vadd.f32 %v3969_v19, %v3968_v34  ;;  %4970 = vmatprep.subr.bf16.mxu1 %v2502_v25 }
0x115f   :  { %v3971_v11 = vrot.slane %v3970_v33, 1 }
0x1160   :  { %4971 = vmatpush3.bf16.msra.mxu1 %v2502_v25 }
0x1161   :  { %v3972_v32 = vadd.f32 %v3971_v11, %v3970_v33  ;;  %4972 = vmatprep.subr.bf16.mxu1 %v2503_v62 }
0x1163   :  { %v3973_v60 = vmul.f32 0.0625, %v3972_v32 }
0x1164   :  { %4973 = vmatpush3.bf16.msra.mxu1 %v2503_v62 }
0x1165   :  { %v3975_v50 = vsub.f32 %v1779_v37, %v3973_v60  ;;  %4978 = vmatprep.subr.bf16.mxu1 %v6553_v41  ;;  %v3974_v28 = vsub.f32 %v1776_v0, %v3973_v60  ;;  %v851_v0 = vcvt.s32.f32 %v847_v36 }
0x1167   :  { %v3987_v47 = vmul.f32 %v3975_v50, %v3975_v50  ;;  %4975 = vmatmul.mubr.msk.bf16.vlgmr.msra.gmra.mrb[64].mxu1 %vm7530_vm3, %v6304_v59  ;;  %v3986_v5 = vmul.f32 %v3974_v28, %v3974_v28  ;;  %v6591_v10 = vpack.c.bf16 %v3975_v50, %v3974_v28  ;;  %vm855_vm5 = vcmp.eq.f32.partialorder %v6286_v27, %v851_v0 }
0x1168   :  { %4979 = vmatpush3.bf16.msra.mxu1 %v6553_v41  ;;  %4986 = vmatprep.mubr.msk.bf16.mxu1 %vm7531_vm6, %v2561_v24  ;;  %v4356_v55 = vsel %vm855_vm5, 1.0, %v7462_v38  ;;  %v4357_v41 = vsel %vm856_vm13, 1.0, %v7462_v38 }
0x1169   :  { %4980 = vmatprep.subr.bf16.mxu1 %v2501_v15  ;;  %v6595_v16 = vadd.f32 %v3987_v47, %v3986_v5  ;;  %v2562_v12 = vpack.c.bf16 %v4357_v41, %v4356_v55  ;;  %v4343_v41 = vld [vmem:[#allocation11 + $0x3] ss:$0 sm:$0xff] }
0x116b   :  { %7532 = vst [vmem:[#allocation28_spill] sm:$0xff] %v6595_v16 }
0x116c   :  { %4981 = vmatpush3.bf16.msra.mxu1 %v2501_v15 }
0x116d   :  { %4982 = vmatprep.subr.bf16.mxu1 %v2502_v25 }
0x1170   :  { %4983 = vmatpush3.bf16.msra.mxu1 %v2502_v25 }
0x1171   :  { %4984 = vmatprep.subr.bf16.mxu1 %v2503_v62 }
0x1172   :  { %v4856_v22 = vpop.f32.mrb[48].mxu1 }
0x1173   :  { %v1866_v37 = vpop.f32.mrb[49].mxu1  ;;  %v1875_v27 = vadd.f32 %v4856_v22, %v4338_v4 }
0x1174   :  { %4985 = vmatpush3.bf16.msra.mxu1 %v2503_v62  ;;  %v4857_v44 = vpop.f32.mrb[50].mxu1  ;;  %v1867_v15 = vadd.f32 %v4338_v4, %v1866_v37 }
0x1175   :  { %5006 = vmatprep.subr.bf16.mxu1 %v7525_v7  ;;  %v1869_v8 = vpop.f32.mrb[51].mxu1  ;;  %v1878_v61 = vadd.f32 %v4857_v44, %v4338_v4 }
0x1176   :  { %v1870_v1 = vadd.f32 %v4338_v4, %v1869_v8 }
0x1177   :  { %4987 = vmatmul.mubr.msk.bf16.vlgmr.msra.gmra.mrb[68].mxu1 %vm7533_vm7, %v2562_v12 }
0x1178   :  { %v1897_v30 = vadd.f32 %v1870_v1, %v1867_v15  ;;  %5007 = vmatpush3.bf16.msra.mxu1 %v7525_v7  ;;  %5014 = vmatprep.mubr.msk.bf16.mxu1 %vm7534_vm8, %v6302_v23 }
0x1179   :  { %5008 = vmatprep.subr.bf16.mxu1 %v7526_v43 }
0x117a   :  { %v1898_v35 = vadd.f32 %v1897_v30, %v1875_v27  ;;  %v4860_v34 = vpop.f32.mrb[52].mxu1 }
0x117b   :  { %v1882_v25 = vpop.f32.mrb[53].mxu1  ;;  %v1891_v7 = vadd.f32 %v4860_v34, %v4338_v4 }
0x117c   :  { %v1883_v56 = vadd.f32 %v4338_v4, %v1882_v25  ;;  %v1899_v39 = vadd.f32 %v1898_v35, %v1878_v61  ;;  %5009 = vmatpush3.bf16.msra.mxu1 %v7526_v43  ;;  %v4861_v19 = vpop.f32.mrb[54].mxu1 }
0x117d   :  { %5010 = vmatprep.subr.bf16.mxu1 %v7527_v20  ;;  %v1885_v54 = vpop.f32.mrb[55].mxu1  ;;  %v1894_v23 = vadd.f32 %v4861_v19, %v4338_v4 }
0x117e   :  { %v1900_v51 = vadd.f32 %v1899_v39, %v1883_v56  ;;  %v1886_v33 = vadd.f32 %v4338_v4, %v1885_v54 }
0x1180   :  { %v1901_v62 = vadd.f32 %v1900_v51, %v1886_v33  ;;  %5011 = vmatpush3.bf16.msra.mxu1 %v7527_v20 }
0x1181   :  { %5012 = vmatprep.subr.bf16.mxu1 %v7528_v46 }
0x1182   :  { %v1902_v11 = vadd.f32 %v1901_v62, %v1891_v7 }
0x1184   :  { %v1903_v32 = vadd.f32 %v1902_v11, %v1894_v23  ;;  %5013 = vmatpush3.bf16.msra.mxu1 %v7528_v46 }
0x1185   :  { %5034 = vmatprep.subr.bf16.mxu1 %v7462_v38 }
0x1186   :  { %v1904_v43 = vrot.slane %v1903_v32, 4 }
0x1187   :  { %5015 = vmatmul.mubr.msk.bf16.vlgmr.msra.gmra.mrb[72].mxu1 %vm7535_vm11, %v6304_v59 }
0x1188   :  { %v1905_v60 = vadd.f32 %v1904_v43, %v1903_v32  ;;  %5038 = vmatprep.mubr.msk.bf16.mxu1 %vm7521_vm15, %v7462_v38 }
0x118a   :  { %v1906_v9 = vrot.slane %v1905_v60, 2 }
0x118c   :  { %v1907_v40 = vadd.f32 %v1906_v9, %v1905_v60 }
0x118e   :  { %v1908_v20 = vrot.slane %v1907_v40, 1 }
0x1190   :  { %v1909_v50 = vadd.f32 %v1908_v20, %v1907_v40 }
0x1192   :  { %v1911_v28 = vmul.f32 0.015625, %v1909_v50  ;;  %v4904_v24 = vpop.f32.mrb[56].mxu1 }
0x1193   :  { %v2167_v36 = vpop.f32.mrb[57].mxu1 }
0x1194   :  { %v6617_v47 = vsub.f32 %v1867_v15, %v1911_v28  ;;  %v6619_v46 = vsub.f32 %v1870_v1, %v1911_v28  ;;  %v6621_v13 = vsub.f32 %v1875_v27, %v1911_v28  ;;  %v6623_v5 = vsub.f32 %v1878_v61, %v1911_v28  ;;  %v4905_v59 = vpop.f32.mrb[58].mxu1 }
0x1195   :  { %v6625_v0 = vsub.f32 %v1883_v56, %v1911_v28  ;;  %v6627_v6 = vsub.f32 %v1886_v33, %v1911_v28  ;;  %v6629_v22 = vsub.f32 %v1891_v7, %v1911_v28  ;;  %v6631_v55 = vsub.f32 %v1894_v23, %v1911_v28  ;;  %v2170_v4 = vpop.f32.mrb[59].mxu1 }
0x1196   :  { %v1920_v37 = vmul.f32 %v6617_v47, %v6617_v47  ;;  %v1921_v44 = vmul.f32 %v6619_v46, %v6619_v46  ;;  %v1922_v8 = vmul.f32 %v6621_v13, %v6621_v13  ;;  %v2168_v15 = vadd.f32 %v4343_v41, %v2167_v36 }
0x1197   :  { %v2171_v1 = vadd.f32 %v4343_v41, %v2170_v4  ;;  %v1923_v27 = vmul.f32 %v6623_v5, %v6623_v5  ;;  %v2176_v61 = vadd.f32 %v4904_v24, %v4343_v41  ;;  %v1924_v34 = vmul.f32 %v6625_v0, %v6625_v0 }
0x1198   :  { %v1928_v12 = vadd.f32 %v1921_v44, %v1920_v37  ;;  %v2179_v56 = vadd.f32 %v4905_v59, %v4343_v41  ;;  %v1925_v19 = vmul.f32 %v6627_v6, %v6627_v6  ;;  %v1926_v33 = vmul.f32 %v6629_v22, %v6629_v22 }
0x1199   :  { %v2182_v35 = vadd.f32 %v2171_v1, %v2168_v15  ;;  %v1927_v23 = vmul.f32 %v6631_v55, %v6631_v55 }
0x119a   :  { %v1929_v30 = vadd.f32 %v1928_v12, %v1922_v8 }
0x119b   :  { %v2183_v39 = vadd.f32 %v2182_v35, %v2176_v61 }
0x119c   :  { %v1930_v25 = vadd.f32 %v1929_v30, %v1923_v27 }
0x119d   :  { %v2184_v51 = vadd.f32 %v2183_v39, %v2179_v56 }
0x119e   :  { %v1931_v54 = vadd.f32 %v1930_v25, %v1924_v34 }
0x119f   :  { %v2185_v62 = vrot.slane %v2184_v51, 4 }
0x11a0   :  { %v1932_v7 = vadd.f32 %v1931_v54, %v1925_v19 }
0x11a1   :  { %v2186_v32 = vadd.f32 %v2185_v62, %v2184_v51 }
0x11a2   :  { %v1933_v11 = vadd.f32 %v1932_v7, %v1926_v33  ;;  %v4339_v7 = vld [vmem:[#allocation11 + $0x1] ss:$0 sm:$0xff] }
0x11a3   :  { %v2187_v60 = vrot.slane %v2186_v32, 2 }
0x11a4   :  { %v1934_v43 = vadd.f32 %v1933_v11, %v1927_v23  ;;  %v6665_v23 = vstv %s1802_s16 }
0x11a5   :  { %v2188_v40 = vadd.f32 %v2187_v60, %v2186_v32 }
0x11a6   :  { %v1935_v9 = vrot.slane %v1934_v43, 4 }
0x11a7   :  { %v2189_v50 = vrot.slane %v2188_v40, 1 }
0x11a8   :  { %v1936_v20 = vadd.f32 %v1935_v9, %v1934_v43  ;;  %v4340_v9 = vld [vmem:[#allocation11 + $0x2] ss:$0 sm:$0xff] }
0x11a9   :  { %v2190_v24 = vadd.f32 %v2189_v50, %v2188_v40 }
0x11aa   :  { %v1937_v28 = vrot.slane %v1936_v20, 2 }
0x11ab   :  { %v2192_v59 = vmul.f32 0.03125, %v2190_v24 }
0x11ac   :  { %v1938_v36 = vadd.f32 %v1937_v28, %v1936_v20 }
0x11ad   :  { %v6649_v4 = vsub.f32 %v2168_v15, %v2192_v59  ;;  %v6651_v37 = vsub.f32 %v2171_v1, %v2192_v59  ;;  %v6653_v44 = vsub.f32 %v2176_v61, %v2192_v59  ;;  %v6655_v8 = vsub.f32 %v2179_v56, %v2192_v59 }
0x11ae   :  { %v1939_v41 = vrot.slane %v1938_v36, 1 }
0x11af   :  { %v2197_v27 = vmul.f32 %v6649_v4, %v6649_v4  ;;  %v2198_v30 = vmul.f32 %v6651_v37, %v6651_v37  ;;  %v2199_v34 = vmul.f32 %v6653_v44, %v6653_v44  ;;  %v2200_v1 = vmul.f32 %v6655_v8, %v6655_v8 }
0x11b0   :  { %v1940_v12 = vadd.f32 %v1939_v41, %v1938_v36 }
0x11b1   :  { %v2201_v25 = vadd.f32 %v2198_v30, %v2197_v27 }
0x11b2   :  { %v1941_v35 = vmul.f32 0.015625, %v1940_v12 }
0x11b3   :  { %v2202_v61 = vadd.f32 %v2201_v25, %v2199_v34 }
0x11b4   :  { %v1942_v15 = vadd.f32 1e-05, %v1941_v35 }
0x11b5   :  { %v2203_v56 = vadd.f32 %v2202_v61, %v2200_v1 }
0x11b6   :  { %5174 = vrsqrt.f32 %v1942_v15 }
0x11b7   :  { %v2204_v39 = vrot.slane %v2203_v56, 4 }
0x11b9   :  { %v2205_v19 = vadd.f32 %v2204_v39, %v2203_v56  ;;  %v2106_v39 = vld [vmem:[#allocation9 + $0x90] sm:$0xff] }
0x11bb   :  { %v2206_v54 = vrot.slane %v2205_v19, 2 }
0x11bd   :  { %v2207_v51 = vadd.f32 %v2206_v54, %v2205_v19  ;;  %v2107_v19 = vld [vmem:[#allocation9 + $0x98] sm:$0xff] }
0x11bf   :  { %v2208_v62 = vrot.slane %v2207_v51, 1 }
0x11c0   :  { %v5175_v33 = vpop.eup %5174 }
0x11c1   :  { %v1947_v11 = vmul.f32 %v5175_v33, %v6623_v5  ;;  %v1949_v32 = vmul.f32 %v5175_v33, %v6627_v6  ;;  %v1944_v43 = vmul.f32 %v5175_v33, %v6617_v47  ;;  %v1945_v60 = vmul.f32 %v5175_v33, %v6619_v46 }
0x11c2   :  { %v2209_v40 = vadd.f32 %v2208_v62, %v2207_v51  ;;  %v1946_v20 = vmul.f32 %v5175_v33, %v6621_v13  ;;  %v1948_v50 = vmul.f32 %v5175_v33, %v6625_v0  ;;  %v1950_v28 = vmul.f32 %v5175_v33, %v6629_v22 }
0x11c3   :  { %v1961_v24 = vmul.f32 %v4339_v7, %v1949_v32  ;;  %v1956_v36 = vmul.f32 %v4339_v7, %v1944_v43  ;;  %v1957_v59 = vmul.f32 %v4339_v7, %v1945_v60  ;;  %v1959_v41 = vmul.f32 %v4339_v7, %v1947_v11 }
0x11c4   :  { %v2210_v12 = vmul.f32 0.03125, %v2209_v40  ;;  %v1958_v5 = vmul.f32 %v4339_v7, %v1946_v20  ;;  %v1960_v27 = vmul.f32 %v4339_v7, %v1948_v50  ;;  %v1951_v6 = vmul.f32 %v5175_v33, %v6631_v55 }
0x11c5   :  { %v1973_v47 = vadd.f32 %v4340_v9, %v1961_v24  ;;  %v1968_v30 = vadd.f32 %v4340_v9, %v1956_v36  ;;  %v1969_v46 = vadd.f32 %v4340_v9, %v1957_v59  ;;  %v1971_v35 = vadd.f32 %v4340_v9, %v1959_v41  ;;  %v2109_v24 = vld [vmem:[#allocation9 + $0xa8] sm:$0xff] }
0x11c6   :  { %v2211_v34 = vadd.f32 1e-05, %v2210_v12  ;;  %v1970_v25 = vadd.f32 %v4340_v9, %v1958_v5  ;;  %v1972_v13 = vadd.f32 %v4340_v9, %v1960_v27  ;;  %v1962_v15 = vmul.f32 %v4339_v7, %v1950_v28  ;;  %v2108_v28 = vld [vmem:[#allocation9 + $0xa0] sm:$0xff] }
0x11c7   :  { %vm1976_vm9 = vcmp.ge.f32.partialorder %v1968_v30, 0.0  ;;  %vm1977_vm14 = vcmp.ge.f32.partialorder %v1969_v46, 0.0  ;;  %v1985_v0 = vmul.f32 %v6665_v23, %v1968_v30  ;;  %v1986_v22 = vmul.f32 %v6665_v23, %v1969_v46 }
0x11c8   :  { %5176 = vrsqrt.f32 %v2211_v34  ;;  %vm1978_vm2 = vcmp.ge.f32.partialorder %v1970_v25, 0.0  ;;  %vm1979_vm10 = vcmp.ge.f32.partialorder %v1971_v35, 0.0  ;;  %v1987_v1 = vmul.f32 %v6665_v23, %v1970_v25 }
0x11c9   :  { %v1993_v55 = vsel %vm1976_vm9, %v1968_v30, %v1985_v0  ;;  %v1994_v61 = vsel %vm1977_vm14, %v1969_v46, %v1986_v22  ;;  %v1988_v56 = vmul.f32 %v6665_v23, %v1971_v35  ;;  %vm1980_vm4 = vcmp.ge.f32.partialorder %v1972_v13, 0.0 }
0x11ca   :  { %v2001_v54 = vpack.c.bf16 %v1994_v61, %v1993_v55  ;;  %v1995_v51 = vsel %vm1978_vm2, %v1970_v25, %v1987_v1  ;;  %vm1981_vm1 = vcmp.ge.f32.partialorder %v1973_v47, 0.0  ;;  %v1989_v33 = vmul.f32 %v6665_v23, %v1972_v13  ;;  %v2112_v1 = vld [vmem:[#allocation9 + $0xc0] sm:$0xff]  ;;  %v2113_v55 = vld [vmem:[#allocation9 + $0xc8] sm:$0xff] }
0x11cb   :  { %v1996_v62 = vsel %vm1979_vm10, %v1971_v35, %v1988_v56  ;;  %v1990_v11 = vmul.f32 %v6665_v23, %v1973_v47  ;;  %v1963_v32 = vmul.f32 %v4339_v7, %v1951_v6  ;;  %v1974_v43 = vadd.f32 %v4340_v9, %v1962_v15  ;;  %v2110_v6 = vld [vmem:[#allocation9 + $0xb0] sm:$0xff] }
0x11cc   :  { %4878 = vmatprep.mubr.bf16.mxu0 %v2001_v54  ;;  %v2002_v60 = vpack.c.bf16 %v1996_v62, %v1995_v51  ;;  %v1997_v40 = vsel %vm1980_vm4, %v1972_v13, %v1989_v33  ;;  %v2249_v20 = vpack.c.bf16 %v2107_v19, %v2106_v39  ;;  %v2250_v5 = vpack.c.bf16 %v2109_v24, %v2108_v28  ;;  %v2114_v51 = vld [vmem:[#allocation9 + $0xd0] sm:$0xff]  ;;  %v2115_v33 = vld [vmem:[#allocation9 + $0xd8] sm:$0xff]  ;;  %v2116_v28 = vld [vmem:[#allocation9 + $0xe0] sm:$0xff] }
0x11cd   :  { %v1998_v50 = vsel %vm1981_vm1, %v1973_v47, %v1990_v11  ;;  %v1975_v36 = vadd.f32 %v4340_v9, %v1963_v32  ;;  %vm1982_vm12 = vcmp.ge.f32.partialorder %v1974_v43, 0.0  ;;  %v1991_v59 = vmul.f32 %v6665_v23, %v1974_v43  ;;  %v2111_v47 = vld [vmem:[#allocation9 + $0xb8] sm:$0xff]  ;;  %v4344_v9 = vld [vmem:[#allocation11 + $0x4] ss:$0 sm:$0xff]  ;;  %v2117_v24 = vld [vmem:[#allocation9 + $0xe8] sm:$0xff] }
0x11ce   :  { %4879 = vmatmul.mubr.bf16.vlgmr.msra.gmra.mrb[52].mxu0 %v2002_v60  ;;  %v2003_v41 = vpack.c.bf16 %v1998_v50, %v1997_v40  ;;  %v2251_v13 = vpack.c.bf16 %v2111_v47, %v2110_v6  ;;  %v2237_v56 = vstv %s4342_s22  ;;  %v2253_v40 = vpack.c.bf16 %v2115_v33, %v2114_v51  ;;  %v2333_v47 = vld [vmem:[#allocation9 + $0x110] sm:$0xff] }
0x11cf   :  { %4907 = vmatpush3.bf16.msra.mxu0 %v6556_v26  ;;  %vm1983_vm3 = vcmp.ge.f32.partialorder %v1975_v36, 0.0  ;;  %v1992_v7 = vmul.f32 %v6665_v23, %v1975_v36  ;;  %v1999_v12 = vsel %vm1982_vm12, %v1974_v43, %v1991_v59  ;;  %v4345_v23 = vld [vmem:[#allocation11 + $0x5] ss:$0 sm:$0xff]  ;;  %v2254_v59 = vpack.c.bf16 %v2117_v24, %v2116_v28 }
0x11d0   :  { %4882 = vmatprep.mubr.bf16.mxu0 %v2003_v41  ;;  %4908 = vmatprep.subr.bf16.mxu0 %v2249_v20  ;;  %v2118_v41 = vld [vmem:[#allocation9 + $0xf0] sm:$0xff]  ;;  %vm7536_vm9 = vcmask 261120   ;;  %vm1439_vm14 = vcmp.eq.f32.partialorder %v6466_v42, %v832_v53 }
0x11d1   :  { %v2000_v27 = vsel %vm1983_vm3, %v1975_v36, %v1992_v7  ;;  %v2119_v7 = vld [vmem:[#allocation9 + $0xf8] sm:$0xff]  ;;  %vm7537_vm10 = vmmov %vm7536_vm9 }
0x11d2   :  { %v5177_v30 = vpop.eup %5176  ;;  %v2004_v46 = vpack.c.bf16 %v2000_v27, %v1999_v12  ;;  %v2255_v12 = vpack.c.bf16 %v2119_v7, %v2118_v41  ;;  %v2332_v27 = vld [vmem:[#allocation9 + $0x108] sm:$0xff]  ;;  %vm7538_vm4 = vmmov %vm7536_vm9 }
0x11d3   :  { %v2213_v35 = vmul.f32 %v5177_v30, %v6649_v4  ;;  %v2214_v34 = vmul.f32 %v5177_v30, %v6651_v37  ;;  %v2215_v25 = vmul.f32 %v5177_v30, %v6653_v44  ;;  %v2216_v26 = vmul.f32 %v5177_v30, %v6655_v8  ;;  %4909 = vmatpush3.bf16.msra.mxu0 %v2249_v20  ;;  %v2334_v30 = vld [vmem:[#allocation9 + $0x118] sm:$0xff] }
0x11d4   :  { %4910 = vmatprep.subr.bf16.mxu0 %v2250_v5  ;;  %v2252_v44 = vpack.c.bf16 %v2113_v55, %v2112_v1  ;;  %v2342_v1 = vld [vmem:[#allocation9 + $0x158] sm:$0xff] }
0x11d5   :  { %v2222_v15 = vmul.f32 %v4344_v9, %v2214_v34  ;;  %v2223_v0 = vmul.f32 %v4344_v9, %v2215_v25  ;;  %v2224_v22 = vmul.f32 %v4344_v9, %v2216_v26  ;;  %v2221_v61 = vmul.f32 %v4344_v9, %v2213_v35  ;;  %v2336_v35 = vld [vmem:[#allocation9 + $0x128] sm:$0xff]  ;;  %v2337_v25 = vld [vmem:[#allocation9 + $0x130] sm:$0xff]  ;;  %v2338_v26 = vld [vmem:[#allocation9 + $0x138] sm:$0xff] }
0x11d6   :  { %4883 = vmatmul.mubr.bf16.gmra.mrb[56].mxu0 %v2004_v46  ;;  %v2448_v9 = vpack.c.bf16 %v2334_v30, %v2333_v47  ;;  %v2335_v46 = vld [vmem:[#allocation9 + $0x120] sm:$0xff] }
0x11d7   :  { %v2230_v39 = vadd.f32 %v4345_v23, %v2222_v15  ;;  %v2231_v4 = vadd.f32 %v4345_v23, %v2223_v0  ;;  %v2232_v19 = vadd.f32 %v4345_v23, %v2224_v22  ;;  %4911 = vmatpush3.bf16.msra.mxu0 %v2250_v5  ;;  %v2229_v37 = vadd.f32 %v4345_v23, %v2221_v61  ;;  %v2331_v5 = vld [vmem:[#allocation9 + $0x100] sm:$0xff]  ;;  %v2340_v15 = vld [vmem:[#allocation9 + $0x148] sm:$0xff]  ;;  %v2341_v22 = vld [vmem:[#allocation9 + $0x150] sm:$0xff] }
0x11d8   :  { %4912 = vmatprep.subr.bf16.mxu0 %v2251_v13  ;;  %v2447_v6 = vpack.c.bf16 %v2332_v27, %v2331_v5  ;;  %v2449_v34 = vpack.c.bf16 %v2336_v35, %v2335_v46  ;;  %v2450_v23 = vpack.c.bf16 %v2338_v26, %v2337_v25  ;;  %v2452_v55 = vpack.c.bf16 %v2342_v1, %v2341_v22  ;;  %v2343_v61 = vld [vmem:[#allocation9 + $0x160] sm:$0xff] }
0x11d9   :  { %vm2233_vm6 = vcmp.ge.f32.partialorder %v2229_v37, 0.0  ;;  %vm2234_vm5 = vcmp.ge.f32.partialorder %v2230_v39, 0.0  ;;  %v2238_v8 = vmul.f32 %v2237_v56, %v2229_v37  ;;  %v2239_v54 = vmul.f32 %v2237_v56, %v2230_v39 }
0x11da   :  { %vm2235_vm13 = vcmp.ge.f32.partialorder %v2231_v4, 0.0  ;;  %vm2236_vm7 = vcmp.ge.f32.partialorder %v2232_v19, 0.0  ;;  %v2240_v62 = vmul.f32 %v2237_v56, %v2231_v4  ;;  %v2241_v11 = vmul.f32 %v2237_v56, %v2232_v19  ;;  %v2344_v56 = vld [vmem:[#allocation9 + $0x168] sm:$0xff] }
0x11db   :  { %4913 = vmatpush3.bf16.msra.mxu0 %v2251_v13  ;;  %v2242_v32 = vsel %vm2233_vm6, %v2229_v37, %v2238_v8  ;;  %v2243_v43 = vsel %vm2234_vm5, %v2230_v39, %v2239_v54  ;;  %v2339_v13 = vld [vmem:[#allocation9 + $0x140] sm:$0xff]  ;;  %v2453_v39 = vpack.c.bf16 %v2344_v56, %v2343_v61 }
0x11dc   :  { %4914 = vmatprep.subr.bf16.mxu0 %v2252_v44  ;;  %v2246_v60 = vpack.c.bf16 %v2243_v43, %v2242_v32  ;;  %v2244_v20 = vsel %vm2235_vm13, %v2231_v4, %v2240_v62  ;;  %v2245_v50 = vsel %vm2236_vm7, %v2232_v19, %v2241_v11  ;;  %v2451_v0 = vpack.c.bf16 %v2340_v15, %v2339_v13  ;;  %v2345_v4 = vld [vmem:[#allocation9 + $0x170] sm:$0xff]  ;;  %v2346_v19 = vld [vmem:[#allocation9 + $0x178] sm:$0xff] }
0x11dd   :  { %v2247_v36 = vpack.c.bf16 %v2245_v50, %v2244_v20  ;;  %v2454_v37 = vpack.c.bf16 %v2346_v19, %v2345_v4 }
0x11de   :  { %4922 = vmatprep.mubr.bf16.mxu0 %v2246_v60 }
0x11df   :  { %4915 = vmatpush3.bf16.msra.mxu0 %v2252_v44  ;;  %v4348_v44 = vld [vmem:[#allocation11 + $0x6] ss:$0 sm:$0xff] }
0x11e0   :  { %4916 = vmatprep.subr.bf16.mxu0 %v2253_v40 }
0x11e3   :  { %4917 = vmatpush3.bf16.msra.mxu0 %v2253_v40 }
0x11e4   :  { %4918 = vmatprep.subr.bf16.mxu0 %v2254_v59 }
0x11e7   :  { %4919 = vmatpush3.bf16.msra.mxu0 %v2254_v59 }
0x11e8   :  { %4920 = vmatprep.subr.bf16.mxu0 %v2255_v12 }
0x11eb   :  { %4921 = vmatpush3.bf16.msra.mxu0 %v2255_v12 }
0x11ec   :  { %4946 = vmatprep.subr.bf16.mxu0 %v7462_v38 }
0x11ee   :  { %4923 = vmatmul.mubr.bf16.vlgmr.msra.gmra.mrb[60].mxu0 %v2247_v36 }
0x11ef   :  { %4947 = vmatpush3.bf16.msra.mxu0 %v2447_v6  ;;  %4962 = vmatprep.mubr.msk.bf16.mxu0 %vm7521_vm15, %v7462_v38 }
0x11f0   :  { %4948 = vmatprep.subr.bf16.mxu0 %v7462_v38 }
0x11f3   :  { %4949 = vmatpush3.bf16.msra.mxu0 %v2448_v9 }
0x11f4   :  { %4950 = vmatprep.subr.bf16.mxu0 %v7462_v38 }
0x11f7   :  { %4951 = vmatpush3.bf16.msra.mxu0 %v2449_v34 }
0x11f8   :  { %4952 = vmatprep.subr.bf16.mxu0 %v7462_v38 }
0x11fb   :  { %4953 = vmatpush3.bf16.msra.mxu0 %v2450_v23 }
0x11fc   :  { %4954 = vmatprep.subr.bf16.mxu0 %v7462_v38 }
0x11ff   :  { %4955 = vmatpush3.bf16.msra.mxu0 %v2451_v0 }
0x1200   :  { %4956 = vmatprep.subr.bf16.mxu0 %v7462_v38 }
0x1203   :  { %4957 = vmatpush3.bf16.msra.mxu0 %v2452_v55 }
0x1204   :  { %4958 = vmatprep.subr.bf16.mxu0 %v7462_v38 }
0x1207   :  { %4959 = vmatpush3.bf16.msra.mxu0 %v2453_v39 }
0x1208   :  { %4960 = vmatprep.subr.bf16.mxu0 %v7462_v38 }
0x120b   :  { %4961 = vmatpush3.bf16.msra.mxu0 %v2454_v37 }
0x120c   :  { %4990 = vmatprep.subr.bf16.mxu0 %v7462_v38 }
0x122a   :  { %v2395_v8 = vpop.f32.mrb[60].mxu1 }
0x122b   :  { %v4944_v54 = vpop.f32.mrb[61].mxu1  ;;  %v2396_v33 = vadd.f32 %v4348_v44, %v2395_v8 }
0x122c   :  { %v2398_v51 = vpop.f32.mrb[62].mxu1 }
0x122d   :  { %v2399_v62 = vadd.f32 %v4348_v44, %v2398_v51  ;;  %v4945_v11 = vpop.f32.mrb[63].mxu1 }
0x122f   :  { %v2402_v32 = vadd.f32 %v2399_v62, %v2396_v33 }
0x1231   :  { %v2403_v43 = vrot.slane %v2402_v32, 4 }
0x1233   :  { %v2404_v60 = vadd.f32 %v2403_v43, %v2402_v32  ;;  %v4350_v43 = vld [vmem:[#allocation11 + $0x8] ss:$0 sm:$0xff] }
0x1235   :  { %v2405_v40 = vrot.slane %v2404_v60, 2 }
0x1237   :  { %v2406_v20 = vadd.f32 %v2405_v40, %v2404_v60 }
0x1239   :  { %v2407_v50 = vrot.slane %v2406_v20, 1 }
0x123a   :  { %v6699_v28 = vpop.f32.mrb[64].mxu1 }
0x123b   :  { %v2408_v24 = vadd.f32 %v2407_v50, %v2406_v20  ;;  %v6701_v36 = vpop.f32.mrb[65].mxu1  ;;  %v2441_v50 = vstv %s4347_s1 }
0x123c   :  { %v6703_v59 = vpop.f32.mrb[66].mxu1 }
0x123d   :  { %v2410_v41 = vmul.f32 0.0625, %v2408_v24  ;;  %v6707_v7 = vpack.c.bf16 %v6703_v59, %v6699_v28  ;;  %v6709_v12 = vpop.f32.mrb[67].mxu1 }
0x123e   :  { %v6713_v5 = vpack.c.bf16 %v6709_v12, %v6701_v36 }
0x123f   :  { %v2411_v27 = vsub.f32 %v2396_v33, %v2410_v41  ;;  %v2412_v6 = vsub.f32 %v2399_v62, %v2410_v41  ;;  %v4349_v33 = vld [vmem:[#allocation11 + $0x7] ss:$0 sm:$0xff] }
0x1241   :  { %v2413_v47 = vmul.f32 %v2411_v27, %v2411_v27  ;;  %v2414_v30 = vmul.f32 %v2412_v6, %v2412_v6 }
0x1243   :  { %v2415_v9 = vadd.f32 %v2414_v30, %v2413_v47 }
0x1245   :  { %v2416_v46 = vrot.slane %v2415_v9, 4 }
0x1247   :  { %v2417_v35 = vadd.f32 %v2416_v46, %v2415_v9 }
0x1249   :  { %v2418_v34 = vrot.slane %v2417_v35, 2 }
0x124a   :  { %v6715_v25 = vpop.f32.mrb[68].mxu1 }
0x124b   :  { %v2419_v26 = vadd.f32 %v2418_v34, %v2417_v35  ;;  %v6717_v23 = vpop.f32.mrb[69].mxu1  ;;  %v3254_v61 = vmul.f32 %v6715_v25, %v6715_v25 }
0x124c   :  { %v6719_v13 = vpop.f32.mrb[70].mxu1  ;;  %v3252_v15 = vmul.f32 %v6717_v23, %v6717_v23 }
0x124d   :  { %v2420_v0 = vrot.slane %v2419_v26, 1  ;;  %v6723_v22 = vpop.f32.mrb[71].mxu1  ;;  %v3255_v39 = vmul.f32 %v6719_v13, %v6719_v13 }
0x124e   :  { %3256 = vadd.xlane.f32.xlu0 %v3252_v15  ;;  %v3253_v1 = vmul.f32 %v6723_v22, %v6723_v22 }
0x124f   :  { %v2421_v55 = vadd.f32 %v2420_v0, %v2419_v26  ;;  %v1437_v0 = vadd.s32 16, %v5861_v21 }
0x1250   :  { %3258 = vadd.xlane.f32.xlu1 %v3253_v1 }
0x1251   :  { %v2422_v56 = vmul.f32 0.0625, %v2421_v55 }
0x1252   :  { %3260 = vadd.xlane.f32.xlu0 %v3254_v61  ;;  %v1438_v61 = vcvt.s32.f32 %v1437_v0 }
0x1253   :  { %v2423_v4 = vadd.f32 1e-05, %v2422_v56 }
0x1254   :  { %3262 = vadd.xlane.f32.xlu1 %v3255_v39  ;;  %vm1440_vm2 = vcmp.eq.f32.partialorder %v6466_v42, %v1438_v61 }
0x1255   :  { %5178 = vrsqrt.f32 %v2423_v4 }
0x125a   :  { %v5016_v19 = vpop.f32.mrb[72].mxu1 }
0x125b   :  { %v2744_v37 = vpop.f32.mrb[73].mxu1 }
0x125c   :  { %v5017_v44 = vpop.f32.mrb[74].mxu1 }
0x125d   :  { %v2747_v8 = vpop.f32.mrb[75].mxu1 }
0x125e   :  { %v3697_v54 = vadd.f32 %v2747_v8, %v2744_v37 }
0x125f   :  { %v5179_v51 = vpop.eup %5178 }
0x1260   :  { %v2425_v62 = vmul.f32 %v5179_v51, %v2411_v27  ;;  %v2426_v11 = vmul.f32 %v5179_v51, %v2412_v6  ;;  %v3698_v32 = vadd.f32 %v5016_v19, %v3697_v54 }
0x1262   :  { %v2431_v60 = vmul.f32 %v4349_v33, %v2425_v62  ;;  %v2432_v40 = vmul.f32 %v4349_v33, %v2426_v11  ;;  %v3699_v20 = vadd.f32 %v5017_v44, %v3698_v32 }
0x1264   :  { %v2437_v24 = vadd.f32 %v4350_v43, %v2431_v60  ;;  %v2438_v41 = vadd.f32 %v4350_v43, %v2432_v40  ;;  %v3700_v47 = vrot.slane %v3699_v20, 4 }
0x1266   :  { %v3701_v30 = vadd.f32 %v3700_v47, %v3699_v20  ;;  %vm2439_vm8 = vcmp.ge.f32.partialorder %v2437_v24, 0.0  ;;  %vm2440_vm11 = vcmp.ge.f32.partialorder %v2438_v41, 0.0  ;;  %v2442_v9 = vmul.f32 %v2441_v50, %v2437_v24 }
0x1267   :  { %v2443_v46 = vmul.f32 %v2441_v50, %v2438_v41 }
0x1268   :  { %v3702_v35 = vrot.slane %v3701_v30, 2  ;;  %v2444_v34 = vsel %vm2439_vm8, %v2437_v24, %v2442_v9 }
0x1269   :  { %v2445_v26 = vsel %vm2440_vm11, %v2438_v41, %v2443_v46 }
0x126a   :  { %v3703_v15 = vadd.f32 %v3702_v35, %v3701_v30  ;;  %v2446_v27 = vpack.c.bf16 %v2445_v26, %v2444_v34 }
0x126c   :  { %v3704_v6 = vrot.slane %v3703_v15, 1  ;;  %4963 = vmatmul.mubr.bf16.vlgmr.msra.gmra.mrb[64].mxu0 %v2446_v27 }
0x126d   :  { %4991 = vmatpush3.bf16.msra.mxu0 %v6713_v5  ;;  %4994 = vmatprep.mubr.msk.bf16.mxu0 %vm7521_vm15, %v7462_v38 }
0x126e   :  { %v3705_v1 = vadd.f32 %v3704_v6, %v3703_v15  ;;  %4992 = vmatprep.subr.bf16.mxu0 %v7462_v38 }
0x1270   :  { %v3706_v55 = vmul.f32 0.03125, %v3705_v1 }
0x1271   :  { %4993 = vmatpush3.bf16.msra.mxu0 %v6707_v7 }
0x1272   :  { %v3708_v56 = vsub.f32 %v2747_v8, %v3706_v55  ;;  %4998 = vmatprep.subr.bf16.mxu0 %v7462_v38  ;;  %v3707_v39 = vsub.f32 %v2744_v37, %v3706_v55  ;;  %v3709_v4 = vsub.f32 %v5016_v19, %v3706_v55  ;;  %v3710_v54 = vsub.f32 %v5017_v44, %v3706_v55 }
0x1273   :  { %v4361_v19 = vsel %vm1439_vm14, 1.0, %v7462_v38  ;;  %v4362_v37 = vsel %vm1440_vm2, 1.0, %v7462_v38 }
0x1274   :  { %4995 = vmatmul.mubr.msk.bf16.vlgmr.msra.gmra.mrb[68].mxu0 %vm7536_vm9, %v6476_v31  ;;  %v6744_v21 = vpack.c.bf16 %v3708_v56, %v3707_v39  ;;  %v6746_v51 = vpack.c.bf16 %v3710_v54, %v3709_v4  ;;  %v2665_v17 = vpack.c.bf16 %v4362_v37, %v4361_v19 }
0x1275   :  { %4999 = vmatpush3.bf16.msra.mxu0 %v6713_v5  ;;  %5002 = vmatprep.mubr.msk.bf16.mxu0 %vm7521_vm15, %v7462_v38 }
0x1276   :  { %5000 = vmatprep.subr.bf16.mxu0 %v7462_v38 }
0x1279   :  { %5001 = vmatpush3.bf16.msra.mxu0 %v6707_v7 }
0x127a   :  { %5018 = vmatprep.subr.bf16.mxu0 %v7462_v38 }
0x127c   :  { %5003 = vmatmul.mubr.msk.bf16.vlgmr.msra.gmra.mrb[72].mxu0 %vm7537_vm10, %v2665_v17 }
0x127d   :  { %5019 = vmatpush3.bf16.msra.mxu0 %v6403_v52  ;;  %5022 = vmatprep.mubr.msk.bf16.mxu0 %vm7521_vm15, %v7462_v38 }
0x127e   :  { %5020 = vmatprep.subr.bf16.mxu0 %v7462_v38 }
0x1281   :  { %5021 = vmatpush3.bf16.msra.mxu0 %v6401_v49  ;;  %v4346_v49 = vld [vmem:[#allocation12 + $0x1] ss:$0 sm:$0xff] }
0x1284   :  { %5023 = vmatmul.mubr.msk.bf16.vlgmr.msra.gmra.mrb[76].mxu0 %vm7538_vm4, %v6476_v31 }
0x12a1   :  { %v6764_v53 = vpop.f32.mrb[52].mxu0 }
0x12a2   :  { %v6766_v42 = vpop.f32.mrb[53].mxu0 }
0x12a3   :  { %v6768_v7 = vpop.f32.mrb[54].mxu0 }
0x12a4   :  { %v6770_v5 = vpop.f32.mrb[55].mxu0 }
0x12a9   :  { %v6772_v44 = vpop.f32.mrb[56].mxu0 }
0x12aa   :  { %v6774_v52 = vpop.f32.mrb[57].mxu0 }
0x12ab   :  { %v6776_v8 = vpop.f32.mrb[58].mxu0 }
0x12ac   :  { %v6778_v33 = vpop.f32.mrb[59].mxu0 }
0x12c1   :  { %v4924_v62 = vpop.f32.mrb[60].mxu0 }
0x12c2   :  { %v6780_v11 = vadd.f32 %v4924_v62, %v4346_v49  ;;  %v2294_v31 = vpop.f32.mrb[61].mxu0 }
0x12c3   :  { %v4925_v32 = vpop.f32.mrb[62].mxu0  ;;  %v6782_v43 = vadd.f32 %v4346_v49, %v2294_v31 }
0x12c4   :  { %v6784_v60 = vadd.f32 %v4925_v32, %v4346_v49  ;;  %v2297_v40 = vpop.f32.mrb[63].mxu0  ;;  %v3126_v20 = vmul.f32 %v6780_v11, %v6780_v11 }
0x12c5   :  { %v6788_v50 = vadd.f32 %v4346_v49, %v2297_v40  ;;  %v3124_v41 = vmul.f32 %v6782_v43, %v6782_v43 }
0x12c6   :  { %3132 = vadd.xlane.f32.xlu0 %v3126_v20  ;;  %v3127_v24 = vmul.f32 %v6784_v60, %v6784_v60 }
0x12c7   :  { %v3125_v47 = vmul.f32 %v6788_v50, %v6788_v50 }
0x12c8   :  { %3134 = vadd.xlane.f32.xlu1 %v3127_v24 }
0x12ca   :  { %3128 = vadd.xlane.f32.xlu0 %v3124_v41 }
0x12cc   :  { %3130 = vadd.xlane.f32.xlu1 %v3125_v47 }
0x12db   :  { %v3257_v30 = vpop.xlane.xlu0 %3256 }
0x12dc   :  { %5180 = vrsqrt.f32 %v3257_v30  ;;  %vm3266_vm1 = vcmp.eq.f32.partialorder %v3257_v30, inf  ;;  %v3269_v27 = vand.u32 2147483648, %v3257_v30  ;;  %vm3268_vm12 = vcmp.eq.f32.partialorder %v3257_v30, 0.0 }
0x12dd   :  { %v3259_v9 = vpop.xlane.xlu1 %3258 }
0x12de   :  { %5182 = vrsqrt.f32 %v3259_v9  ;;  %vm3273_vm3 = vcmp.eq.f32.partialorder %v3259_v9, inf  ;;  %v3276_v61 = vand.u32 2147483648, %v3259_v9  ;;  %vm3275_vm6 = vcmp.eq.f32.partialorder %v3259_v9, 0.0 }
0x12df   :  { %v3261_v46 = vpop.xlane.xlu0 %3260 }
0x12e0   :  { %5184 = vrsqrt.f32 %v3261_v46  ;;  %vm3280_vm5 = vcmp.eq.f32.partialorder %v3261_v46, inf  ;;  %vm3282_vm13 = vcmp.eq.f32.partialorder %v3261_v46, 0.0  ;;  %v3283_v37 = vand.u32 2147483648, %v3261_v46 }
0x12e1   :  { %v3263_v35 = vpop.xlane.xlu1 %3262 }
0x12e2   :  { %5186 = vrsqrt.f32 %v3263_v35  ;;  %vm3287_vm7 = vcmp.eq.f32.partialorder %v3263_v35, inf  ;;  %v3290_v32 = vand.u32 2147483648, %v3263_v35  ;;  %vm3289_vm8 = vcmp.eq.f32.partialorder %v3263_v35, 0.0 }
0x12e6   :  { %v5181_v34 = vpop.eup %5180 }
0x12e7   :  { %v3265_v26 = vmul.f32 %v5181_v34, %v3257_v30 }
0x12e8   :  { %v5183_v15 = vpop.eup %5182 }
0x12e9   :  { %v3267_v6 = vsel %vm3266_vm1, %v3257_v30, %v3265_v26  ;;  %v3272_v0 = vmul.f32 %v5183_v15, %v3259_v9 }
0x12ea   :  { %v5185_v1 = vpop.eup %5184  ;;  %v3270_v55 = vsel %vm3268_vm12, %v3269_v27, %v3267_v6 }
0x12eb   :  { %v3292_v56 = vmax.f32 %v3270_v55, 1e-12  ;;  %v3274_v39 = vsel %vm3273_vm3, %v3259_v9, %v3272_v0  ;;  %v3279_v4 = vmul.f32 %v5185_v1, %v3261_v46 }
0x12ec   :  { %v5187_v54 = vpop.eup %5186  ;;  %v3277_v19 = vsel %vm3275_vm6, %v3276_v61, %v3274_v39 }
0x12ed   :  { %5188 = vrcp.f32 %v3292_v56  ;;  %v3293_v17 = vmax.f32 %v3277_v19, 1e-12  ;;  %v3281_v49 = vsel %vm3280_vm5, %v3261_v46, %v3279_v4  ;;  %v3286_v62 = vmul.f32 %v5187_v54, %v3263_v35  ;;  %v4351_v56 = vld [vmem:[#allocation12 + $0x2] ss:$0 sm:$0xff] }
0x12ee   :  { %v3284_v31 = vsel %vm3282_vm13, %v3283_v37, %v3281_v49 }
0x12ef   :  { %5190 = vrcp.f32 %v3293_v17  ;;  %v3294_v40 = vmax.f32 %v3284_v31, 1e-12  ;;  %v3288_v20 = vsel %vm3287_vm7, %v3263_v35, %v3286_v62 }
0x12f0   :  { %v3291_v24 = vsel %vm3289_vm8, %v3290_v32, %v3288_v20 }
0x12f1   :  { %5192 = vrcp.f32 %v3294_v40  ;;  %v3295_v41 = vmax.f32 %v3291_v24, 1e-12 }
0x12f3   :  { %5194 = vrcp.f32 %v3295_v41 }
0x12f7   :  { %v5189_v47 = vpop.eup %5188 }
0x12f8   :  { %v3297_v9 = vmul.f32 %v5189_v47, %v6717_v23 }
0x12f9   :  { %v5191_v30 = vpop.eup %5190 }
0x12fa   :  { %v3299_v34 = vmul.f32 %v5191_v30, %v6723_v22 }
0x12fb   :  { %v5193_v26 = vpop.eup %5192 }
0x12fc   :  { %v3306_v46 = vpack.c.bf16 %v3299_v34, %v3297_v9  ;;  %v3301_v27 = vmul.f32 %v5193_v26, %v6715_v25  ;;  %v3176_v26 = vmul.f32 %v6701_v36, %v6701_v36 }
0x12fd   :  { %v5195_v15 = vpop.eup %5194 }
0x12fe   :  { %5026 = vmatprep.subr.bf16.mxu0 %v3306_v46  ;;  %5035 = vmatpush3.bf16.xpose.msra.mxu1 %v3306_v46  ;;  %v3303_v6 = vmul.f32 %v5195_v15, %v6719_v13 }
0x12ff   :  { %5027 = vmatpush3.bf16.xpose.msra.mxu0 %v3306_v46  ;;  %5036 = vmatprep.subr.bf16.mxu1 %v7462_v38 }
0x1300   :  { %v3307_v35 = vpack.c.bf16 %v3303_v6, %v3301_v27 }
0x1302   :  { %5028 = vmatprep.subr.bf16.mxu0 %v3307_v35 }
0x1306   :  { %5037 = vmatpush3.bf16.xpose.msra.mxu1 %v3307_v35 }
0x1307   :  { %5029 = vmatpush3.bf16.xpose.msra.mxu0 %v3307_v35  ;;  %5048 = vmatprep.subr.bf16.mxu1 %v6419_v58 }
0x1308   :  { %5042 = vmatprep.subr.bf16.mxu0 %v7462_v38 }
0x133f   :  { %v2493_v23 = vpop.f32.mrb[64].mxu0 }
0x1340   :  { %v4964_v22 = vpop.f32.mrb[65].mxu0  ;;  %v6809_v4 = vadd.f32 %v4351_v56, %v2493_v23 }
0x1341   :  { %v2496_v0 = vpop.f32.mrb[66].mxu0 }
0x1342   :  { %v4965_v1 = vpop.f32.mrb[67].mxu0  ;;  %v6815_v17 = vadd.f32 %v4351_v56, %v2496_v0  ;;  %v3431_v32 = vmul.f32 %v6809_v4, %v6809_v4 }
0x1344   :  { %v3432_v20 = vmul.f32 %v6815_v17, %v6815_v17 }
0x1347   :  { %v6803_v55 = vpop.f32.mrb[68].mxu0 }
0x1348   :  { %7539 = vst [vmem:[#allocation30_spill] sm:$0xff] %v6803_v55  ;;  %v4996_v25 = vpop.f32.mrb[69].mxu0 }
0x1349   :  { %v6805_v61 = vpop.f32.mrb[70].mxu0 }
0x134a   :  { %7540 = vst [vmem:[#allocation29_spill] sm:$0xff] %v6805_v61  ;;  %v4997_v13 = vpop.f32.mrb[71].mxu0 }
0x134f   :  { %v6807_v39 = vpop.f32.mrb[72].mxu0 }
0x1350   :  { %v5004_v54 = vpop.f32.mrb[73].mxu0  ;;  %v3551_v19 = vmul.f32 %v6807_v39, %v6807_v39 }
0x1351   :  { %v6813_v37 = vpop.f32.mrb[74].mxu0 }
0x1352   :  { %v5005_v49 = vpop.f32.mrb[75].mxu0  ;;  %3553 = vadd.xlane.f32.xlu0 %v3551_v19  ;;  %v3552_v62 = vmul.f32 %v6813_v37, %v6813_v37 }
0x1353   :  { %v3133_v31 = vpop.xlane.xlu0 %3132 }
0x1354   :  { %5196 = vrsqrt.f32 %v3133_v31  ;;  %3555 = vadd.xlane.f32.xlu1 %v3552_v62  ;;  %vm3152_vm11 = vcmp.eq.f32.partialorder %v3133_v31, inf  ;;  %v3155_v0 = vand.u32 2147483648, %v3133_v31  ;;  %vm3154_vm9 = vcmp.eq.f32.partialorder %v3133_v31, 0.0 }
0x1355   :  { %v3135_v40 = vpop.xlane.xlu1 %3134 }
0x1356   :  { %5198 = vrsqrt.f32 %v3135_v40  ;;  %3433 = vadd.xlane.f32.xlu0 %v3431_v32  ;;  %vm3159_vm14 = vcmp.eq.f32.partialorder %v3135_v40, inf  ;;  %vm3161_vm2 = vcmp.eq.f32.partialorder %v3135_v40, 0.0  ;;  %v3162_v56 = vand.u32 2147483648, %v3135_v40 }
0x1357   :  { %v3129_v24 = vpop.xlane.xlu0 %3128  ;;  %v2793_v41 = vpop.f32.mrb[76].mxu0 }
0x1358   :  { %5200 = vrsqrt.f32 %v3129_v24  ;;  %v5024_v47 = vpop.f32.mrb[77].mxu0  ;;  %3435 = vadd.xlane.f32.xlu1 %v3432_v20  ;;  %vm3138_vm10 = vcmp.eq.f32.partialorder %v3129_v24, inf  ;;  %vm3140_vm4 = vcmp.eq.f32.partialorder %v3129_v24, 0.0 }
0x1359   :  { %v3131_v30 = vpop.xlane.xlu1 %3130  ;;  %v2796_v9 = vpop.f32.mrb[78].mxu0  ;;  %v3141_v47 = vand.u32 2147483648, %v3129_v24 }
0x135a   :  { %5202 = vrsqrt.f32 %v3131_v30  ;;  %v5025_v34 = vpop.f32.mrb[79].mxu0  ;;  %v3976_v46 = vadd.f32 %v2796_v9, %v2793_v41  ;;  %vm3145_vm1 = vcmp.eq.f32.partialorder %v3131_v30, inf  ;;  %vm3147_vm12 = vcmp.eq.f32.partialorder %v3131_v30, 0.0 }
0x135c   :  { %3180 = vadd.xlane.f32.xlu1 %v3176_v26  ;;  %v3977_v15 = vrot.slane %v3976_v46, 4 }
0x135e   :  { %v5197_v27 = vpop.eup %5196  ;;  %v3978_v35 = vadd.f32 %v3977_v15, %v3976_v46 }
0x135f   :  { %v3151_v6 = vmul.f32 %v5197_v27, %v3133_v31 }
0x1360   :  { %v5199_v23 = vpop.eup %5198  ;;  %v3979_v25 = vrot.slane %v3978_v35, 2 }
0x1361   :  { %v3153_v22 = vsel %vm3152_vm11, %v3133_v31, %v3151_v6  ;;  %v3158_v1 = vmul.f32 %v5199_v23, %v3135_v40  ;;  %v3148_v6 = vand.u32 2147483648, %v3131_v30 }
0x1362   :  { %v5201_v13 = vpop.eup %5200  ;;  %v3156_v54 = vsel %vm3154_vm9, %v3155_v0, %v3153_v22  ;;  %v3980_v62 = vadd.f32 %v3979_v25, %v3978_v35 }
0x1363   :  { %v3160_v19 = vsel %vm3159_vm14, %v3135_v40, %v3158_v1  ;;  %v3137_v49 = vmul.f32 %v5201_v13, %v3129_v24  ;;  %v3166_v15 = vmax.f32 %v3156_v54, 1e-12 }
0x1364   :  { %v5203_v32 = vpop.eup %5202  ;;  %v3163_v20 = vsel %vm3161_vm2, %v3162_v56, %v3160_v19  ;;  %v3981_v31 = vrot.slane %v3980_v62, 1  ;;  %vm7545_vm2 = vcmask 261120  }
0x1365   :  { %v3167_v34 = vmax.f32 %v3163_v20, 1e-12  ;;  %v3139_v26 = vsel %vm3138_vm10, %v3129_v24, %v3137_v49  ;;  %v3144_v46 = vmul.f32 %v5203_v32, %v3131_v30  ;;  %vm7546_vm10 = vmmov %vm7545_vm2 }
0x1366   :  { %v3142_v27 = vsel %vm3140_vm4, %v3141_v47, %v3139_v26  ;;  %v3982_v22 = vadd.f32 %v3981_v31, %v3980_v62  ;;  %v6868_v47 = vld [vmem:[%s7391_s2] sm:$0xff]  ;;  %v6878_v26 = vld [vmem:[%s7391_s2 + $0x8] sm:$0xff]  ;;  %vm7547_vm4 = vmmov %vm7545_vm2 }
0x1367   :  { %v3164_v23 = vmax.f32 %v3142_v27, 1e-12  ;;  %v3146_v3 = vsel %vm3145_vm1, %v3131_v30, %v3144_v46  ;;  %5204 = vrcp.f32 %v3167_v34  ;;  %v2905_v46 = vmul.f32 %v6878_v26, %v6878_v26  ;;  %vm7548_vm1 = vmmov %vm7545_vm2 }
0x1368   :  { %v3149_v40 = vsel %vm3147_vm12, %v3148_v6, %v3146_v3  ;;  %v3983_v0 = vmul.f32 0.0625, %v3982_v22  ;;  %vm7549_vm12 = vmmov %vm7548_vm1 }
0x1369   :  { %5206 = vrcp.f32 %v3164_v23  ;;  %v3165_v35 = vmax.f32 %v3149_v40, 1e-12  ;;  %v6902_v23 = vld [vmem:[%s7391_s2 + $0x18] sm:$0xff] }
0x136a   :  { %5208 = vrcp.f32 %v3166_v15  ;;  %v3985_v1 = vsub.f32 %v2796_v9, %v3983_v0  ;;  %v3984_v25 = vsub.f32 %v2793_v41, %v3983_v0  ;;  %v2907_v40 = vmul.f32 %v6902_v23, %v6902_v23 }
0x136b   :  { %5210 = vrcp.f32 %v3165_v35  ;;  %v6914_v35 = vld [vmem:[%s7391_s2 + $0x20] sm:$0xff] }
0x136c   :  { %v4011_v24 = vpack.c.bf16 %v3985_v1, %v3984_v25  ;;  %v2908_v0 = vmul.f32 %v6914_v35, %v6914_v35  ;;  %v6926_v25 = vld [vmem:[%s7391_s2 + $0x28] sm:$0xff] }
0x1371   :  { %v5205_v13 = vpop.eup %5204 }
0x1372   :  { %v6826_v49 = vmul.f32 %v5205_v13, %v6784_v60  ;;  %v4341_v60 = vld [vmem:[#allocation12] ss:$0 sm:$0xff] }
0x1373   :  { %v5207_v56 = vpop.eup %5206  ;;  %v6852_v32 = vadd.f32 %v4341_v60, %v6766_v42  ;;  %v6873_v34 = vadd.f32 %v6764_v53, %v4341_v60  ;;  %v6883_v15 = vadd.f32 %v6768_v7, %v4341_v60  ;;  %v6890_v53 = vld [vmem:[%s7391_s2 + $0x10] sm:$0xff]  ;;  %v6895_v31 = vadd.f32 %v4341_v60, %v6774_v52 }
0x1374   :  { %v5209_v54 = vpop.eup %5208  ;;  %v6829_v30 = vmul.f32 %v5207_v56, %v6782_v43  ;;  %v3178_v43 = vmul.f32 %v6699_v28, %v6699_v28  ;;  %v2906_v6 = vmul.f32 %v6890_v53, %v6890_v53  ;;  %v6907_v22 = vadd.f32 %v4341_v60, %v6778_v33  ;;  %v6938_v56 = vld [vmem:[%s7391_s2 + $0x30] sm:$0xff] }
0x1375   :  { %v5211_v19 = vpop.eup %5210  ;;  %v6835_v62 = vmul.f32 %v5209_v54, %v6780_v11  ;;  %v3177_v11 = vmul.f32 %v6709_v12, %v6709_v12  ;;  %v2800_v20 = vmul.f32 %v6852_v32, %v6852_v32  ;;  %v2802_v27 = vmul.f32 %v6873_v34, %v6873_v34 }
0x1376   :  { %v6832_v3 = vmul.f32 %v5211_v19, %v6788_v50  ;;  %v3179_v50 = vmul.f32 %v6703_v59, %v6703_v59  ;;  %v2803_v7 = vmul.f32 %v6883_v15, %v6883_v15  ;;  %v2804_v52 = vmul.f32 %v6895_v31, %v6895_v31 }
0x1377   :  { %v3305_v9 = vpack.c.bf16 %v6826_v49, %v6835_v62  ;;  %v6919_v1 = vadd.f32 %v6772_v44, %v4341_v60  ;;  %v2805_v33 = vmul.f32 %v6907_v22, %v6907_v22  ;;  %v6931_v13 = vadd.f32 %v6776_v8, %v4341_v60  ;;  %v6947_v8 = vld [vmem:[%s7391_s2 + $0x38] sm:$0xff]  ;;  %s5619_s2 = smov [#allocation15]  }
0x1378   :  { %7541 = vst [vmem:[#allocation32_spill] sm:$0xff] %v6832_v3  ;;  %v3304_v41 = vpack.c.bf16 %v6832_v3, %v6829_v30  ;;  %v2910_v54 = vmul.f32 %v6938_v56, %v6938_v56  ;;  %s4236_s7 = sshll.u32 %s5619_s2, 4  ;;  %s4237_s7 = int_to_ptr.vmem [resolvable:$true] %s4236_s7 }
0x1379   :  { %v2806_v44 = vmul.f32 %v6919_v1, %v6919_v1  ;;  %v2807_v19 = vmul.f32 %v6931_v13, %v6931_v13  ;;  %s5550_s3 = scalar_lea.vmem %s4237_s7, 1024  ;;  %p5555_p10 = scmp.lt.s32.totalorder %s4237_s7, %s4237_s7 }
0x137a   :  { %5030 = vmatprep.mubr.bf16.mxu0 %v3304_v41  ;;  %v2911_v41 = vmul.f32 %v6947_v8, %v6947_v8  ;;  %p5551_p9 = scmp.ne.s32.totalorder %s4237_s7, %s5550_s3  ;;  %p5556_p11 = scmp.lt.s32.totalorder %s5550_s3, %s5550_s3 }
0x137b   :  { %5031 = vmatmul.mubr.bf16.vlgmr.msra.gmra.mrb[80].mxu0 %v3305_v9 }
0x137c   :  { %5044 = vmatprep.mubr.msk.bf16.mxu0 %vm7521_vm15, %v7462_v38  ;;  %v3457_v38 = vmul.f32 %v6803_v55, %v6803_v55  ;;  %p5557_p12 = por %p5556_p11, %p5555_p10 }
0x137e   :  { %p5558_p13 = pnand %p5557_p12, %p5551_p9 }
0x1383   :  { %3769 = vxpose.xlu0.c.b16.start [1/2] (short) %v6744_v21, 128  ;;  %v6857_v21 = vadd.f32 %v4341_v60, %v6770_v5  ;;  %v2904_v5 = vmul.f32 %v6868_v47, %v6868_v47 }
0x1385   :  { %v2801_v42 = vmul.f32 %v6857_v21, %v6857_v21 }
0x1387   :  { %3770 = vxpose.xlu0.c.b16.end [2/2] (short) %v6746_v51, 128  ;;  %v3458_v51 = vmul.f32 %v6805_v61, %v6805_v61 }
0x1389   :  { %4013 = vxpose.xlu1.c.b16.start.end [1/1] (short) %v4011_v24, 128  ;;  %v2909_v24 = vmul.f32 %v6926_v25, %v6926_v25 }
0x13ac   :  { %3182 = vadd.xlane.f32.xlu0 %v3177_v11 }
0x13b0   :  { %3184 = vadd.xlane.f32.xlu0 %v3178_v43 }
0x13b2   :  { %3186 = vadd.xlane.f32.xlu1 %v3179_v50 }
0x13b4   :  { %3459 = vadd.xlane.f32.xlu0 %v3457_v38 }
0x13b6   :  { %3461 = vadd.xlane.f32.xlu1 %v3458_v51 }
0x13b8   :  { %2808 = vadd.xlane.f32.xlu0 %v2800_v20 }
0x13ba   :  { %2810 = vadd.xlane.f32.xlu1 %v2801_v42 }
0x13bc   :  { %2912 = vadd.xlane.f32.xlu0 %v2904_v5 }
0x13be   :  { %2914 = vadd.xlane.f32.xlu1 %v2905_v46 }
0x13c0   :  { %2812 = vadd.xlane.f32.xlu0 %v2802_v27 }
0x13c2   :  { %2916 = vadd.xlane.f32.xlu1 %v2906_v6 }
0x13c4   :  { %2814 = vadd.xlane.f32.xlu0 %v2803_v7 }
0x13c6   :  { %2918 = vadd.xlane.f32.xlu1 %v2907_v40 }
0x13c8   :  { %2816 = vadd.xlane.f32.xlu0 %v2804_v52 }
0x13ca   :  { %2920 = vadd.xlane.f32.xlu1 %v2908_v0 }
0x13cc   :  { %2818 = vadd.xlane.f32.xlu0 %v2805_v33 }
0x13ce   :  { %2922 = vadd.xlane.f32.xlu1 %v2909_v24 }
0x13d0   :  { %2820 = vadd.xlane.f32.xlu0 %v2806_v44 }
0x13d2   :  { %2924 = vadd.xlane.f32.xlu1 %v2910_v54 }
0x13d4   :  { %2822 = vadd.xlane.f32.xlu0 %v2807_v19 }
0x13d6   :  { %2926 = vadd.xlane.f32.xlu1 %v2911_v41 }
0x13df   :  { %v3554_v9 = vpop.xlane.xlu0 %3553 }
0x13e0   :  { %5212 = vrsqrt.f32 %v3554_v9  ;;  %vm3559_vm15 = vcmp.eq.f32.partialorder %v3554_v9, inf  ;;  %v3562_v42 = vand.u32 2147483648, %v3554_v9  ;;  %vm3561_vm3 = vcmp.eq.f32.partialorder %v3554_v9, 0.0 }
0x13e1   :  { %v3556_v11 = vpop.xlane.xlu1 %3555 }
0x13e2   :  { %5214 = vrsqrt.f32 %v3556_v11  ;;  %vm3566_vm6 = vcmp.eq.f32.partialorder %v3556_v11, inf  ;;  %v3569_v7 = vand.u32 2147483648, %v3556_v11  ;;  %vm3568_vm5 = vcmp.eq.f32.partialorder %v3556_v11, 0.0 }
0x13e3   :  { %v3434_v43 = vpop.xlane.xlu0 %3433 }
0x13e4   :  { %5216 = vrsqrt.f32 %v3434_v43  ;;  %vm3439_vm13 = vcmp.eq.f32.partialorder %v3434_v43, inf  ;;  %vm3441_vm7 = vcmp.eq.f32.partialorder %v3434_v43, 0.0  ;;  %v3442_v44 = vand.u32 2147483648, %v3434_v43 }
0x13e5   :  { %v3436_v60 = vpop.xlane.xlu1 %3435 }
0x13e6   :  { %5218 = vrsqrt.f32 %v3436_v60  ;;  %vm3446_vm8 = vcmp.eq.f32.partialorder %v3436_v60, inf  ;;  %vm3448_vm11 = vcmp.eq.f32.partialorder %v3436_v60, 0.0 }
0x13e9   :  { %v3181_v50 = vpop.xlane.xlu1 %3180 }
0x13ea   :  { %v5213_v38 = vpop.eup %5212  ;;  %5220 = vrsqrt.f32 %v3181_v50  ;;  %vm3190_vm9 = vcmp.eq.f32.partialorder %v3181_v50, inf  ;;  %vm3192_vm14 = vcmp.eq.f32.partialorder %v3181_v50, 0.0 }
0x13eb   :  { %v3558_v51 = vmul.f32 %v5213_v38, %v3554_v9 }
0x13ec   :  { %v5215_v20 = vpop.eup %5214 }
0x13ed   :  { %v3560_v5 = vsel %vm3559_vm15, %v3554_v9, %v3558_v51  ;;  %v3565_v46 = vmul.f32 %v5215_v20, %v3556_v11  ;;  %v3449_v9 = vand.u32 2147483648, %v3436_v60  ;;  %vm7550_vm15 = vmmov %vm7548_vm1 }
0x13ee   :  { %v5217_v27 = vpop.eup %5216  ;;  %v3563_v6 = vsel %vm3561_vm3, %v3562_v42, %v3560_v5  ;;  %vm7551_vm3 = vmmov %vm7548_vm1 }
0x13ef   :  { %v3571_v40 = vmax.f32 %v3563_v6, 1e-12  ;;  %v3567_v52 = vsel %vm3566_vm6, %v3556_v11, %v3565_v46  ;;  %v3438_v0 = vmul.f32 %v5217_v27, %v3434_v43  ;;  %v3193_v27 = vand.u32 2147483648, %v3181_v50  ;;  %vm7552_vm6 = vmmov %vm7548_vm1 }
0x13f0   :  { %v5219_v33 = vpop.eup %5218  ;;  %v3570_v24 = vsel %vm3568_vm5, %v3569_v7, %v3567_v52 }
0x13f1   :  { %5222 = vrcp.f32 %v3571_v40  ;;  %v3572_v54 = vmax.f32 %v3570_v24, 1e-12  ;;  %v3440_v19 = vsel %vm3439_vm13, %v3434_v43, %v3438_v0  ;;  %v3445_v41 = vmul.f32 %v5219_v33, %v3436_v60  ;;  %v3777_v40 = vpop.trf.xlu0  ;;  %v4021_v33 = vpop.trf.xlu1 }
0x13f2   :  { %v3443_v38 = vsel %vm3441_vm7, %v3442_v44, %v3440_v19 }
0x13f3   :  { %5224 = vrcp.f32 %v3572_v54  ;;  %v3451_v51 = vmax.f32 %v3443_v38, 1e-12  ;;  %v3447_v20 = vsel %vm3446_vm8, %v3436_v60, %v3445_v41 }
0x13f4   :  { %v5221_v42 = vpop.eup %5220  ;;  %v3450_v5 = vsel %vm3448_vm11, %v3449_v9, %v3447_v20 }
0x13f5   :  { %5226 = vrcp.f32 %v3451_v51  ;;  %v3452_v11 = vmax.f32 %v3450_v5, 1e-12  ;;  %v3189_v46 = vmul.f32 %v5221_v42, %v3181_v50  ;;  %v3778_v19 = vpop.trf.xlu0  ;;  %v4022_v9 = vpop.trf.xlu1 }
0x13f7   :  { %5228 = vrcp.f32 %v3452_v11  ;;  %v3191_v6 = vsel %vm3190_vm9, %v3181_v50, %v3189_v46 }
0x13f8   :  { %v3194_v7 = vsel %vm3192_vm14, %v3193_v27, %v3191_v6 }
0x13f9   :  { %v3216_v43 = vmax.f32 %v3194_v7, 1e-12 }
0x13fb   :  { %v5223_v52 = vpop.eup %5222  ;;  %5230 = vrcp.f32 %v3216_v43 }
0x13fc   :  { %v3574_v24 = vmul.f32 %v5223_v52, %v6807_v39 }
0x13fd   :  { %v5225_v0 = vpop.eup %5224 }
0x13fe   :  { %v3576_v60 = vmul.f32 %v5225_v0, %v6813_v37  ;;  %v3779_v37 = vpop.trf.xlu0 }
0x13ff   :  { %v5227_v44 = vpop.eup %5226 }
0x1400   :  { %v3577_v54 = vpack.c.bf16 %v3576_v60, %v3574_v24  ;;  %v6954_v38 = vmul.f32 %v5227_v44, %v6809_v4  ;;  %v4023_v4 = vpop.trf.xlu1 }
0x1401   :  { %v5229_v41 = vpop.eup %5228 }
0x1402   :  { %5043 = vmatpush3.bf16.xpose.msra.mxu0 %v3577_v54  ;;  %7542 = vst [vmem:[#allocation31_spill] sm:$0xff] %v6954_v38  ;;  %v6957_v50 = vmul.f32 %v5229_v41, %v6815_v17  ;;  %v3780_v17 = vpop.trf.xlu0 }
0x1403   :  { %5068 = vmatprep.subr.bf16.mxu0 %v6591_v10 }
0x1404   :  { %7543 = vst [vmem:[#allocation38_spill] sm:$0xff] %v6957_v50  ;;  %v3495_v51 = vpack.c.bf16 %v6957_v50, %v6954_v38  ;;  %v4024_v42 = vpop.trf.xlu1 }
0x1405   :  { %v5231_v39 = vpop.eup %5230 }
0x1406   :  { %5039 = vmatmul.mubr.bf16.vlgmr.msra.gmra.mrb[76].mxu1 %v3495_v51  ;;  %v6963_v20 = vmul.f32 %v5231_v39, %v6701_v36 }
0x1407   :  { %5049 = vmatpush3.bf16.msra.mxu1 %v6419_v58  ;;  %5052 = vmatprep.mubr.msk.bf16.mxu1 %vm7545_vm2, %v3777_v40  ;;  %v3781_v58 = vpop.trf.xlu0 }
0x1408   :  { %7544 = vst [vmem:[#allocation39_spill] sm:$0xff] %v6963_v20  ;;  %5050 = vmatprep.subr.bf16.mxu1 %v6421_v14  ;;  %v4025_v36 = vpop.trf.xlu1 }
0x1409   :  { %5045 = vmatmul.mubr.bf16.vlgmr.msra.gmra.mrb[84].mxu0 %v3495_v51 }
0x140a   :  { %5069 = vmatpush3.bf16.msra.mxu0 %v6591_v10  ;;  %5070 = vmatprep.mubr.msk.bf16.mxu0 %vm7437_vm0, %v4021_v33 }
0x140b   :  { %5051 = vmatpush3.bf16.msra.mxu1 %v6421_v14  ;;  %v3782_v10 = vpop.trf.xlu0 }
0x140c   :  { %v4026_v14 = vpop.trf.xlu1 }
0x140e   :  { %5053 = vmatmul.mubr.msk.bf16.vlgmr.msra.gmra.mrb[80].mxu1 %vm7546_vm10, %v3778_v19 }
0x140f   :  { %5056 = vmatprep.mubr.msk.bf16.mxu1 %vm7547_vm4, %v3779_v37  ;;  %v3783_v5 = vpop.trf.xlu0 }
0x1410   :  { %v4027_v11 = vpop.trf.xlu1 }
0x1411   :  { %5071 = vmatmul.mubr.msk.bf16.vlgmr.msra.gmra.mrb[88].mxu0 %vm7437_vm0, %v4022_v9 }
0x1412   :  { %5074 = vmatprep.mubr.msk.bf16.mxu0 %vm7437_vm0, %v4023_v4 }
0x1413   :  { %v3784_v46 = vpop.trf.xlu0 }
0x1414   :  { %v4028_v27 = vpop.trf.xlu1 }
0x1416   :  { %5057 = vmatmul.mubr.msk.bf16.gmra.mrb[84].mxu1 %vm7548_vm1, %v3780_v17 }
0x1417   :  { %5060 = vmatprep.mubr.msk.bf16.mxu1 %vm7549_vm12, %v3781_v58 }
0x1419   :  { %5075 = vmatmul.mubr.msk.bf16.gmra.mrb[92].mxu0 %vm7437_vm0, %v4024_v42 }
0x141a   :  { %5078 = vmatprep.mubr.msk.bf16.mxu0 %vm7437_vm0, %v4025_v36 }
0x141e   :  { %5061 = vmatmul.mubr.msk.bf16.gmra.mrb[88].mxu1 %vm7550_vm15, %v3782_v10 }
0x141f   :  { %5064 = vmatprep.mubr.msk.bf16.mxu1 %vm7551_vm3, %v3783_v5 }
0x1421   :  { %5079 = vmatmul.mubr.msk.bf16.gmra.mrb[96].mxu0 %vm7437_vm0, %v4026_v14 }
0x1422   :  { %5082 = vmatprep.mubr.msk.bf16.mxu0 %vm7437_vm0, %v4027_v11 }
0x1426   :  { %5065 = vmatmul.mubr.msk.bf16.gmra.mrb[92].mxu1 %vm7552_vm6, %v3784_v46 }
0x1429   :  { %5083 = vmatmul.mubr.msk.bf16.gmra.mrb[100].mxu0 %vm7437_vm0, %v4028_v27 }
0x1439   :  { %v3183_v6 = vpop.xlane.xlu0 %3182 }
0x143a   :  { %5232 = vrsqrt.f32 %v3183_v6  ;;  %vm3197_vm5 = vcmp.eq.f32.partialorder %v3183_v6, inf  ;;  %vm3199_vm13 = vcmp.eq.f32.partialorder %v3183_v6, 0.0  ;;  %v3200_v39 = vand.u32 2147483648, %v3183_v6 }
0x143d   :  { %v3185_v7 = vpop.xlane.xlu0 %3184 }
0x143e   :  { %5234 = vrsqrt.f32 %v3185_v7  ;;  %vm3204_vm7 = vcmp.eq.f32.partialorder %v3185_v7, inf  ;;  %vm3206_vm8 = vcmp.eq.f32.partialorder %v3185_v7, 0.0  ;;  %v3207_v17 = vand.u32 2147483648, %v3185_v7 }
0x143f   :  { %v6985_v43 = vpop.xlane.xlu1 %3186 }
0x1440   :  { %5236 = vrsqrt.f32 %v6985_v43  ;;  %vm3211_vm11 = vcmp.eq.f32.partialorder %v6985_v43, inf  ;;  %vm3213_vm9 = vcmp.eq.f32.partialorder %v6985_v43, 0.0  ;;  %v3214_v5 = vand.u32 2147483648, %v6985_v43 }
0x1441   :  { %v6987_v40 = vpop.xlane.xlu0 %3459 }
0x1442   :  { %vm3465_vm14 = vcmp.eq.f32.partialorder %v6987_v40, inf }
0x1443   :  { %v6990_v52 = vpop.xlane.xlu1 %3461 }
0x1444   :  { %v5233_v24 = vpop.eup %5232 }
0x1445   :  { %v6992_v0 = vpop.xlane.xlu0 %2808  ;;  %v3196_v54 = vmul.f32 %v5233_v24, %v3183_v6 }
0x1446   :  { %5238 = vrsqrt.f32 %v6992_v0  ;;  %vm2826_vm2 = vcmp.eq.f32.partialorder %v6992_v0, inf  ;;  %vm2828_vm10 = vcmp.eq.f32.partialorder %v6992_v0, 0.0  ;;  %v2829_v29 = vand.u32 2147483648, %v6992_v0 }
0x1447   :  { %5240 = vrsqrt.f32 %v6987_v40  ;;  %v6996_v33 = vpop.xlane.xlu1 %2810  ;;  %v3198_v4 = vsel %vm3197_vm5, %v3183_v6, %v3196_v54 }
0x1448   :  { %5242 = vrsqrt.f32 %v6996_v33  ;;  %v5235_v60 = vpop.eup %5234  ;;  %vm2833_vm4 = vcmp.eq.f32.partialorder %v6996_v33, inf  ;;  %vm2835_vm1 = vcmp.eq.f32.partialorder %v6996_v33, 0.0 }
0x1449   :  { %v6999_v44 = vpop.xlane.xlu0 %2912  ;;  %v3203_v41 = vmul.f32 %v5235_v60, %v3185_v7 }
0x144a   :  { %5244 = vrsqrt.f32 %v6999_v44  ;;  %v5237_v9 = vpop.eup %5236  ;;  %vm2930_vm12 = vcmp.eq.f32.partialorder %v6999_v44, inf  ;;  %vm2932_vm15 = vcmp.eq.f32.partialorder %v6999_v44, 0.0 }
0x144b   :  { %v7002_v19 = vpop.xlane.xlu1 %2914  ;;  %v3205_v10 = vsel %vm3204_vm7, %v3185_v7, %v3203_v41  ;;  %v3210_v14 = vmul.f32 %v5237_v9, %v6985_v43  ;;  %v7030_v41 = vsel %vm3199_vm13, %v3200_v39, %v3198_v4 }
0x144c   :  { %5246 = vrsqrt.f32 %v7002_v19  ;;  %v7036_v27 = vsel %vm3206_vm8, %v3207_v17, %v3205_v10  ;;  %v2933_v17 = vand.u32 2147483648, %v6999_v44  ;;  %vm2937_vm3 = vcmp.eq.f32.partialorder %v7002_v19, inf }
0x144d   :  { %v7005_v51 = vpop.xlane.xlu0 %2812  ;;  %v3212_v39 = vsel %vm3211_vm11, %v6985_v43, %v3210_v14  ;;  %vm2939_vm6 = vcmp.eq.f32.partialorder %v7002_v19, 0.0 }
0x144e   :  { %v7007_v37 = vpop.f32.mrb[80].mxu0  ;;  %5248 = vrsqrt.f32 %v7005_v51  ;;  %vm2840_vm5 = vcmp.eq.f32.partialorder %v7005_v51, inf  ;;  %vm2842_vm13 = vcmp.eq.f32.partialorder %v7005_v51, 0.0  ;;  %v2843_v45 = vand.u32 2147483648, %v7005_v51 }
0x144f   :  { %v7012_v42 = vpop.f32.mrb[81].mxu0  ;;  %v7014_v58 = vpop.xlane.xlu1 %2916 }
0x1450   :  { %v5239_v36 = vpop.eup %5238  ;;  %v7018_v11 = vpop.f32.mrb[82].mxu0  ;;  %5250 = vrsqrt.f32 %v7014_v58  ;;  %vm2944_vm7 = vcmp.eq.f32.partialorder %v7014_v58, inf  ;;  %vm2946_vm8 = vcmp.eq.f32.partialorder %v7014_v58, 0.0 }
0x1451   :  { %7553 = vst [vmem:[#allocation40_spill] sm:$0xff] %v7018_v11  ;;  %v5241_v46 = vpop.eup %5240  ;;  %5252 = vrsqrt.f32 %v6990_v52  ;;  %v7025_v24 = vpop.f32.mrb[83].mxu0  ;;  %v2825_v9 = vmul.f32 %v5239_v36, %v6992_v0  ;;  %v2836_v36 = vand.u32 2147483648, %v6996_v33 }
0x1452   :  { %v7027_v60 = vpop.xlane.xlu0 %2814  ;;  %v5243_v54 = vpop.eup %5242  ;;  %v3464_v4 = vmul.f32 %v5241_v46, %v6987_v40  ;;  %v2940_v46 = vand.u32 2147483648, %v7002_v19 }
0x1453   :  { %v2832_v48 = vmul.f32 %v5243_v54, %v6996_v33  ;;  %v7041_v2 = vpop.xlane.xlu1 %2918  ;;  %v2827_v14 = vsel %vm2826_vm2, %v6992_v0, %v2825_v9  ;;  %5254 = vrsqrt.f32 %v7027_v60  ;;  %vm2847_vm11 = vcmp.eq.f32.partialorder %v7027_v60, inf }
0x1454   :  { %v5245_v6 = vpop.eup %5244  ;;  %v7075_v9 = vsel %vm3465_vm14, %v6987_v40, %v3464_v4  ;;  %5256 = vrsqrt.f32 %v7041_v2  ;;  %vm2951_vm14 = vcmp.eq.f32.partialorder %v7041_v2, inf  ;;  %vm2953_vm2 = vcmp.eq.f32.partialorder %v7041_v2, 0.0 }
0x1455   :  { %v2929_v7 = vmul.f32 %v5245_v6, %v6999_v44  ;;  %v7063_v6 = vsel %vm3213_vm9, %v3214_v5, %v3212_v39  ;;  %v2834_v57 = vsel %vm2833_vm4, %v6996_v33, %v2832_v48  ;;  %v7084_v48 = vsel %vm2828_vm10, %v2829_v29, %v2827_v14 }
0x1456   :  { %v7053_v10 = vpop.xlane.xlu0 %2816  ;;  %v5247_v54 = vpop.eup %5246  ;;  %v2947_v33 = vand.u32 2147483648, %v7014_v58  ;;  %vm2849_vm9 = vcmp.eq.f32.partialorder %v7027_v60, 0.0 }
0x1457   :  { %v2936_v16 = vmul.f32 %v5247_v54, %v7002_v19  ;;  %v7070_v18 = vpop.xlane.xlu1 %2920  ;;  %v2931_v43 = vsel %vm2930_vm12, %v6999_v44, %v2929_v7  ;;  %v7095_v7 = vsel %vm2835_vm1, %v2836_v36, %v2834_v57  ;;  %v2880_v36 = vmax.f32 %v7084_v48, 1e-12 }
0x1458   :  { %v5249_v11 = vpop.eup %5248  ;;  %5258 = vrsqrt.f32 %v7053_v10  ;;  %v2881_v44 = vmax.f32 %v7095_v7, 1e-12  ;;  %vm2854_vm10 = vcmp.eq.f32.partialorder %v7053_v10, inf  ;;  %vm2856_vm4 = vcmp.eq.f32.partialorder %v7053_v10, 0.0 }
0x1459   :  { %v2938_v5 = vsel %vm2937_vm3, %v7002_v19, %v2936_v16  ;;  %v2839_v39 = vmul.f32 %v5249_v11, %v7005_v51  ;;  %v7104_v16 = vsel %vm2932_vm15, %v2933_v17, %v2931_v43  ;;  %5260 = vrsqrt.f32 %v7070_v18 }
0x145a   :  { %v7091_v4 = vpop.xlane.xlu0 %2818  ;;  %v5251_v54 = vpop.eup %5250  ;;  %v7114_v14 = vsel %vm2939_vm6, %v2940_v46, %v2938_v5  ;;  %v2984_v19 = vmax.f32 %v7104_v16, 1e-12  ;;  %v2850_v46 = vand.u32 2147483648, %v7027_v60  ;;  %vm2958_vm1 = vcmp.eq.f32.partialorder %v7070_v18, inf }
0x145b   :  { %v7100_v29 = vpop.eup %5252  ;;  %v2841_v0 = vsel %vm2840_vm5, %v7005_v51, %v2839_v39  ;;  %v2943_v11 = vmul.f32 %v5251_v54, %v7014_v58  ;;  %v7109_v57 = vpop.xlane.xlu1 %2922  ;;  %v2985_v48 = vmax.f32 %v7114_v14, 1e-12  ;;  %5262 = vrsqrt.f32 %v7091_v4 }
0x145c   :  { %v7121_v17 = vsel %vm2842_vm13, %v2843_v45, %v2841_v0  ;;  %v2954_v54 = vand.u32 2147483648, %v7041_v2  ;;  %5264 = vrsqrt.f32 %v7109_v57  ;;  %vm2960_vm12 = vcmp.eq.f32.partialorder %v7070_v18, 0.0 }
0x145d   :  { %v2945_v43 = vsel %vm2944_vm7, %v7014_v58, %v2943_v11  ;;  %v2882_v5 = vmax.f32 %v7121_v17, 1e-12  ;;  %v5255_v7 = vpop.eup %5254  ;;  %v2857_v58 = vand.u32 2147483648, %v7053_v10  ;;  %vm2861_vm15 = vcmp.eq.f32.partialorder %v7091_v4, inf }
0x145e   :  { %v7125_v39 = vpop.xlane.xlu0 %2820  ;;  %v7134_v45 = vsel %vm2946_vm8, %v2947_v33, %v2945_v43  ;;  %v2846_v11 = vmul.f32 %v5255_v7, %v7027_v60  ;;  %v2961_v33 = vand.u32 2147483648, %v7070_v18  ;;  %v5257_v14 = vpop.eup %5256  ;;  %v2864_v17 = vand.u32 2147483648, %v7091_v4 }
0x145f   :  { %v7138_v51 = vpop.xlane.xlu1 %2924  ;;  %5266 = vrsqrt.f32 %v7125_v39  ;;  %v2986_v0 = vmax.f32 %v7134_v45, 1e-12  ;;  %vm2965_vm3 = vcmp.eq.f32.partialorder %v7109_v57, inf  ;;  %vm2967_vm6 = vcmp.eq.f32.partialorder %v7109_v57, 0.0 }
0x1460   :  { %5268 = vrsqrt.f32 %v7138_v51  ;;  %v2848_v45 = vsel %vm2847_vm11, %v7027_v60, %v2846_v11  ;;  %v2950_v7 = vmul.f32 %v5257_v14, %v7041_v2  ;;  %vm2863_vm5 = vcmp.eq.f32.partialorder %v7091_v4, 0.0 }
0x1461   :  { %v2968_v63 = vand.u32 2147483648, %v7109_v57  ;;  %v2871_v50 = vand.u32 2147483648, %v7125_v39  ;;  %v2851_v38 = vsel %vm2849_vm9, %v2850_v46, %v2848_v45  ;;  %vm2868_vm13 = vcmp.eq.f32.partialorder %v7125_v39, inf }
0x1462   :  { %v7149_v16 = vpop.xlane.xlu0 %2822  ;;  %vm2972_vm7 = vcmp.eq.f32.partialorder %v7138_v51, inf  ;;  %v5259_v11 = vpop.eup %5258  ;;  %v2952_v14 = vsel %vm2951_vm14, %v7041_v2, %v2950_v7  ;;  %vm2870_vm11 = vcmp.eq.f32.partialorder %v7125_v39, 0.0  ;;  %v2975_v61 = vand.u32 2147483648, %v7138_v51 }
0x1463   :  { %5270 = vrsqrt.f32 %v7149_v16  ;;  %v7160_v43 = vpop.xlane.xlu1 %2926  ;;  %v2878_v60 = vand.u32 2147483648, %v7149_v16  ;;  %v5261_v46 = vpop.eup %5260  ;;  %v2955_v45 = vsel %vm2953_vm2, %v2954_v54, %v2952_v14  ;;  %v2853_v3 = vmul.f32 %v5259_v11, %v7053_v10 }
0x1464   :  { %5272 = vrsqrt.f32 %v7160_v43  ;;  %vm2875_vm9 = vcmp.eq.f32.partialorder %v7149_v16, inf  ;;  %vm2979_vm0 = vcmp.eq.f32.partialorder %v7160_v43, inf  ;;  %v2883_v55 = vmax.f32 %v2851_v38, 1e-12 }
0x1465   :  { %5274 = vrcp.f32 %v2880_v36  ;;  %v2957_v7 = vmul.f32 %v5261_v46, %v7070_v18  ;;  %vm2877_vm14 = vcmp.eq.f32.partialorder %v7149_v16, 0.0  ;;  %vm2981_vm8 = vcmp.eq.f32.partialorder %v7160_v43, 0.0  ;;  %v5263_v36 = vpop.eup %5262 }
0x1466   :  { %5276 = vrcp.f32 %v2984_v19  ;;  %v2987_v20 = vmax.f32 %v2955_v45, 1e-12  ;;  %v2855_v2 = vsel %vm2854_vm10, %v7053_v10, %v2853_v3  ;;  %v2982_v54 = vand.u32 2147483648, %v7160_v43  ;;  %v5265_v11 = vpop.eup %5264 }
0x1467   :  { %5278 = vrcp.f32 %v2881_v44  ;;  %v2858_v38 = vsel %vm2856_vm4, %v2857_v58, %v2855_v2  ;;  %v2959_v19 = vsel %vm2958_vm1, %v7070_v18, %v2957_v7  ;;  %v2860_v14 = vmul.f32 %v5263_v36, %v7091_v4 }
0x1468   :  { %5280 = vrcp.f32 %v2985_v48  ;;  %v2884_v46 = vmax.f32 %v2858_v38, 1e-12  ;;  %v2962_v45 = vsel %vm2960_vm12, %v2961_v33, %v2959_v19  ;;  %v2964_v3 = vmul.f32 %v5265_v11, %v7109_v57 }
0x1469   :  { %5282 = vrcp.f32 %v2882_v5  ;;  %v5267_v44 = vpop.eup %5266  ;;  %vm3467_vm2 = vcmp.eq.f32.partialorder %v6987_v40, 0.0  ;;  %vm3472_vm10 = vcmp.eq.f32.partialorder %v6990_v52, inf  ;;  %v2988_v10 = vmax.f32 %v2962_v45, 1e-12 }
0x146a   :  { %5284 = vrcp.f32 %v2986_v0  ;;  %v5269_v48 = vpop.eup %5268  ;;  %v2862_v58 = vsel %vm2861_vm15, %v7091_v4, %v2860_v14  ;;  %v2867_v5 = vmul.f32 %v5267_v44, %v7125_v39  ;;  %v2966_v0 = vsel %vm2965_vm3, %v7109_v57, %v2964_v3 }
0x146b   :  { %5286 = vrcp.f32 %v2883_v55  ;;  %v2865_v18 = vsel %vm2863_vm5, %v2864_v17, %v2862_v58  ;;  %v2971_v33 = vmul.f32 %v5269_v48, %v7138_v51  ;;  %v2969_v2 = vsel %vm2967_vm6, %v2968_v63, %v2966_v0 }
0x146c   :  { %5288 = vrcp.f32 %v2987_v20  ;;  %v2885_v36 = vmax.f32 %v2865_v18, 1e-12  ;;  %v2869_v11 = vsel %vm2868_vm13, %v7125_v39, %v2867_v5  ;;  %v2989_v4 = vmax.f32 %v2969_v2, 1e-12 }
0x146d   :  { %v5271_v7 = vpop.eup %5270  ;;  %v2872_v17 = vsel %vm2870_vm11, %v2871_v50, %v2869_v11  ;;  %v2973_v19 = vsel %vm2972_vm7, %v7138_v51, %v2971_v33  ;;  %5290 = vrcp.f32 %v2884_v46  ;;  %vm7554_vm4 = vcmp.eq.f32.partialorder %v7138_v51, 0.0 }
0x146e   :  { %v2874_v55 = vmul.f32 %v5271_v7, %v7149_v16  ;;  %v5273_v38 = vpop.eup %5272  ;;  %v2886_v14 = vmax.f32 %v2872_v17, 1e-12  ;;  %v2976_v63 = vsel %vm7554_vm4, %v2975_v61, %v2973_v19  ;;  %v3471_v50 = vmul.f32 %v7100_v29, %v6990_v52 }
0x146f   :  { %v5275_v20 = vpop.eup %5274  ;;  %v2978_v44 = vmul.f32 %v5273_v38, %v7160_v43  ;;  %v2990_v39 = vmax.f32 %v2976_v63, 1e-12  ;;  %5292 = vrcp.f32 %v2988_v10  ;;  %v3217_v11 = vmax.f32 %v7030_v41, 1e-12 }
0x1470   :  { %v2876_v57 = vsel %vm2875_vm9, %v7149_v16, %v2874_v55  ;;  %v5277_v45 = vpop.eup %5276  ;;  %v2889_v51 = vmul.f32 %v5275_v20, %v6852_v32  ;;  %5294 = vrcp.f32 %v2885_v36  ;;  %v3219_v32 = vmax.f32 %v7063_v6, 1e-12 }
0x1471   :  { %v2879_v3 = vsel %vm2877_vm14, %v2878_v60, %v2876_v57  ;;  %v5279_v46 = vpop.eup %5278  ;;  %v2980_v61 = vsel %vm2979_vm0, %v7160_v43, %v2978_v44  ;;  %v2993_v48 = vmul.f32 %v6868_v47, %v5277_v45  ;;  %5296 = vrcp.f32 %v2989_v4 }
0x1472   :  { %v5281_v58 = vpop.eup %5280  ;;  %v2887_v5 = vmax.f32 %v2879_v3, 1e-12  ;;  %v2983_v29 = vsel %vm2981_vm8, %v2982_v54, %v2980_v61  ;;  %v2891_v7 = vmul.f32 %v5279_v46, %v6857_v21  ;;  %5298 = vrcp.f32 %v2886_v14 }
0x1473   :  { %v5283_v16 = vpop.eup %5282  ;;  %v2991_v60 = vmax.f32 %v2983_v29, 1e-12  ;;  %v3008_v10 = vmul.f32 %v2993_v48, %v2889_v51  ;;  %v2995_v18 = vmul.f32 %v6878_v26, %v5281_v58  ;;  %v7555_v47 = vand.u32 2147483648, %v6987_v40 }
0x1474   :  { %v5285_v0 = vpop.eup %5284  ;;  %v3473_v21 = vsel %vm3472_vm10, %v6990_v52, %v3471_v50  ;;  %5300 = vrcp.f32 %v2990_v39  ;;  %v2893_v26 = vmul.f32 %v5283_v16, %v6873_v34  ;;  %v7556_v6 = vmax.f32 %v7036_v27, 1e-12 }
0x1475   :  { %v3469_v33 = vsel %vm3467_vm2, %v7555_v47, %v7075_v9  ;;  %v5287_v43 = vpop.eup %5286  ;;  %3016 = vadd.xlane.f32.xlu0 %v3008_v10  ;;  %v3009_v54 = vmul.f32 %v2995_v18, %v2891_v7  ;;  %v2997_v36 = vmul.f32 %v6890_v53, %v5285_v0  ;;  %vm3474_vm0 = vcmp.eq.f32.partialorder %v6990_v52, 0.0  ;;  %v7558_v18 = vld [vmem:[#allocation30_spill] sm:$0xff]  ;;  %v7559_v0 = vld [vmem:[#allocation32_spill] sm:$0xff] }
0x1476   :  { %5302 = vrcp.f32 %v7556_v6  ;;  %v5289_v2 = vpop.eup %5288  ;;  %v3475_v40 = vand.u32 2147483648, %v6990_v52  ;;  %v2895_v55 = vmul.f32 %v5287_v43, %v6883_v15  ;;  %v3477_v53 = vmax.f32 %v3469_v33, 1e-12  ;;  %v7561_v33 = vld [vmem:[#allocation31_spill] sm:$0xff] }
0x1477   :  { %5304 = vrcp.f32 %v2887_v5  ;;  %3018 = vadd.xlane.f32.xlu1 %v3009_v54  ;;  %v3010_v9 = vmul.f32 %v2997_v36, %v2893_v26  ;;  %v2999_v38 = vmul.f32 %v6902_v23, %v5289_v2  ;;  %v5291_v34 = vpop.eup %5290  ;;  %v3359_v23 = vmul.f32 2.0, %v7007_v37  ;;  %v7566_v2 = vld [vmem:[#allocation25_spill] sm:$0xff] }
0x1478   :  { %5306 = vrcp.f32 %v2991_v60  ;;  %v3476_v4 = vsel %vm3474_vm0, %v3475_v40, %v3473_v21  ;;  %v2897_v52 = vmul.f32 %v5291_v34, %v6895_v31  ;;  %v3357_v46 = vmul.f32 2.0, %v7012_v42 }
0x1479   :  { %5308 = vrcp.f32 %v3219_v32  ;;  %3020 = vadd.xlane.f32.xlu0 %v3010_v9  ;;  %v3011_v27 = vmul.f32 %v2999_v38, %v2895_v55  ;;  %v5293_v17 = vpop.eup %5292  ;;  %v3478_v19 = vmax.f32 %v3476_v4, 1e-12  ;;  %v3365_v51 = vmul.f32 1.442695, %v3359_v23  ;;  %v7567_v9 = vld [vmem:[#allocation33_spill] sm:$0xff] }
0x147a   :  { %v5295_v41 = vpop.eup %5294  ;;  %v3001_v20 = vmul.f32 %v6914_v35, %v5293_v17  ;;  %5310 = vrcp.f32 %v3217_v11  ;;  %v3358_v37 = vmul.f32 2.0, %v7025_v24  ;;  %vm7563_vm1 = vcmask 261120  }
0x147b   :  { %3022 = vadd.xlane.f32.xlu1 %v3011_v27  ;;  %v5297_v14 = vpop.eup %5296  ;;  %5312 = vrcp.f32 %v3477_v53  ;;  %v2899_v57 = vmul.f32 %v5295_v41, %v6907_v22  ;;  %vm7564_vm12 = vmmov %vm7563_vm1  ;;  %v3741_v11 = vrot.slane %v7566_v2, 4  ;;  %v3726_v55 = vrot.slane %v7567_v9, 4 }
0x147c   :  { %v5299_v15 = vpop.eup %5298  ;;  %v3012_v63 = vmul.f32 %v3001_v20, %v2897_v52  ;;  %v3003_v44 = vmul.f32 %v6926_v25, %v5297_v14  ;;  %5314 = vrcp.f32 %v3478_v19  ;;  %v3363_v42 = vmul.f32 1.442695, %v3358_v37  ;;  %vm7565_vm15 = vmmov %vm7563_vm1  ;;  %v7568_v20 = vld [vmem:[#allocation40_spill] sm:$0xff] }
0x147d   :  { %v2901_v3 = vmul.f32 %v5299_v15, %v6919_v1  ;;  %v3361_v1 = vmul.f32 1.442695, %v3357_v46  ;;  %5316 = vpow2.f32 %v3365_v51  ;;  %v3742_v40 = vadd.f32 %v3741_v11, %v7566_v2  ;;  %vm7569_vm3 = vmmov %vm7563_vm1 }
0x147e   :  { %v5301_v45 = vpop.eup %5300  ;;  %3024 = vadd.xlane.f32.xlu0 %v3012_v63  ;;  %v3013_v39 = vmul.f32 %v3003_v44, %v2899_v57  ;;  %v3727_v34 = vadd.f32 %v3726_v55, %v7567_v9  ;;  %v3360_v14 = vmul.f32 2.0, %v7568_v20  ;;  %vm7570_vm6 = vmmov %vm7563_vm1  ;;  %vm7571_vm5 = vcmask 130048  }
0x147f   :  { %v3005_v31 = vmul.f32 %v6938_v56, %v5301_v45  ;;  %5318 = vpow2.f32 %v3361_v1  ;;  %v3743_v38 = vrot.slane %v3742_v40, 2  ;;  %vm7572_vm13 = vmmov %vm7571_vm5  ;;  %vm3751_vm8 = vcmask 1040384  }
0x1480   :  { %v5303_v50 = vpop.eup %5302  ;;  %3026 = vadd.xlane.f32.xlu1 %v3013_v39  ;;  %5320 = vpow2.f32 %v3363_v42  ;;  %v3728_v4 = vrot.slane %v3727_v34, 2  ;;  %vm7573_vm7 = vmmov %vm7563_vm1  ;;  %vm3097_vm11 = vcmask 7168   ;;  %vm7576_vm9 = vcmask 523264  }
0x1481   :  { %v5305_v35 = vpop.eup %5304  ;;  %v3014_v22 = vmul.f32 %v3005_v31, %v2901_v3  ;;  %v3225_v25 = vmul.f32 %v5303_v50, %v6699_v28  ;;  %v3744_v53 = vadd.f32 %v3743_v38, %v3742_v40  ;;  %vm7578_vm14 = vmmov %vm7576_vm9 }
0x1482   :  { %v5307_v61 = vpop.eup %5306  ;;  %v2903_v58 = vmul.f32 %v5305_v35, %v6931_v13  ;;  %v3729_v44 = vadd.f32 %v3728_v4, %v3727_v34  ;;  %vm7580_vm2 = vmmov %vm7576_vm9 }
0x1483   :  { %v5309_v48 = vpop.eup %5308  ;;  %v3007_v5 = vmul.f32 %v6947_v8, %v5307_v61  ;;  %3028 = vadd.xlane.f32.xlu0 %v3014_v22  ;;  %v3230_v16 = vmul.f32 %v3225_v25, %v6835_v62  ;;  %v7557_v8 = vld [vmem:[#allocation39_spill] sm:$0xff]  ;;  %v7560_v62 = vld [vmem:[#allocation29_spill] sm:$0xff]  ;;  %v3745_v52 = vrot.slane %v3744_v53, 1  ;;  %v3367_v61 = vmul.f32 1.442695, %v3360_v14  ;;  %vm7582_vm10 = vmmov %vm7580_vm2 }
0x1484   :  { %v3227_v29 = vmul.f32 %v5309_v48, %v6703_v59  ;;  %v5311_v7 = vpop.eup %5310  ;;  %v3228_v10 = vmul.f32 %v7557_v8, %v6829_v30  ;;  %v3730_v51 = vrot.slane %v3729_v44, 1  ;;  %vm7584_vm4 = vmmov %vm7563_vm1 }
0x1485   :  { %v3015_v56 = vmul.f32 %v3007_v5, %v2903_v58  ;;  %v5313_v24 = vpop.eup %5312  ;;  %v3223_v13 = vmul.f32 %v5311_v7, %v6709_v12  ;;  %v3746_v37 = vadd.f32 %v3745_v52, %v3744_v53  ;;  %vm7586_vm0 = vmmov %vm7563_vm1 }
0x1486   :  { %v3231_v28 = vmul.f32 %v3227_v29, %v6826_v49  ;;  %v5315_v60 = vpop.eup %5314  ;;  %v3480_v59 = vmul.f32 %v5313_v24, %v7558_v18  ;;  %v7562_v49 = vld [vmem:[#allocation38_spill] sm:$0xff] }
0x1487   :  { %3030 = vadd.xlane.f32.xlu1 %v3015_v56  ;;  %3236 = vadd.xlane.f32.xlu0 %v3230_v16  ;;  %v3229_v32 = vmul.f32 %v3223_v13, %v7559_v0  ;;  %v3482_v47 = vmul.f32 %v5315_v60, %v7560_v62  ;;  %v5317_v43 = vpop.eup %5316  ;;  %v3731_v56 = vadd.f32 %v3730_v51, %v3729_v44  ;;  %v7293_v29 = vmul.f32 0.032258064, %v3746_v37 }
0x1488   :  { %v3483_v21 = vmul.f32 %v3480_v59, %v7561_v33  ;;  %v3375_v26 = vsel %vm7563_vm1, %v5317_v43, 0.0 }
0x1489   :  { %v3484_v12 = vmul.f32 %v3482_v47, %v7562_v49  ;;  %v5319_v54 = vpop.eup %5318  ;;  %v3733_v62 = vmul.f32 0.015873017, %v3731_v56 }
0x148a   :  { %v5321_v30 = vpop.eup %5320  ;;  %v3369_v36 = vsel %vm7564_vm12, %v5319_v54, 0.0 }
0x148b   :  { %3238 = vadd.xlane.f32.xlu1 %v3231_v28  ;;  %3232 = vadd.xlane.f32.xlu0 %v3228_v10  ;;  %v3372_v6 = vsel %vm7565_vm15, %v5321_v30, 0.0  ;;  %v3749_v30 = vsub.f32 %v7293_v29, %v3733_v62 }
0x148f   :  { %3234 = vadd.xlane.f32.xlu1 %v3229_v32  ;;  %3485 = vadd.xlane.f32.xlu0 %v3483_v21 }
0x1493   :  { %3487 = vadd.xlane.f32.xlu1 %v3484_v12  ;;  %3376 = vadd.xlane.f32.xlu0 %v3375_v26 }
0x1497   :  { %3370 = vadd.xlane.f32.xlu1 %v3369_v36  ;;  %3373 = vadd.xlane.f32.xlu0 %v3372_v6 }
0x14d9   :  { %v3530_v27 = vpop.f32.mrb[76].mxu1 }
0x14da   :  { %v3537_v17 = vmul.f32 2.0, %v3530_v27  ;;  %v5040_v41 = vpop.f32.mrb[77].mxu1 }
0x14db   :  { %v3533_v19 = vpop.f32.mrb[78].mxu1 }
0x14dc   :  { %v3539_v15 = vmul.f32 1.442695, %v3537_v17  ;;  %v3538_v23 = vmul.f32 2.0, %v3533_v19  ;;  %v5041_v63 = vpop.f32.mrb[79].mxu1  ;;  %v3612_v57 = vpop.f32.mrb[84].mxu0 }
0x14dd   :  { %v3619_v45 = vmul.f32 2.0, %v3612_v57  ;;  %v5046_v50 = vpop.f32.mrb[85].mxu0 }
0x14de   :  { %5322 = vpow2.f32 %v3539_v15  ;;  %v3541_v39 = vmul.f32 1.442695, %v3538_v23  ;;  %v3615_v3 = vpop.f32.mrb[86].mxu0 }
0x14df   :  { %v3621_v31 = vmul.f32 1.442695, %v3619_v45  ;;  %v3620_v35 = vmul.f32 2.0, %v3615_v3  ;;  %v5047_v46 = vpop.f32.mrb[87].mxu0  ;;  %v3750_v3 = vmul.f32 %v3749_v30, %v3749_v30 }
0x14e0   :  { %5324 = vpow2.f32 %v3541_v39 }
0x14e1   :  { %5326 = vpow2.f32 %v3621_v31  ;;  %v3623_v22 = vmul.f32 1.442695, %v3620_v35  ;;  %v5054_v25 = vpop.f32.mrb[80].mxu1 }
0x14e2   :  { %v3843_v48 = vpop.f32.mrb[81].mxu1  ;;  %v3908_v58 = vmul.f32 0.015873017, %v5054_v25 }
0x14e3   :  { %5328 = vpow2.f32 %v3623_v22  ;;  %v3906_v5 = vmul.f32 0.015873017, %v3843_v48  ;;  %v5055_v1 = vpop.f32.mrb[82].mxu1 }
0x14e4   :  { %5330 = vpow2.f32 %v3367_v61  ;;  %v3846_v7 = vpop.f32.mrb[83].mxu1  ;;  %v5072_v42 = vpop.f32.mrb[88].mxu0  ;;  %v3909_v24 = vmul.f32 0.015873017, %v5055_v1  ;;  %v3924_v18 = vmul.f32 %v3908_v58, %v3908_v58 }
0x14e5   :  { %v3922_v16 = vmul.f32 %v3906_v5, %v3906_v5  ;;  %v3907_v28 = vmul.f32 0.015873017, %v3846_v7  ;;  %v4087_v13 = vpop.f32.mrb[89].mxu0  ;;  %v4152_v60 = vmul.f32 0.032258064, %v5072_v42 }
0x14e6   :  { %v4150_v8 = vmul.f32 0.032258064, %v4087_v13  ;;  %v5073_v10 = vpop.f32.mrb[90].mxu0  ;;  %v3925_v49 = vmul.f32 %v3909_v24, %v3909_v24 }
0x14e7   :  { %v3923_v59 = vmul.f32 %v3907_v28, %v3907_v28  ;;  %v4090_v0 = vpop.f32.mrb[91].mxu0  ;;  %v4153_v33 = vmul.f32 0.032258064, %v5073_v10  ;;  %v4168_v6 = vmul.f32 %v4152_v60, %v4152_v60 }
0x14e8   :  { %v5323_v32 = vpop.eup %5322  ;;  %v4166_v47 = vmul.f32 %v4150_v8, %v4150_v8  ;;  %v4151_v21 = vmul.f32 0.032258064, %v4090_v0  ;;  %v3752_v8 = vsel %vm3751_vm8, %v3750_v3, 0.0 }
0x14e9   :  { %v3543_v43 = vsel %vm7569_vm3, %v5323_v32, 0.0  ;;  %v3938_v12 = vadd.f32 %v3923_v59, %v3922_v16  ;;  %v5058_v54 = vpop.f32.mrb[84].mxu1  ;;  %v4169_v27 = vmul.f32 %v4153_v33, %v4153_v33 }
0x14ea   :  { %v5325_v26 = vpop.eup %5324  ;;  %3544 = vadd.xlane.f32.xlu1 %v3543_v43  ;;  %v3859_v36 = vpop.f32.mrb[85].mxu1  ;;  %v4167_v2 = vmul.f32 %v4151_v21, %v4151_v21  ;;  %v3912_v55 = vmul.f32 0.015873017, %v5058_v54 }
0x14eb   :  { %v5327_v11 = vpop.eup %5326  ;;  %v3546_v40 = vsel %vm7570_vm6, %v5325_v26, 0.0  ;;  %v3939_v9 = vadd.f32 %v3938_v12, %v3924_v18  ;;  %v3910_v38 = vmul.f32 0.015873017, %v3859_v36  ;;  %v5059_v34 = vpop.f32.mrb[86].mxu1 }
0x14ec   :  { %3547 = vadd.xlane.f32.xlu0 %v3546_v40  ;;  %v3625_v53 = vsel %vm7571_vm5, %v5327_v11, 0.0  ;;  %v3862_v4 = vpop.f32.mrb[87].mxu1  ;;  %v4182_v17 = vadd.f32 %v4167_v2, %v4166_v47  ;;  %v5076_v41 = vpop.f32.mrb[92].mxu0  ;;  %v3913_v14 = vmul.f32 0.015873017, %v5059_v34  ;;  %v3928_v31 = vmul.f32 %v3912_v55, %v3912_v55 }
0x14ed   :  { %v5329_v19 = vpop.eup %5328  ;;  %v3926_v52 = vmul.f32 %v3910_v38, %v3910_v38  ;;  %v3940_v20 = vadd.f32 %v3939_v9, %v3925_v49  ;;  %v3911_v15 = vmul.f32 0.015873017, %v3862_v4  ;;  %v4103_v23 = vpop.f32.mrb[93].mxu0  ;;  %v4156_v45 = vmul.f32 0.032258064, %v5076_v41 }
0x14ee   :  { %v5331_v63 = vpop.eup %5330  ;;  %3626 = vadd.xlane.f32.xlu1 %v3625_v53  ;;  %v3628_v57 = vsel %vm7572_vm13, %v5329_v19, 0.0  ;;  %v4183_v44 = vadd.f32 %v4182_v17, %v4168_v6  ;;  %v4154_v50 = vmul.f32 0.032258064, %v4103_v23  ;;  %v5077_v39 = vpop.f32.mrb[94].mxu0  ;;  %v3929_v58 = vmul.f32 %v3913_v14, %v3913_v14 }
0x14ef   :  { %v3941_v35 = vadd.f32 %v3940_v20, %v3926_v52  ;;  %v3927_v46 = vmul.f32 %v3911_v15, %v3911_v15  ;;  %v4106_v61 = vpop.f32.mrb[95].mxu0  ;;  %v4157_v22 = vmul.f32 0.032258064, %v5077_v39  ;;  %v3378_v48 = vsel %vm7573_vm7, %v5331_v63, 0.0 }
0x14f0   :  { %3629 = vadd.xlane.f32.xlu0 %v3628_v57  ;;  %v4170_v51 = vmul.f32 %v4154_v50, %v4154_v50  ;;  %v4184_v37 = vadd.f32 %v4183_v44, %v4169_v27  ;;  %v4155_v25 = vmul.f32 0.032258064, %v4106_v61  ;;  %v4172_v7 = vmul.f32 %v4156_v45, %v4156_v45 }
0x14f1   :  { %v3942_v5 = vadd.f32 %v3941_v35, %v3927_v46  ;;  %v5062_v1 = vpop.f32.mrb[88].mxu1  ;;  %v4173_v18 = vmul.f32 %v4157_v22, %v4157_v22 }
0x14f2   :  { %3379 = vadd.xlane.f32.xlu1 %v3378_v48  ;;  %v3875_v56 = vpop.f32.mrb[89].mxu1  ;;  %v4185_v42 = vadd.f32 %v4184_v37, %v4170_v51  ;;  %v4171_v16 = vmul.f32 %v4155_v25, %v4155_v25  ;;  %v3916_v28 = vmul.f32 0.015873017, %v5062_v1 }
0x14f3   :  { %v3943_v24 = vadd.f32 %v3942_v5, %v3928_v31  ;;  %v3914_v13 = vmul.f32 0.015873017, %v3875_v56  ;;  %v5063_v60 = vpop.f32.mrb[90].mxu1 }
0x14f4   :  { %v3878_v10 = vpop.f32.mrb[91].mxu1  ;;  %v4186_v59 = vadd.f32 %v4185_v42, %v4171_v16  ;;  %v5080_v0 = vpop.f32.mrb[96].mxu0  ;;  %v3917_v47 = vmul.f32 0.015873017, %v5063_v60  ;;  %v3932_v26 = vmul.f32 %v3916_v28, %v3916_v28 }
0x14f5   :  { %v3930_v32 = vmul.f32 %v3914_v13, %v3914_v13  ;;  %v3944_v62 = vadd.f32 %v3943_v24, %v3929_v58  ;;  %v3915_v33 = vmul.f32 0.015873017, %v3878_v10  ;;  %v4119_v21 = vpop.f32.mrb[97].mxu0  ;;  %v4160_v49 = vmul.f32 0.032258064, %v5080_v0 }
0x14f6   :  { %3753 = vadd.xlane.f32.xlu1 %v3752_v8  ;;  %v4187_v43 = vadd.f32 %v4186_v59, %v4172_v7  ;;  %v4158_v12 = vmul.f32 0.032258064, %v4119_v21  ;;  %v5081_v54 = vpop.f32.mrb[98].mxu0  ;;  %v3933_v55 = vmul.f32 %v3917_v47, %v3917_v47 }
0x14f7   :  { %v3945_v30 = vadd.f32 %v3944_v62, %v3930_v32  ;;  %v3931_v36 = vmul.f32 %v3915_v33, %v3915_v33  ;;  %v4122_v6 = vpop.f32.mrb[99].mxu0  ;;  %v4161_v40 = vmul.f32 0.032258064, %v5081_v54  ;;  %v4176_v4 = vmul.f32 %v4160_v49, %v4160_v49 }
0x14f8   :  { %v4174_v2 = vmul.f32 %v4158_v12, %v4158_v12  ;;  %v4188_v11 = vadd.f32 %v4187_v43, %v4173_v18  ;;  %v4159_v9 = vmul.f32 0.032258064, %v4122_v6 }
0x14f9   :  { %v3946_v38 = vadd.f32 %v3945_v30, %v3931_v36  ;;  %v5066_v34 = vpop.f32.mrb[92].mxu1  ;;  %v4177_v15 = vmul.f32 %v4161_v40, %v4161_v40 }
0x14fa   :  { %v3891_v53 = vpop.f32.mrb[93].mxu1  ;;  %v4189_v27 = vadd.f32 %v4188_v11, %v4174_v2  ;;  %v4175_v17 = vmul.f32 %v4159_v9, %v4159_v9  ;;  %v3920_v19 = vmul.f32 0.015873017, %v5066_v34 }
0x14fb   :  { %v3947_v41 = vadd.f32 %v3946_v38, %v3932_v26  ;;  %v3918_v52 = vmul.f32 0.015873017, %v3891_v53  ;;  %v5067_v20 = vpop.f32.mrb[94].mxu1 }
0x14fc   :  { %v3894_v14 = vpop.f32.mrb[95].mxu1  ;;  %v4190_v23 = vadd.f32 %v4189_v27, %v4175_v17  ;;  %v5084_v63 = vpop.f32.mrb[100].mxu0  ;;  %v3921_v45 = vmul.f32 0.015873017, %v5067_v20  ;;  %v3936_v61 = vmul.f32 %v3920_v19, %v3920_v19 }
0x14fd   :  { %v3934_v57 = vmul.f32 %v3918_v52, %v3918_v52  ;;  %v3948_v44 = vadd.f32 %v3947_v41, %v3933_v55  ;;  %v3919_v50 = vmul.f32 0.015873017, %v3894_v14  ;;  %v4135_v39 = vpop.f32.mrb[101].mxu0  ;;  %v4164_v31 = vmul.f32 0.032258064, %v5084_v63 }
0x14fe   :  { %v4191_v3 = vadd.f32 %v4190_v23, %v4176_v4  ;;  %v4162_v35 = vmul.f32 0.032258064, %v4135_v39  ;;  %v5085_v46 = vpop.f32.mrb[102].mxu0  ;;  %v3937_v5 = vmul.f32 %v3921_v45, %v3921_v45 }
0x14ff   :  { %v3949_v51 = vadd.f32 %v3948_v44, %v3934_v57  ;;  %v3935_v37 = vmul.f32 %v3919_v50, %v3919_v50  ;;  %v4138_v22 = vpop.f32.mrb[103].mxu0  ;;  %v4180_v56 = vmul.f32 %v4164_v31, %v4164_v31  ;;  %v4165_v59 = vmul.f32 0.032258064, %v5085_v46 }
0x1500   :  { %v4178_v25 = vmul.f32 %v4162_v35, %v4162_v35  ;;  %v4192_v48 = vadd.f32 %v4191_v3, %v4177_v15  ;;  %v4163_v58 = vmul.f32 0.032258064, %v4138_v22 }
0x1501   :  { %v3950_v1 = vadd.f32 %v3949_v51, %v3935_v37  ;;  %v4181_v49 = vmul.f32 %v4165_v59, %v4165_v59 }
0x1502   :  { %v4193_v7 = vadd.f32 %v4192_v48, %v4178_v25  ;;  %v4179_v42 = vmul.f32 %v4163_v58, %v4163_v58  ;;  %v3017_v16 = vpop.xlane.xlu0 %3016 }
0x1503   :  { %v3951_v24 = vadd.f32 %v3950_v1, %v3936_v61  ;;  %v3033_v28 = vmul.f32 2.0, %v3017_v16 }
0x1504   :  { %v4194_v13 = vadd.f32 %v4193_v7, %v4179_v42  ;;  %v3019_v60 = vpop.xlane.xlu1 %3018 }
0x1505   :  { %v7302_v8 = vadd.f32 %v3951_v24, %v3937_v5  ;;  %v3041_v10 = vmul.f32 1.442695, %v3033_v28  ;;  %v3034_v18 = vmul.f32 2.0, %v3019_v60 }
0x1506   :  { %v4195_v0 = vadd.f32 %v4194_v13, %v4180_v56  ;;  %v3021_v32 = vpop.xlane.xlu0 %3020 }
0x1507   :  { %5332 = vpow2.f32 %v3041_v10  ;;  %v3043_v62 = vmul.f32 1.442695, %v3034_v18  ;;  %v3035_v47 = vmul.f32 2.0, %v3021_v32 }
0x1508   :  { %v3023_v33 = vpop.xlane.xlu1 %3022  ;;  %v7304_v30 = vadd.f32 %v4195_v0, %v4181_v49 }
0x1509   :  { %5334 = vpow2.f32 %v3043_v62  ;;  %v3045_v21 = vmul.f32 1.442695, %v3035_v47  ;;  %v3036_v43 = vmul.f32 2.0, %v3023_v33 }
0x150b   :  { %5336 = vpow2.f32 %v3045_v21  ;;  %v3047_v12 = vmul.f32 1.442695, %v3036_v43  ;;  %v3025_v54 = vpop.xlane.xlu0 %3024 }
0x150c   :  { %v3037_v26 = vmul.f32 2.0, %v3025_v54 }
0x150d   :  { %5338 = vpow2.f32 %v3047_v12  ;;  %v3027_v36 = vpop.xlane.xlu1 %3026 }
0x150e   :  { %v3049_v6 = vmul.f32 1.442695, %v3037_v26  ;;  %v3038_v2 = vmul.f32 2.0, %v3027_v36 }
0x1510   :  { %v3029_v11 = vpop.xlane.xlu0 %3028  ;;  %5340 = vpow2.f32 %v3049_v6  ;;  %v3051_v9 = vmul.f32 1.442695, %v3038_v2 }
0x1511   :  { %v5333_v40 = vpop.eup %5332  ;;  %v3039_v55 = vmul.f32 2.0, %v3029_v11 }
0x1512   :  { %v3057_v38 = vmul.f32 0.015625, %v5333_v40  ;;  %5342 = vpow2.f32 %v3051_v9 }
0x1513   :  { %v5335_v34 = vpop.eup %5334  ;;  %v3053_v53 = vmul.f32 1.442695, %v3039_v55 }
0x1514   :  { %v3031_v4 = vpop.xlane.xlu1 %3030  ;;  %v3065_v27 = vadd.f32 1e-08, %v3057_v38  ;;  %v3058_v17 = vmul.f32 0.015625, %v5335_v34 }
0x1515   :  { %v3040_v41 = vmul.f32 2.0, %v3031_v4  ;;  %v5337_v19 = vpop.eup %5336  ;;  %5344 = vpow2.f32 %v3053_v53 }
0x1516   :  { %5346 = vlog2.f32 %v3065_v27  ;;  %v3066_v52 = vadd.f32 1e-08, %v3058_v17  ;;  %v3059_v20 = vmul.f32 0.015625, %v5337_v19 }
0x1517   :  { %v3055_v14 = vmul.f32 1.442695, %v3040_v41  ;;  %v5339_v15 = vpop.eup %5338  ;;  %v3237_v41 = vpop.xlane.xlu0 %3236 }
0x1518   :  { %5348 = vlog2.f32 %v3066_v52  ;;  %v3067_v23 = vadd.f32 1e-08, %v3059_v20  ;;  %v3060_v63 = vmul.f32 0.015625, %v5339_v15  ;;  %v3239_v17 = vpop.xlane.xlu1 %3238 }
0x1519   :  { %5350 = vpow2.f32 %v3055_v14 }
0x151a   :  { %5352 = vlog2.f32 %v3067_v23  ;;  %v3068_v57 = vadd.f32 1e-08, %v3060_v63  ;;  %v5341_v44 = vpop.eup %5340  ;;  %v3242_v23 = vmul.f32 2.0, %v3237_v41 }
0x151b   :  { %v3061_v45 = vmul.f32 0.015625, %v5341_v44  ;;  %v3233_v52 = vpop.xlane.xlu0 %3232 }
0x151c   :  { %5354 = vlog2.f32 %v3068_v57  ;;  %v5343_v50 = vpop.eup %5342  ;;  %v3235_v19 = vpop.xlane.xlu1 %3234  ;;  %v3240_v14 = vmul.f32 2.0, %v3233_v52  ;;  %v3248_v44 = vmul.f32 1.442695, %v3242_v23 }
0x151d   :  { %v3069_v39 = vadd.f32 1e-08, %v3061_v45  ;;  %v3062_v3 = vmul.f32 0.015625, %v5343_v50  ;;  %v3241_v20 = vmul.f32 2.0, %v3235_v19 }
0x151e   :  { %v3244_v63 = vmul.f32 1.442695, %v3240_v14 }
0x151f   :  { %v5345_v31 = vpop.eup %5344  ;;  %5356 = vlog2.f32 %v3069_v39  ;;  %v3070_v46 = vadd.f32 1e-08, %v3062_v3  ;;  %v3246_v15 = vmul.f32 1.442695, %v3241_v20  ;;  %v3486_v57 = vpop.xlane.xlu0 %3485  ;;  %v3243_v3 = vmul.f32 2.0, %v3239_v17 }
0x1520   :  { %v5347_v35 = vpop.eup %5346  ;;  %v3063_v61 = vmul.f32 0.015625, %v5345_v31  ;;  %v3488_v50 = vpop.xlane.xlu1 %3487 }
0x1521   :  { %5358 = vlog2.f32 %v3070_v46  ;;  %v3074_v25 = vmul.f32 0.6931472, %v5347_v35  ;;  %v3489_v46 = vmul.f32 2.0, %v3486_v57 }
0x1522   :  { %v5349_v51 = vpop.eup %5348  ;;  %v3071_v37 = vadd.f32 1e-08, %v3063_v61  ;;  %v3490_v61 = vmul.f32 2.0, %v3488_v50 }
0x1523   :  { %v5351_v22 = vpop.eup %5350  ;;  %v3076_v48 = vmul.f32 0.6931472, %v5349_v51  ;;  %v3089_v16 = vsub.f32 0.0, %v3074_v25  ;;  %v3377_v45 = vpop.xlane.xlu0 %3376 }
0x1524   :  { %v5353_v58 = vpop.eup %5352  ;;  %5360 = vlog2.f32 %v3071_v37  ;;  %v3064_v5 = vmul.f32 0.015625, %v5351_v22  ;;  %v3371_v51 = vpop.xlane.xlu1 %3370  ;;  %v3250_v37 = vmul.f32 1.442695, %v3243_v3 }
0x1525   :  { %v3090_v1 = vsub.f32 0.0, %v3076_v48  ;;  %v3078_v56 = vmul.f32 0.6931472, %v5353_v58  ;;  %v3098_v18 = vsel %vm3097_vm11, %v3089_v16, 0.0  ;;  %v3491_v58 = vmul.f32 1.442695, %v3489_v46 }
0x1526   :  { %v5355_v7 = vpop.eup %5354  ;;  %v3072_v42 = vadd.f32 1e-08, %v3064_v5  ;;  %v3493_v5 = vmul.f32 1.442695, %v3490_v61 }
0x1527   :  { %v3091_v24 = vsub.f32 0.0, %v3078_v56  ;;  %v3080_v28 = vmul.f32 0.6931472, %v5355_v7  ;;  %v3099_v13 = vsel %vm3097_vm11, %v3090_v1, 0.0  ;;  %v3374_v31 = vpop.xlane.xlu0 %3373 }
0x1528   :  { %5362 = vlog2.f32 %v3072_v42  ;;  %v3100_v62 = vadd.f32 %v3099_v13, %v3098_v18 }
0x1529   :  { %v3092_v60 = vsub.f32 0.0, %v3080_v28  ;;  %v5357_v10 = vpop.eup %5356  ;;  %v3101_v59 = vsel %vm3097_vm11, %v3091_v24, 0.0  ;;  %5364 = vpow2.f32 %v3246_v15 }
0x152a   :  { %v3082_v0 = vmul.f32 0.6931472, %v5357_v10  ;;  %v3102_v49 = vadd.f32 %v3101_v59, %v3100_v62  ;;  %5366 = vpow2.f32 %v3244_v63 }
0x152b   :  { %v5359_v32 = vpop.eup %5358  ;;  %v3103_v47 = vsel %vm3097_vm11, %v3092_v60, 0.0  ;;  %5368 = vpow2.f32 %v3248_v44 }
0x152c   :  { %v3093_v33 = vsub.f32 0.0, %v3082_v0  ;;  %v3084_v21 = vmul.f32 0.6931472, %v5359_v32  ;;  %v3104_v36 = vadd.f32 %v3103_v47, %v3102_v49  ;;  %5370 = vpow2.f32 %v3250_v37 }
0x152e   :  { %v5361_v43 = vpop.eup %5360  ;;  %v3105_v12 = vsel %vm3097_vm11, %v3093_v33, 0.0  ;;  %v3094_v54 = vsub.f32 0.0, %v3084_v21 }
0x152f   :  { %v3086_v26 = vmul.f32 0.6931472, %v5361_v43  ;;  %v3106_v40 = vadd.f32 %v3105_v12, %v3104_v36 }
0x1530   :  { %v3107_v2 = vsel %vm3097_vm11, %v3094_v54, 0.0 }
0x1531   :  { %v3095_v6 = vsub.f32 0.0, %v3086_v26  ;;  %v3108_v38 = vadd.f32 %v3107_v2, %v3106_v40 }
0x1532   :  { %v5363_v11 = vpop.eup %5362 }
0x1533   :  { %v3088_v9 = vmul.f32 0.6931472, %v5363_v11  ;;  %v3109_v55 = vsel %vm3097_vm11, %v3095_v6, 0.0  ;;  %v5365_v39 = vpop.eup %5364  ;;  %v7574_v6 = vld [vmem:[#allocation28_spill] sm:$0xff] }
0x1534   :  { %v3110_v53 = vadd.f32 %v3109_v55, %v3108_v38  ;;  %v3386_v35 = vadd.f32 %v5365_v39, %v3374_v31  ;;  %v3989_v2 = vrot.slane %v7574_v6, 4 }
0x1535   :  { %v3096_v34 = vsub.f32 0.0, %v3088_v9 }
0x1536   :  { %v3390_v48 = vadd.f32 1e-08, %v3386_v35  ;;  %v3990_v40 = vadd.f32 %v3989_v2, %v7574_v6 }
0x1537   :  { %v3111_v4 = vsel %vm3097_vm11, %v3096_v34, 0.0 }
0x1538   :  { %v3112_v27 = vadd.f32 %v3111_v4, %v3110_v53  ;;  %5372 = vrcp.f32 %v3390_v48  ;;  %v3991_v9 = vrot.slane %v3990_v40, 2 }
0x1539   :  { %5374 = vpow2.f32 %v3491_v58 }
0x153a   :  { %3113 = vadd.xlane.f32.xlu0 %v3112_v27  ;;  %5376 = vpow2.f32 %v3493_v5  ;;  %v3992_v17 = vadd.f32 %v3991_v9, %v3990_v40 }
0x153c   :  { %v3993_v14 = vrot.slane %v3992_v17, 1 }
0x153e   :  { %3953 = vadd.xlane.f32.xlu0 %v7302_v8  ;;  %v5367_v8 = vpop.eup %5366  ;;  %v3994_v44 = vadd.f32 %v3993_v14, %v3992_v17 }
0x153f   :  { %v3385_v22 = vadd.f32 %v5367_v8, %v3371_v51  ;;  %v5369_v25 = vpop.eup %5368 }
0x1540   :  { %v3387_v1 = vadd.f32 %v5369_v25, %v3377_v45  ;;  %v5371_v24 = vpop.eup %5370  ;;  %v3996_v35 = vmul.f32 0.06666667, %v3994_v44 }
0x1541   :  { %v3389_v56 = vadd.f32 1e-08, %v3385_v22 }
0x1542   :  { %v3391_v7 = vadd.f32 1e-08, %v3387_v1  ;;  %v5373_v13 = vpop.eup %5372  ;;  %v3997_v5 = vsub.f32 %v3996_v35, %v7293_v29 }
0x1543   :  { %5378 = vrcp.f32 %v3389_v56  ;;  %v5375_v10 = vpop.eup %5374  ;;  %v3396_v47 = vmul.f32 %v5373_v13, %v5365_v39 }
0x1544   :  { %5380 = vrcp.f32 %v3391_v7  ;;  %v5377_v59 = vpop.eup %5376 }
0x154d   :  { %v5379_v62 = vpop.eup %5378 }
0x154e   :  { %v3394_v12 = vmul.f32 %v5379_v62, %v5367_v8  ;;  %v5381_v36 = vpop.eup %5380 }
0x154f   :  { %v3398_v11 = vmul.f32 %v5381_v36, %v5369_v25 }
0x1577   :  { %v3545_v42 = vpop.xlane.xlu1 %3544 }
0x1579   :  { %v3548_v16 = vpop.xlane.xlu0 %3547 }
0x157b   :  { %v3627_v28 = vpop.xlane.xlu1 %3626 }
0x157c   :  { %v3631_v60 = vadd.f32 %v3627_v28, %v3545_v42  ;;  %v3998_v28 = vmul.f32 %v3997_v5, %v3997_v5 }
0x157d   :  { %v3630_v18 = vpop.xlane.xlu0 %3629 }
0x157e   :  { %v3633_v0 = vadd.f32 %v5375_v10, %v3631_v60  ;;  %v3632_v32 = vadd.f32 %v3630_v18, %v3548_v16  ;;  %v3999_v13 = vsel %vm3751_vm8, %v3998_v28, 0.0  ;;  %v7575_v60 = vld [vmem:[#allocation34_spill] sm:$0xff] }
0x157f   :  { %v3380_v33 = vpop.xlane.xlu1 %3379  ;;  %v864_v29 = vsel %vm7576_vm9, %v7575_v60, 0.0 }
0x1580   :  { %v3635_v21 = vadd.f32 1e-08, %v3633_v0  ;;  %v3634_v43 = vadd.f32 %v5377_v59, %v3632_v32  ;;  %v3388_v49 = vadd.f32 %v5371_v24, %v3380_v33  ;;  %v7581_v32 = vld [vmem:[#allocation37_spill] sm:$0xff]  ;;  %v7585_v33 = vld [vmem:[#allocation27_spill] sm:$0xff] }
0x1581   :  { %v867_v62 = vsel %vm7582_vm10, %v7581_v32, 0.0 }
0x1582   :  { %5382 = vrcp.f32 %v3635_v21  ;;  %v3636_v54 = vadd.f32 1e-08, %v3634_v43  ;;  %v3392_v26 = vadd.f32 1e-08, %v3388_v49  ;;  %v1443_v21 = vsel %vm7586_vm0, %v7585_v33, 0.0 }
0x1583   :  { %5384 = vlog2.f32 %v3396_v47  ;;  %v7583_v47 = vld [vmem:[#allocation26_spill] sm:$0xff] }
0x1584   :  { %5386 = vrcp.f32 %v3636_v54 }
0x1585   :  { %5388 = vrcp.f32 %v3392_v26 }
0x1586   :  { %5390 = vlog2.f32 %v3394_v12 }
0x1587   :  { %5392 = vlog2.f32 %v3398_v11 }
0x158c   :  { %v5383_v55 = vpop.eup %5382 }
0x158d   :  { %v5385_v38 = vpop.eup %5384  ;;  %v3638_v34 = vmul.f32 %v5383_v55, %v5375_v10  ;;  %v7577_v10 = vld [vmem:[#allocation35_spill] sm:$0xff] }
0x158e   :  { %v5387_v53 = vpop.eup %5386  ;;  %v3404_v52 = vmul.f32 0.6931472, %v5385_v38  ;;  %v861_v18 = vsel %vm7578_vm14, %v7577_v10, 0.0 }
0x158f   :  { %v5389_v4 = vpop.eup %5388  ;;  %v3640_v27 = vmul.f32 %v5387_v53, %v5377_v59  ;;  %5394 = vlog2.f32 %v3638_v34  ;;  %v7579_v59 = vld [vmem:[#allocation36_spill] sm:$0xff] }
0x1590   :  { %v5391_v41 = vpop.eup %5390  ;;  %v3400_v19 = vmul.f32 %v5389_v4, %v5371_v24  ;;  %v3410_v23 = vsub.f32 0.0, %v3404_v52  ;;  %v870_v0 = vsel %vm7580_vm2, %v7579_v59, 0.0 }
0x1591   :  { %5396 = vlog2.f32 %v3640_v27  ;;  %v3402_v20 = vmul.f32 0.6931472, %v5391_v41  ;;  %v5393_v15 = vpop.eup %5392 }
0x1592   :  { %5398 = vlog2.f32 %v3400_v19  ;;  %v3406_v63 = vmul.f32 0.6931472, %v5393_v15  ;;  %v3414_v50 = vsel %vm3097_vm11, %v3410_v23, 0.0 }
0x1593   :  { %v3409_v57 = vsub.f32 0.0, %v3402_v20 }
0x1594   :  { %v3411_v31 = vsub.f32 0.0, %v3406_v63 }
0x1595   :  { %v3413_v8 = vsel %vm3097_vm11, %v3409_v57, 0.0 }
0x1596   :  { %v3415_v61 = vadd.f32 %v3414_v50, %v3413_v8  ;;  %v3416_v58 = vsel %vm3097_vm11, %v3411_v31, 0.0 }
0x1598   :  { %v3417_v1 = vadd.f32 %v3416_v58, %v3415_v61 }
0x1599   :  { %v5395_v45 = vpop.eup %5394 }
0x159a   :  { %v3642_v39 = vmul.f32 0.6931472, %v5395_v45 }
0x159b   :  { %v5397_v3 = vpop.eup %5396 }
0x159c   :  { %v5399_v46 = vpop.eup %5398  ;;  %v3644_v51 = vmul.f32 0.6931472, %v5397_v3  ;;  %v3645_v37 = vsub.f32 0.0, %v3642_v39 }
0x159d   :  { %v3408_v22 = vmul.f32 0.6931472, %v5399_v46 }
0x159e   :  { %v3646_v25 = vsub.f32 0.0, %v3644_v51  ;;  %v3647_v56 = vsel %vm3097_vm11, %v3645_v37, 0.0 }
0x159f   :  { %v3412_v48 = vsub.f32 0.0, %v3408_v22 }
0x15a0   :  { %v3648_v7 = vsel %vm3097_vm11, %v3646_v25, 0.0 }
0x15a1   :  { %v3418_v42 = vsel %vm3097_vm11, %v3412_v48, 0.0  ;;  %v3649_v16 = vadd.f32 %v3648_v7, %v3647_v56 }
0x15a2   :  { %v3419_v24 = vadd.f32 %v3418_v42, %v3417_v1 }
0x15a3   :  { %3650 = vadd.xlane.f32.xlu0 %v3649_v16 }
0x15a4   :  { %3420 = vadd.xlane.f32.xlu1 %v3419_v24 }
0x15a7   :  { %4197 = vadd.xlane.f32.xlu0 %v7304_v30  ;;  %v1446_v30 = vsel %vm7584_vm4, %v7583_v47, 0.0 }
0x15a8   :  { %4000 = vadd.xlane.f32.xlu1 %v3999_v13 }
0x15ab   :  { %865 = vadd.xlane.f32.xlu0 %v864_v29 }
0x15ac   :  { %862 = vadd.xlane.f32.xlu1 %v861_v18 }
0x15af   :  { %871 = vadd.xlane.f32.xlu0 %v870_v0 }
0x15b0   :  { %868 = vadd.xlane.f32.xlu1 %v867_v62 }
0x15b3   :  { %1447 = vadd.xlane.f32.xlu0 %v1446_v30 }
0x15b4   :  { %1444 = vadd.xlane.f32.xlu1 %v1443_v21 }
0x15c7   :  { %v3114_v43 = vpop.xlane.xlu0 %3113 }
0x15c8   :  { %v3115_v49 = vrot.slane %v3114_v43, 4 }
0x15ca   :  { %v3116_v12 = vadd.f32 %v3115_v49, %v3114_v43 }
0x15cc   :  { %v3117_v54 = vrot.slane %v3116_v12, 2 }
0x15ce   :  { %v3118_v26 = vadd.f32 %v3117_v54, %v3116_v12 }
0x15d0   :  { %v3119_v36 = vrot.slane %v3118_v26, 1 }
0x15d2   :  { %v3120_v6 = vadd.f32 %v3119_v36, %v3118_v26 }
0x15d4   :  { %5088 = vpush %v3120_v6 }
0x15d5   :  { %5561 = shalt.err (!%p5558_p13)
}
0x15d6   :  { %s5562_s21 = scalar_lea.hbm %s7400_s11, 1024 }
0x15d7   :  { %p5563_p0 = scmp.ne.s32.totalorder %s7400_s11, %s5562_s21  ;;  %p5566_p1 = scmp.lt.u32.totalorder %s5562_s21, %s7400_s11 }
0x15d9   :  { %p5568_p2 = pnand %p5566_p1, %p5563_p0 }
0x15db   :  { %5571 = shalt.err (!%p5568_p2)
}
0x15dc   :  { %4242 = dma.vmem_to_hbm [thread:$0]  %s4237_s7, 1024, %s7400_s11, [#allocation4], %s5610_s25, %s5610_s25, %s5611_s26   ;;  %v3754_v2 = vpop.xlane.xlu1 %3753  ;;  %v3954_v11 = vpop.xlane.xlu0 %3953  ;;  %vm4229_vm1 = vcmask 0  }
0x15dd   :  { %v3755_v40 = vrot.slane %v3754_v2, 4  ;;  %v3955_v9 = vrot.slane %v3954_v11, 4 }
0x15df   :  { %v3756_v55 = vadd.f32 %v3755_v40, %v3754_v2  ;;  %v3956_v38 = vadd.f32 %v3955_v9, %v3954_v11 }
0x15e1   :  { %v3757_v27 = vrot.slane %v3756_v55, 2  ;;  %v3957_v41 = vrot.slane %v3956_v38, 2 }
0x15e3   :  { %v3758_v44 = vadd.f32 %v3757_v27, %v3756_v55  ;;  %v3958_v39 = vadd.f32 %v3957_v41, %v3956_v38 }
0x15e5   :  { %v3759_v22 = vrot.slane %v3758_v44, 1  ;;  %v3959_v48 = vrot.slane %v3958_v39, 1 }
0x15e7   :  { %v3760_v16 = vadd.f32 %v3759_v22, %v3758_v44  ;;  %v3960_v28 = vadd.f32 %v3959_v48, %v3958_v39 }
0x1630   :  { %v3651_v34 = vpop.xlane.xlu0 %3650 }
0x1631   :  { %v3421_v53 = vpop.xlane.xlu1 %3420  ;;  %v3652_v4 = vrot.slane %v3651_v34, 4 }
0x1632   :  { %v3422_v17 = vrot.slane %v3421_v53, 4 }
0x1633   :  { %v3653_v19 = vadd.f32 %v3652_v4, %v3651_v34 }
0x1634   :  { %v3423_v52 = vadd.f32 %v3422_v17, %v3421_v53  ;;  %v4198_v20 = vpop.xlane.xlu0 %4197 }
0x1635   :  { %v3654_v14 = vrot.slane %v3653_v19, 2  ;;  %v4001_v15 = vpop.xlane.xlu1 %4000  ;;  %v4199_v23 = vrot.slane %v4198_v20, 4 }
0x1636   :  { %v3424_v63 = vrot.slane %v3423_v52, 2  ;;  %v4002_v57 = vrot.slane %v4001_v15, 4 }
0x1637   :  { %v4200_v45 = vadd.f32 %v4199_v23, %v4198_v20  ;;  %v3655_v50 = vadd.f32 %v3654_v14, %v3653_v19 }
0x1638   :  { %v4003_v3 = vadd.f32 %v4002_v57, %v4001_v15  ;;  %v866_v31 = vpop.xlane.xlu0 %865  ;;  %v3425_v8 = vadd.f32 %v3424_v63, %v3423_v52 }
0x1639   :  { %v4201_v35 = vrot.slane %v4200_v45, 2  ;;  %4218 = vst.msk [vmem:[%s7402_s13 + $0x8] sm:$0xff] %vm3097_vm11, %v866_v31  ;;  %v863_v46 = vpop.xlane.xlu1 %862  ;;  %v3656_v61 = vrot.slane %v3655_v50, 1 }
0x163a   :  { %v4004_v51 = vrot.slane %v4003_v3, 2  ;;  %4217 = vst.msk [vmem:[%s7402_s13] sm:$0xff] %vm3097_vm11, %v863_v46  ;;  %v3426_v37 = vrot.slane %v3425_v8, 1 }
0x163b   :  { %v3657_v25 = vadd.f32 %v3656_v61, %v3655_v50  ;;  %v4202_v58 = vadd.f32 %v4201_v35, %v4200_v45 }
0x163c   :  { %v872_v5 = vpop.xlane.xlu0 %871  ;;  %v3427_v1 = vadd.f32 %v3426_v37, %v3425_v8  ;;  %v4005_v56 = vadd.f32 %v4004_v51, %v4003_v3 }
0x163d   :  { %4220 = vst.msk [vmem:[%s7402_s13 + $0x18] sm:$0xff] %vm3097_vm11, %v872_v5  ;;  %v869_v7 = vpop.xlane.xlu1 %868  ;;  %v4203_v42 = vrot.slane %v4202_v58, 1 }
0x163e   :  { %4219 = vst.msk [vmem:[%s7402_s13 + $0x10] sm:$0xff] %vm3097_vm11, %v869_v7  ;;  %v4006_v24 = vrot.slane %v4005_v56, 1  ;;  %s5089_s13 = spop %5088 }
0x163f   :  { %5090 = vpush %v3427_v1  ;;  %v4204_v13 = vadd.f32 %v4203_v42, %v4202_v58  ;;  %v3122_v26 = vstv %s5089_s13 }
0x1640   :  { %5092 = vpush %v3657_v25  ;;  %v1448_v60 = vpop.xlane.xlu0 %1447  ;;  %v4007_v29 = vadd.f32 %v4006_v24, %v4005_v56  ;;  %v3123_v11 = vmul.f32 0.015625, %v3122_v26 }
0x1641   :  { %5094 = vpush %v3760_v16  ;;  %v1445_v10 = vpop.xlane.xlu1 %1444 }
0x1642   :  { %5096 = vpush %v3960_v28 }
0x1643   :  { %4222 = vst.msk [vmem:[%s7403_s14 + $0x8] sm:$0xff] %vm3097_vm11, %v1448_v60  ;;  %4221 = vst.msk [vmem:[%s7403_s14] sm:$0xff] %vm3097_vm11, %v1445_v10  ;;  %s5620_s14 = smov [#allocation16]  }
0x1644   :  { %5098 = vpush %v4007_v29  ;;  %s4249_s3 = sshll.u32 %s5620_s14, 4  ;;  %s4250_s3 = int_to_ptr.vmem [resolvable:$true] %s4249_s3 }
0x1645   :  { %5100 = vpush %v4204_v13  ;;  %s5572_s24 = scalar_lea.vmem %s4250_s3, 16  ;;  %s5576_s19 = scalar_lea.vmem %s4250_s3, 32 }
0x1646   :  { %p5573_p3 = scmp.ne.s32.totalorder %s4250_s3, %s5572_s24  ;;  %p5577_p4 = scmp.lt.s32.totalorder %s4250_s3, %s4250_s3 }
0x1647   :  { %p5578_p5 = scmp.lt.s32.totalorder %s5576_s19, %s5572_s24 }
0x1649   :  { %p5579_p6 = por %p5578_p5, %p5577_p4 }
0x164b   :  { %p5580_p7 = pnand %p5579_p6, %p5573_p3 }
0x1670   :  { %s5091_s17 = spop %5090 }
0x1671   :  { %v3429_v18 = vstv %s5091_s17  ;;  %s5093_s18 = spop %5092 }
0x1672   :  { %v3430_v59 = vmul.f32 0.03125, %v3429_v18  ;;  %v3659_v0 = vstv %s5093_s18  ;;  %s5095_s9 = spop %5094 }
0x1673   :  { %v3660_v32 = vmul.f32 0.0625, %v3659_v0  ;;  %v3762_v62 = vstv %s5095_s9  ;;  %s5097_s10 = spop %5096 }
0x1674   :  { %v3962_v47 = vstv %s5097_s10  ;;  %v3764_v33 = vmul.f32 0.0078125, %v3762_v62 }
0x1675   :  { %s5099_s2 = spop %5098  ;;  %v4223_v30 = vadd.f32 %v3660_v32, %v3430_v59  ;;  %v3964_v21 = vmul.f32 6.1035156e-05, %v3962_v47 }
0x1676   :  { %v4009_v43 = vstv %s5099_s2  ;;  %s5101_s7 = spop %5100 }
0x1677   :  { %v4010_v49 = vmul.f32 0.0078125, %v4009_v43  ;;  %v4206_v12 = vstv %s5101_s7  ;;  %v4224_v36 = vmul.f32 0.5, %v4223_v30  ;;  %v3965_v6 = vadd.f32 %v3964_v21, %v3764_v33 }
0x1678   :  { %v4207_v54 = vmul.f32 6.1035156e-05, %v4206_v12 }
0x1679   :  { %v4225_v9 = vadd.f32 %v4224_v36, %v3123_v11 }
0x167a   :  { %v4208_v2 = vadd.f32 %v4207_v54, %v4010_v49 }
0x167c   :  { %v4226_v40 = vadd.f32 %v4208_v2, %v3965_v6 }
0x167e   :  { %v4227_v55 = vmul.f32 0.5, %v4226_v40 }
0x1680   :  { %v4228_v38 = vadd.f32 %v4227_v55, %v4225_v9 }
0x1682   :  { %4230 = vst.msk [vmem:[#allocation16] sm:$0x1] %vm4229_vm1, %v4228_v38 }
0x1683   :  { %5583 = shalt.err (!%p5580_p7)
}
0x1684   :  { %s5584_s22 = scalar_lea.hbm %s7401_s12, 16 }
0x1685   :  { %p5585_p8 = scmp.ne.s32.totalorder %s7401_s12, %s5584_s22  ;;  %p5588_p9 = scmp.lt.u32.totalorder %s5584_s22, %s7401_s12 }
0x1687   :  { %p5590_p10 = pnand %p5588_p9, %p5585_p8 }
0x1689   :  { %5593 = shalt.err (!%p5590_p10)
}
0x168a   :  { %4252 = dma.vmem_to_hbm [thread:$0]  %s4250_s3, 16, %s7401_s12, [#allocation17]  }
0x168b   :  { %5604 = dma.done.wait [#allocation4], 1024  }
0x168c   :  { %5605 = vsyncadd [#allocation4], 4294966272 }
0x168d   :  { %5606 = dma.done.wait [#allocation17], 16  }
0x168e   :  { %5607 = vsyncadd [#allocation17], 4294967280 }
0x168f   :  { %4267 = vsyncpa [#allocation3], 1 }
0x1690   :  { %4268 = vsyncpa [#allocation7], 1 }
0x1691   :  { %4269 = vsyncpa [#allocation10], 1 }
0x1692   :  { %4270 = vsyncpa [#allocation13], 1 }
0x1693   :  { %4271 = vsyncpa [#allocation4], 1 }
0x1694   :  { %4272 = vsyncpa [#allocation17], 1 }
0x1695   :  { %4273 = vsyncpa [#allocation5], 1 }

</bundles_post_ra>
